<compile_context>
chip_gen: v7x
topology: tpu7x:2x2x1
jax: 0.10.0
libtpu: 0.0.40
codegen_flags: <defaults>
</compile_context>

<pallas_src>
import functools
import math

import jax
import jax.numpy as jnp
from jax import lax
from jax.experimental import pallas as pl
from jax.experimental.pallas import tpu as pltpu


# ----------------------------- Pallas kernels -------------------------------

def _pfn_kernel(x_ref, w_ref, s_ref, b_ref, o_ref, *, T):
    """PFNLayer: linear (no bias) + folded BN + ReLU + max over the T points.

    x_ref block is (T, tp, F) (t-major) so the point-max is an unrolled
    jnp.maximum over lane-aligned (tp, C) tiles -- no reshape, no XLU reduce.
    """
    m = None
    for t in range(T):
        y = jnp.dot(x_ref[t], w_ref[...], preferred_element_type=jnp.float32)
        y = jnp.maximum(y * s_ref[...] + b_ref[...], 0.0)
        m = y if m is None else jnp.maximum(m, y)
    o_ref[...] = m.astype(o_ref.dtype)


def pfn_layer(feats_tpf, w, scale, bias):
    """feats_tpf: (T, P, F) f32 -> (P, C) bf16."""
    T, P, F = feats_tpf.shape
    C = w.shape[1]
    tp = min(128, P)
    out = pl.pallas_call(
        functools.partial(_pfn_kernel, T=T),
        out_shape=jax.ShapeDtypeStruct((P, C), jnp.bfloat16),
        grid=(pl.cdiv(P, tp),),
        in_specs=[
            pl.BlockSpec((T, tp, F), lambda i: (0, i, 0)),
            pl.BlockSpec((F, C), lambda i: (0, 0)),
            pl.BlockSpec((1, C), lambda i: (0, 0)),
            pl.BlockSpec((1, C), lambda i: (0, 0)),
        ],
        out_specs=pl.BlockSpec((tp, C), lambda i: (i, 0)),
        compiler_params=pltpu.CompilerParams(dimension_semantics=("parallel",)),
    )(feats_tpf.astype(jnp.bfloat16), w.astype(jnp.bfloat16),
      scale.reshape(1, C).astype(jnp.float32),
      bias.reshape(1, C).astype(jnp.float32))
    return out


def _shift_cols(line, dx, width):
    """out[j] = line[j + dx] with zero padding outside [0, width). line: (width, C)."""
    if dx == 0:
        return line
    rolled = pltpu.roll(line, shift=(-dx) % width, axis=0)
    pos = lax.broadcasted_iota(jnp.int32, (width, 1), 0)
    keep = (pos < (width - dx)) if dx > 0 else (pos >= (-dx))
    return jnp.where(keep, rolled, jnp.zeros_like(rolled))


def _block_kernel(*refs, H, W, C_in, C, L, stride):
    """One full BaseBEVBackbone block for one agent.

    conv0: 3x3, stride `stride`, pad 1   (reads the HBM-tiled input block)
    conv1..L: 3x3, stride 1, pad 1       (feature map stays VMEM-resident)
    Each conv is folded-BN + ReLU.  The 9 taps per output row are built by
    lane-concatenating column-shifted rows and doing one bf16 MXU GEMM.
    """
    if stride == 2:
        xe_ref, xo_ref, w0_ref, wr_ref, s_ref, b_ref, o_ref, buf_a, buf_b = refs
    else:
        xe_ref, w0_ref, wr_ref, s_ref, b_ref, o_ref, buf_a, buf_b = refs
        xo_ref = None
    Ho, Wo = H // stride, W // stride
    zero_in = jnp.zeros((Wo, C_in), jnp.float32)
    zero_c = jnp.zeros((Wo, C), jnp.float32)

    # ---- conv 0 (possibly strided) ----
    for i in range(Ho):
        pieces = []
        for ky in range(3):
            r = stride * i + ky - 1
            if 0 <= r < H:
                if stride == 2:
                    ev = xe_ref[0, r].astype(jnp.float32)   # columns 2j
                    od = xo_ref[0, r].astype(jnp.float32)   # columns 2j+1
                    pieces += [_shift_cols(od, -1, Wo), ev, od]   # cols 2j-1, 2j, 2j+1
                else:
                    line = xe_ref[0, r].astype(jnp.float32)
                    pieces += [_shift_cols(line, kx - 1, Wo) for kx in range(3)]
            else:
                pieces += [zero_in, zero_in, zero_in]
        patch = jnp.concatenate(pieces, axis=-1).astype(jnp.bfloat16)   # (Wo, 9*C_in)
        acc = jnp.dot(patch, w0_ref[...], preferred_element_type=jnp.float32)
        acc = jnp.maximum(acc * s_ref[0] + b_ref[0], 0.0)
        buf_a[i] = acc

    # ---- convs 1..L (VMEM-resident, ping-pong scratch) ----
    src, dst = buf_a, buf_b
    for l in range(1, L + 1):
        last = l == L
        for i in range(Ho):
            pieces = []
            for ky in range(3):
                r = i + ky - 1
                if 0 <= r < Ho:
                    line = src[r]
                    pieces += [_shift_cols(line, kx - 1, Wo) for kx in range(3)]
                else:
                    pieces += [zero_c, zero_c, zero_c]
            patch = jnp.concatenate(pieces, axis=-1).astype(jnp.bfloat16)  # (Wo, 9*C)
            acc = jnp.dot(patch, wr_ref[l - 1], preferred_element_type=jnp.float32)
            acc = jnp.maximum(acc * s_ref[l] + b_ref[l], 0.0)
            if last:
                o_ref[0, i] = acc.astype(o_ref.dtype)
            else:
                dst[i] = acc
        if not last:
            src, dst = dst, src


def backbone_block(x, w0, w_rest, scales, biases, *, stride):
    """x: (A, H, W, C_in) bf16 -> (A, H//stride, W//stride, C_out) bf16."""
    A, H, W, C_in = x.shape
    C = w0.shape[1]
    L = w_rest.shape[0]
    Ho, Wo = H // stride, W // stride
    if stride == 2:
        # even/odd column phases (XLA slices) so the kernel only needs
        # contiguous row reads + roll shifts -- no strided in-kernel loads.
        inputs = (x[:, :, 0::2, :], x[:, :, 1::2, :])
        x_specs = [pl.BlockSpec((1, H, Wo, C_in), lambda a: (a, 0, 0, 0)),
                   pl.BlockSpec((1, H, Wo, C_in), lambda a: (a, 0, 0, 0))]
    elif stride == 1:
        inputs = (x,)
        x_specs = [pl.BlockSpec((1, H, W, C_in), lambda a: (a, 0, 0, 0))]
    else:
        raise NotImplementedError("layer_strides of 1 or 2 only")
    kernel = functools.partial(_block_kernel, H=H, W=W, C_in=C_in, C=C, L=L,
                               stride=stride)
    return pl.pallas_call(
        kernel,
        out_shape=jax.ShapeDtypeStruct((A, Ho, Wo, C), jnp.bfloat16),
        grid=(A,),
        in_specs=x_specs + [
            pl.BlockSpec((9 * C_in, C), lambda a: (0, 0)),
            pl.BlockSpec((L, 9 * C, C), lambda a: (0, 0, 0)),
            pl.BlockSpec((L + 1, 1, C), lambda a: (0, 0, 0)),
            pl.BlockSpec((L + 1, 1, C), lambda a: (0, 0, 0)),
        ],
        out_specs=pl.BlockSpec((1, Ho, Wo, C), lambda a: (a, 0, 0, 0)),
        scratch_shapes=[pltpu.VMEM((Ho, Wo, C), jnp.float32),
                        pltpu.VMEM((Ho, Wo, C), jnp.float32)],
        compiler_params=pltpu.CompilerParams(dimension_semantics=("parallel",)),
    )(*inputs, w0, w_rest, scales, biases)


def _decode_heads_kernel(f0_ref, f1_ref, wd0_ref, s0_ref, b0_ref,
                         wd1_ref, s1_ref, b1_ref, sil_ref, wh_ref, bh_ref,
                         o_ref, *, Hf, k1):
    """deblock0 (1x1 deconv) + deblock1 (kxk deconv, depth-to-space in-kernel)
    + channel concat + fused cls/reg 1x1 heads, per ego sample, per row."""
    for i in range(Hf):
        # deblock 0 (kernel == stride == 1)
        u0 = jnp.dot(f0_ref[0, i], wd0_ref[...], preferred_element_type=jnp.float32)
        u0 = jnp.maximum(u0 * s0_ref[...] + b0_ref[...], 0.0)
        # deblock 1 (kernel == stride == k1): output row i <- input row i//k1,
        # kernel row a = i%k1; column interleave done with 0/1 selection GEMMs.
        p, a = i // k1, i % k1
        x1 = f1_ref[0, p]
        u1 = None
        for b in range(k1):
            y = jnp.dot(x1, wd1_ref[a * k1 + b], preferred_element_type=jnp.float32)
            y = jnp.maximum(y * s1_ref[...] + b1_ref[...], 0.0)
            part = jnp.dot(sil_ref[b], y.astype(jnp.bfloat16),
                           preferred_element_type=jnp.float32)
            u1 = part if u1 is None else u1 + part
        feat = jnp.concatenate([u0.astype(jnp.bfloat16), u1.astype(jnp.bfloat16)],
                               axis=-1)
        o = jnp.dot(feat, wh_ref[...], preferred_element_type=jnp.float32) + bh_ref[...]
        o_ref[0, i] = o.astype(o_ref.dtype)


def decode_and_heads(f0, f1, wd0, s0, b0, wd1, s1, b1, w_head, b_head, *, k1):
    # TODO(synk): specialized to 2 scales with upsample_strides == [1, k].
    B, Hf, Wf, C0 = f0.shape
    _, H1, W1, C1 = f1.shape
    Nh = w_head.shape[1]
    sil = (jnp.arange(Wf)[None, :, None] ==
           (k1 * jnp.arange(W1)[None, None, :] + jnp.arange(k1)[:, None, None])
           ).astype(jnp.bfloat16)                                  # (k1, Wf, W1)
    kernel = functools.partial(_decode_heads_kernel, Hf=Hf, k1=k1)
    return pl.pallas_call(
        kernel,
        out_shape=jax.ShapeDtypeStruct((B, Hf, Wf, Nh), jnp.float32),
        grid=(B,),
        in_specs=[
            pl.BlockSpec((1, Hf, Wf, C0), lambda n: (n, 0, 0, 0)),
            pl.BlockSpec((1, H1, W1, C1), lambda n: (n, 0, 0, 0)),
            pl.BlockSpec(wd0.shape, lambda n: (0, 0)),
            pl.BlockSpec((1, s0.shape[-1]), lambda n: (0, 0)),
            pl.BlockSpec((1, b0.shape[-1]), lambda n: (0, 0)),
            pl.BlockSpec(wd1.shape, lambda n: (0, 0, 0)),
            pl.BlockSpec((1, s1.shape[-1]), lambda n: (0, 0)),
            pl.BlockSpec((1, b1.shape[-1]), lambda n: (0, 0)),
            pl.BlockSpec(sil.shape, lambda n: (0, 0, 0)),
            pl.BlockSpec(w_head.shape, lambda n: (0, 0)),
            pl.BlockSpec((1, Nh), lambda n: (0, 0)),
        ],
        out_specs=pl.BlockSpec((1, Hf, Wf, Nh), lambda n: (n, 0, 0, 0)),
        compiler_params=pltpu.CompilerParams(dimension_semantics=("parallel",)),
    )(f0, f1, wd0, s0, b0, wd1, s1, b1, sil, w_head, b_head)


# ------------------------------ glue (plain JAX) ----------------------------

def fold_bn(gamma, beta, mean, var, eps):
    scale = gamma / jnp.sqrt(var + eps)
    return scale, beta - mean * scale


def pack_conv3x3(w_oihw):
    cout, cin = w_oihw.shape[0], w_oihw.shape[1]
    return jnp.transpose(w_oihw, (2, 3, 1, 0)).reshape(9 * cin, cout)


def normalize_pairwise_tfm(t, H, W, discrete_ratio, downsample_rate=1):
    m = t[..., 0:2, :][..., jnp.array([0, 1, 3])]      # (B, L, L, 2, 3)
    m = m.at[..., 0, 1].multiply(H / W)
    m = m.at[..., 1, 0].multiply(W / H)
    m = m.at[..., 0, 2].set(m[..., 0, 2] / (downsample_rate * discrete_ratio * W) * 2)
    m = m.at[..., 1, 2].set(m[..., 1, 2] / (downsample_rate * discrete_ratio * H) * 2)
    return m


def warp_affine_simple(src, theta):
    # TODO(synk): gather-based bilinear grid_sample kept in plain JAX (no clean Pallas gather).
    # src: (N, H, W, C), theta: (N, 2, 3); align_corners=False, zero padding.
    N, H, W, C = src.shape
    xs = (2.0 * jnp.arange(W, dtype=jnp.float32) + 1.0) / W - 1.0
    ys = (2.0 * jnp.arange(H, dtype=jnp.float32) + 1.0) / H - 1.0
    gx = (theta[:, 0, 0, None, None] * xs[None, None, :]
          + theta[:, 0, 1, None, None] * ys[None, :, None]
          + theta[:, 0, 2, None, None])
    gy = (theta[:, 1, 0, None, None] * xs[None, None, :]
          + theta[:, 1, 1, None, None] * ys[None, :, None]
          + theta[:, 1, 2, None, None])
    ix = ((gx + 1.0) * W - 1.0) / 2.0
    iy = ((gy + 1.0) * H - 1.0) / 2.0
    x0 = jnp.floor(ix); y0 = jnp.floor(iy)
    x1 = x0 + 1.0; y1 = y0 + 1.0
    wx1 = ix - x0; wx0 = 1.0 - wx1
    wy1 = iy - y0; wy0 = 1.0 - wy1
    bidx = jnp.arange(N)[:, None, None]

    def gather(yy, xx):
        valid = (xx >= 0) & (xx <= W - 1) & (yy >= 0) & (yy <= H - 1)
        xi = jnp.clip(xx, 0, W - 1).astype(jnp.int32)
        yi = jnp.clip(yy, 0, H - 1).astype(jnp.int32)
        return src[bidx, yi, xi] * valid[..., None].astype(src.dtype)

    return (gather(y0, x0) * (wy0 * wx0)[..., None]
            + gather(y0, x1) * (wy0 * wx1)[..., None]
            + gather(y1, x0) * (wy1 * wx0)[..., None]
            + gather(y1, x1) * (wy1 * wx1)[..., None])


def max_fusion(x, record_len, norm_t):
    # MaxFusion: regroup by record_len, warp to ego frame, max over agents.
    outs, start = [], 0
    for b, n in enumerate(record_len):
        xx = x[start:start + n]
        theta = norm_t[b, 0, :n]
        warped = warp_affine_simple(xx, theta)
        outs.append(jnp.max(warped, axis=0))
        start += n
    return jnp.stack(outs, axis=0)


def build_pillar_features(voxel_features, voxel_coords, voxel_num_points,
                          voxel_size, pc_range):
    # PillarVFE feature assembly: [xyz+i, cluster offsets, center offsets] + mask
    P, T, _ = voxel_features.shape
    npts = jnp.maximum(voxel_num_points, 1).astype(jnp.float32)[:, None, None]
    points_mean = jnp.sum(voxel_features[:, :, :3], axis=1, keepdims=True) / npts
    f_cluster = voxel_features[:, :, :3] - points_mean
    vx, vy, vz = voxel_size
    cx = voxel_coords[:, 3].astype(jnp.float32)[:, None] * vx + (vx / 2.0 + pc_range[0])
    cy = voxel_coords[:, 2].astype(jnp.float32)[:, None] * vy + (vy / 2.0 + pc_range[1])
    cz = voxel_coords[:, 1].astype(jnp.float32)[:, None] * vz + (vz / 2.0 + pc_range[2])
    f_center = jnp.stack([voxel_features[:, :, 0] - cx,
                          voxel_features[:, :, 1] - cy,
                          voxel_features[:, :, 2] - cz], axis=-1)
    feats = jnp.concatenate([voxel_features, f_cluster, f_center], axis=-1)  # (P,T,10)
    mask = (jnp.arange(T)[None, :] < voxel_num_points[:, None]).astype(feats.dtype)
    return feats * mask[:, :, None]


def pillar_scatter(pillar_features, voxel_coords, num_agents, ny, nx):
    # TODO(synk): scatter into BEV canvas kept in plain JAX (data movement, not compute).
    C = pillar_features.shape[1]
    idx = voxel_coords[:, 1] + voxel_coords[:, 2] * nx + voxel_coords[:, 3]
    flat = voxel_coords[:, 0] * (ny * nx) + idx
    canvas = jnp.zeros((num_agents * ny * nx, C), pillar_features.dtype)
    canvas = canvas.at[flat].set(pillar_features)
    return canvas.reshape(num_agents, ny, nx, C)


# ------------------------------ parameters ----------------------------------

def init_params(key, cfg):
    kstate = [key]

    def nkey():
        kstate[0], sub = jax.random.split(kstate[0])
        return sub

    def conv_w(cout, cin, k):
        return jax.random.normal(nkey(), (cout, cin, k, k), jnp.float32) / math.sqrt(cin * k * k)

    def bn(c, eps):
        gamma = 1.0 + 0.1 * jax.random.normal(nkey(), (c,), jnp.float32)
        beta = 0.1 * jax.random.normal(nkey(), (c,), jnp.float32)
        mean = 0.05 * jax.random.normal(nkey(), (c,), jnp.float32)
        var = 1.0 + 0.1 * jnp.abs(jax.random.normal(nkey(), (c,), jnp.float32))
        return (gamma, beta, mean, var, eps)

    params = {}
    # PillarVFE: Linear(10 -> 64, bias=False) + BatchNorm1d(eps=1e-3)
    c_pfn = cfg['pfn_filters'][0]
    params['pfn'] = {'w': jax.random.normal(nkey(), (10, c_pfn), jnp.float32) / math.sqrt(10.0),
                     'bn': bn(c_pfn, 1e-3)}

    # BaseBEVBackbone blocks
    blocks = []
    c_in_list = [cfg['scatter_features']] + cfg['num_filters'][:-1]
    for i, (ln, st, cf) in enumerate(zip(cfg['layer_nums'], cfg['layer_strides'],
                                         cfg['num_filters'])):
        convs = [{'w': conv_w(cf, c_in_list[i], 3), 'bn': bn(cf, 1e-3), 'stride': st}]
        for _ in range(ln):
            convs.append({'w': conv_w(cf, cf, 3), 'bn': bn(cf, 1e-3), 'stride': 1})
        blocks.append(convs)
    params['blocks'] = blocks

    deblocks = []
    for i, (us, cu) in enumerate(zip(cfg['upsample_strides'], cfg['num_upsample_filter'])):
        cin = cfg['num_filters'][i]
        w = jax.random.normal(nkey(), (cin, cu, us, us), jnp.float32) / math.sqrt(cin * us * us)
        deblocks.append({'w': w, 'bn': bn(cu, 1e-3), 'k': us})
    params['deblocks'] = deblocks

    c_out = sum(cfg['num_upsample_filter'])
    na = cfg['anchor_number']
    params['cls_head'] = {'w': conv_w(na, c_out, 1),
                          'b': 0.1 * jax.random.normal(nkey(), (na,), jnp.float32)}
    params['reg_head'] = {'w': conv_w(7 * na, c_out, 1),
                          'b': 0.1 * jax.random.normal(nkey(), (7 * na,), jnp.float32)}
    return params


# ------------------------------ forward pass --------------------------------

def model_forward(params, data, cfg):
    vf, vc, vn = data['voxel_features'], data['voxel_coords'], data['voxel_num_points']
    record_len = data['record_len']                       # static python list
    t_mat = data['pairwise_t_matrix']
    num_agents = int(sum(record_len))
    ny, nx = cfg['grid_ny'], cfg['grid_nx']

    # 1) PillarVFE (fused linear+BN+ReLU+point-max Pallas kernel)
    feats = build_pillar_features(vf, vc, vn, cfg['voxel_size'], cfg['lidar_range'])
    feats_tpf = jnp.transpose(feats, (1, 0, 2))           # (T, P, 10) t-major
    s_pfn, b_pfn = fold_bn(*params['pfn']['bn'])
    pillar_feats = pfn_layer(feats_tpf, params['pfn']['w'], s_pfn, b_pfn)   # (P, 64) bf16

    # 2) PointPillarScatter -> (A, ny, nx, 64) bf16
    spatial = pillar_scatter(pillar_feats, vc, num_agents, ny, nx)
    H0, W0 = ny, nx
    norm_t = normalize_pairwise_tfm(t_mat, H0, W0, cfg['voxel_size'][0])

    # 3) backbone.get_multiscale_feature: one fused VMEM-resident kernel per block
    feature_list = []
    x = spatial
    for blk in params['blocks']:
        w0 = pack_conv3x3(blk[0]['w']).astype(jnp.bfloat16)
        w_rest = jnp.stack([pack_conv3x3(c['w']) for c in blk[1:]], axis=0).astype(jnp.bfloat16)
        sc, bs = zip(*[fold_bn(*c['bn']) for c in blk])
        scales = jnp.stack(sc, axis=0)[:, None, :].astype(jnp.float32)
        biases = jnp.stack(bs, axis=0)[:, None, :].astype(jnp.float32)
        x = backbone_block(x, w0, w_rest, scales, biases, stride=blk[0]['stride'])
        feature_list.append(x)

    # 4) per-scale MaxFusion (warp to ego + max over agents), plain JAX
    fused_list = [max_fusion(f, record_len, norm_t).astype(jnp.bfloat16)
                  for f in feature_list]

    # 5+6) deblocks + concat + cls/reg heads, fused in one Pallas call
    assert len(fused_list) == 2 and params['deblocks'][0]['k'] == 1, \
        "decode kernel specialized to 2 scales with upsample_strides [1, k]"
    d0, d1 = params['deblocks']
    k1 = d1['k']
    cin0, cu0 = d0['w'].shape[0], d0['w'].shape[1]
    wd0 = d0['w'].reshape(cin0, cu0).astype(jnp.bfloat16)
    s0, b0 = fold_bn(*d0['bn'])
    s0, b0 = s0[None, :].astype(jnp.float32), b0[None, :].astype(jnp.float32)
    cin1, cu1 = d1['w'].shape[0], d1['w'].shape[1]
    wd1 = jnp.transpose(d1['w'], (2, 3, 0, 1)).reshape(k1 * k1, cin1, cu1).astype(jnp.bfloat16)
    s1, b1 = fold_bn(*d1['bn'])
    s1, b1 = s1[None, :].astype(jnp.float32), b1[None, :].astype(jnp.float32)

    # fused cls+reg head weights, lane-padded to a multiple of 128 for dense stores
    na = params['cls_head']['w'].shape[0]
    c_out = params['cls_head']['w'].shape[1]
    n_head = na + 7 * na
    n_pad = ((n_head + 127) // 128) * 128
    w_cls = params['cls_head']['w'].reshape(na, c_out).T
    w_reg = params['reg_head']['w'].reshape(7 * na, c_out).T
    w_head = (jnp.zeros((c_out, n_pad), jnp.float32)
              .at[:, :na].set(w_cls)
              .at[:, na:n_head].set(w_reg)).astype(jnp.bfloat16)
    b_head = (jnp.zeros((1, n_pad), jnp.float32)
              .at[0, :na].set(params['cls_head']['b'])
              .at[0, na:n_head].set(params['reg_head']['b']))

    out = decode_and_heads(fused_list[0], fused_list[1], wd0, s0, b0,
                           wd1, s1, b1, w_head, b_head, k1=k1)
    psm = out[..., :na]
    rm = out[..., na:n_head]
    return {'cls_preds': jnp.transpose(psm, (0, 3, 1, 2)),   # NCHW, like PyTorch
            'reg_preds': jnp.transpose(rm, (0, 3, 1, 2))}


# ---------------------------------- main -------------------------------------

if __name__ == "__main__":
    cfg = {
        'voxel_size': (0.4, 0.4, 4.0),
        'lidar_range': (-3.2, -3.2, -3.0, 3.2, 3.2, 1.0),
        'grid_nx': 16, 'grid_ny': 16,
        'scatter_features': 64,
        'pfn_filters': [64],
        'layer_nums': [2, 2],
        'layer_strides': [2, 2],
        'num_filters': [64, 128],
        'upsample_strides': [1, 2],
        'num_upsample_filter': [64, 64],
        'anchor_number': 2,
    }
    key = jax.random.PRNGKey(0)
    k_param, k_npts, k_noise = jax.random.split(key, 3)
    params = init_params(k_param, cfg)

    record_len = [2, 1]            # 2 agents in scene 0, 1 agent in scene 1
    num_agents, B, L = 3, 2, 2
    T, voxels_per_agent = 16, 40
    P = num_agents * voxels_per_agent
    nx, ny = cfg['grid_nx'], cfg['grid_ny']

    # deterministic, collision-free voxel coords (agent, z, y, x)
    coords = []
    for a in range(num_agents):
        cell = (jnp.arange(voxels_per_agent) * 7 + a * 3) % (nx * ny)
        coords.append(jnp.stack([jnp.full_like(cell, a), jnp.zeros_like(cell),
                                 cell // nx, cell % nx], axis=1))
    voxel_coords = jnp.concatenate(coords, axis=0).astype(jnp.int32)   # (P, 4)

    vx, vy, vz = cfg['voxel_size']
    cx = voxel_coords[:, 3].astype(jnp.float32) * vx + (vx / 2 + cfg['lidar_range'][0])
    cy = voxel_coords[:, 2].astype(jnp.float32) * vy + (vy / 2 + cfg['lidar_range'][1])
    cz = voxel_coords[:, 1].astype(jnp.float32) * vz + (vz / 2 + cfg['lidar_range'][2])
    centers = jnp.stack([cx, cy, cz, jnp.zeros_like(cx)], axis=-1)[:, None, :]
    voxel_features = centers + 0.1 * jax.random.normal(k_noise, (P, T, 4), jnp.float32)
    voxel_num_points = jax.random.randint(k_npts, (P,), 1, T + 1).astype(jnp.int32)

    pairwise_t_matrix = jnp.tile(jnp.eye(4, dtype=jnp.float32), (B, L, L, 1, 1))

    data = {'voxel_features': voxel_features,
            'voxel_coords': voxel_coords,
            'voxel_num_points': voxel_num_points,
            'record_len': record_len,
            'pairwise_t_matrix': pairwise_t_matrix}

    out = model_forward(params, data, cfg)
    jax.block_until_ready(out)
    assert out['cls_preds'].shape == (B, cfg['anchor_number'], 8, 8)
    assert out['reg_preds'].shape == (B, 7 * cfg['anchor_number'], 8, 8)
    print("KERNEL_OK")
</pallas_src>

<mosaic_0001>
module attributes {stable_mosaic.version = 11 : i64} {
  func.func @_pfn_kernel(%arg0: i32, %arg1: memref<16x120x10xbf16, #tpu.memory_space<vmem>>, %arg2: memref<10x64xbf16, #tpu.memory_space<vmem>>, %arg3: memref<1x64xf32, #tpu.memory_space<vmem>>, %arg4: memref<1x64xf32, #tpu.memory_space<vmem>>, %arg5: memref<120x64xbf16, #tpu.memory_space<vmem>>) attributes {dimension_semantics = [#tpu.dimension_semantics<parallel>], iteration_bounds = array<i64: 1>, scalar_prefetch = 0 : i64, scratch_operands = 0 : i64, tpu.core_type = #tpu.core_type<tc>, window_params = [{transform_indices = @transform_0, window_bounds = array<i64: 16, 120, 10>}, {pipeline_mode = #tpu.pipeline_mode<synchronous>, transform_indices = @transform_1, window_bounds = array<i64: 10, 64>}, {pipeline_mode = #tpu.pipeline_mode<synchronous>, transform_indices = @transform_2, window_bounds = array<i64: 1, 64>}, {pipeline_mode = #tpu.pipeline_mode<synchronous>, transform_indices = @transform_3, window_bounds = array<i64: 1, 64>}, {transform_indices = @transform_4, window_bounds = array<i64: 120, 64>}]} {
    %c0 = arith.constant 0 : index
    %c0_0 = arith.constant 0 : index
    %c0_1 = arith.constant 0 : index
    %0 = vector.load %arg1[%c0, %c0_0, %c0_1] : memref<16x120x10xbf16, #tpu.memory_space<vmem>>, vector<1x120x10xbf16>
    %1 = vector.shape_cast %0 : vector<1x120x10xbf16> to vector<120x10xbf16>
    %c0_2 = arith.constant 0 : index
    %c0_3 = arith.constant 0 : index
    %2 = vector.load %arg2[%c0_2, %c0_3] : memref<10x64xbf16, #tpu.memory_space<vmem>>, vector<10x64xbf16>
    %cst = arith.constant dense<0.000000e+00> : vector<120x64xf32>
    %3 = tpu.matmul %1, %2, %cst {dimension_numbers = #tpu.dot_dimension_numbers<[1], [0], [0], [1], [0, 0, 1, 1], [], []>} : vector<120x10xbf16>, vector<10x64xbf16>, vector<120x64xf32> -> vector<120x64xf32>
    %c0_4 = arith.constant 0 : index
    %c0_5 = arith.constant 0 : index
    %4 = vector.load %arg3[%c0_4, %c0_5] : memref<1x64xf32, #tpu.memory_space<vmem>>, vector<1x64xf32>
    %5 = vector.broadcast %4 : vector<1x64xf32> to vector<120x64xf32>
    %6 = arith.mulf %3, %5 : vector<120x64xf32>
    %c0_6 = arith.constant 0 : index
    %c0_7 = arith.constant 0 : index
    %7 = vector.load %arg4[%c0_6, %c0_7] : memref<1x64xf32, #tpu.memory_space<vmem>>, vector<1x64xf32>
    %8 = vector.broadcast %7 : vector<1x64xf32> to vector<120x64xf32>
    %9 = arith.addf %6, %8 : vector<120x64xf32>
    %cst_8 = arith.constant 0.000000e+00 : f32
    %10 = vector.broadcast %cst_8 : f32 to vector<120x64xf32>
    %11 = arith.maximumf %9, %10 : vector<120x64xf32>
    %c1 = arith.constant 1 : index
    %c0_9 = arith.constant 0 : index
    %c0_10 = arith.constant 0 : index
    %12 = vector.load %arg1[%c1, %c0_9, %c0_10] : memref<16x120x10xbf16, #tpu.memory_space<vmem>>, vector<1x120x10xbf16>
    %13 = vector.shape_cast %12 : vector<1x120x10xbf16> to vector<120x10xbf16>
    %c0_11 = arith.constant 0 : index
    %c0_12 = arith.constant 0 : index
    %14 = vector.load %arg2[%c0_11, %c0_12] : memref<10x64xbf16, #tpu.memory_space<vmem>>, vector<10x64xbf16>
    %cst_13 = arith.constant dense<0.000000e+00> : vector<120x64xf32>
    %15 = tpu.matmul %13, %14, %cst_13 {dimension_numbers = #tpu.dot_dimension_numbers<[1], [0], [0], [1], [0, 0, 1, 1], [], []>} : vector<120x10xbf16>, vector<10x64xbf16>, vector<120x64xf32> -> vector<120x64xf32>
    %c0_14 = arith.constant 0 : index
    %c0_15 = arith.constant 0 : index
    %16 = vector.load %arg3[%c0_14, %c0_15] : memref<1x64xf32, #tpu.memory_space<vmem>>, vector<1x64xf32>
    %17 = vector.broadcast %16 : vector<1x64xf32> to vector<120x64xf32>
    %18 = arith.mulf %15, %17 : vector<120x64xf32>
    %c0_16 = arith.constant 0 : index
    %c0_17 = arith.constant 0 : index
    %19 = vector.load %arg4[%c0_16, %c0_17] : memref<1x64xf32, #tpu.memory_space<vmem>>, vector<1x64xf32>
    %20 = vector.broadcast %19 : vector<1x64xf32> to vector<120x64xf32>
    %21 = arith.addf %18, %20 : vector<120x64xf32>
    %cst_18 = arith.constant 0.000000e+00 : f32
    %22 = vector.broadcast %cst_18 : f32 to vector<120x64xf32>
    %23 = arith.maximumf %21, %22 : vector<120x64xf32>
    %24 = arith.maximumf %11, %23 : vector<120x64xf32>
    %c2 = arith.constant 2 : index
    %c0_19 = arith.constant 0 : index
    %c0_20 = arith.constant 0 : index
    %25 = vector.load %arg1[%c2, %c0_19, %c0_20] : memref<16x120x10xbf16, #tpu.memory_space<vmem>>, vector<1x120x10xbf16>
    %26 = vector.shape_cast %25 : vector<1x120x10xbf16> to vector<120x10xbf16>
    %c0_21 = arith.constant 0 : index
    %c0_22 = arith.constant 0 : index
    %27 = vector.load %arg2[%c0_21, %c0_22] : memref<10x64xbf16, #tpu.memory_space<vmem>>, vector<10x64xbf16>
    %cst_23 = arith.constant dense<0.000000e+00> : vector<120x64xf32>
    %28 = tpu.matmul %26, %27, %cst_23 {dimension_numbers = #tpu.dot_dimension_numbers<[1], [0], [0], [1], [0, 0, 1, 1], [], []>} : vector<120x10xbf16>, vector<10x64xbf16>, vector<120x64xf32> -> vector<120x64xf32>
    %c0_24 = arith.constant 0 : index
    %c0_25 = arith.constant 0 : index
    %29 = vector.load %arg3[%c0_24, %c0_25] : memref<1x64xf32, #tpu.memory_space<vmem>>, vector<1x64xf32>
    %30 = vector.broadcast %29 : vector<1x64xf32> to vector<120x64xf32>
    %31 = arith.mulf %28, %30 : vector<120x64xf32>
    %c0_26 = arith.constant 0 : index
    %c0_27 = arith.constant 0 : index
    %32 = vector.load %arg4[%c0_26, %c0_27] : memref<1x64xf32, #tpu.memory_space<vmem>>, vector<1x64xf32>
    %33 = vector.broadcast %32 : vector<1x64xf32> to vector<120x64xf32>
    %34 = arith.addf %31, %33 : vector<120x64xf32>
    %cst_28 = arith.constant 0.000000e+00 : f32
    %35 = vector.broadcast %cst_28 : f32 to vector<120x64xf32>
    %36 = arith.maximumf %34, %35 : vector<120x64xf32>
    %37 = arith.maximumf %24, %36 : vector<120x64xf32>
    %c3 = arith.constant 3 : index
    %c0_29 = arith.constant 0 : index
    %c0_30 = arith.constant 0 : index
    %38 = vector.load %arg1[%c3, %c0_29, %c0_30] : memref<16x120x10xbf16, #tpu.memory_space<vmem>>, vector<1x120x10xbf16>
    %39 = vector.shape_cast %38 : vector<1x120x10xbf16> to vector<120x10xbf16>
    %c0_31 = arith.constant 0 : index
    %c0_32 = arith.constant 0 : index
    %40 = vector.load %arg2[%c0_31, %c0_32] : memref<10x64xbf16, #tpu.memory_space<vmem>>, vector<10x64xbf16>
    %cst_33 = arith.constant dense<0.000000e+00> : vector<120x64xf32>
    %41 = tpu.matmul %39, %40, %cst_33 {dimension_numbers = #tpu.dot_dimension_numbers<[1], [0], [0], [1], [0, 0, 1, 1], [], []>} : vector<120x10xbf16>, vector<10x64xbf16>, vector<120x64xf32> -> vector<120x64xf32>
    %c0_34 = arith.constant 0 : index
    %c0_35 = arith.constant 0 : index
    %42 = vector.load %arg3[%c0_34, %c0_35] : memref<1x64xf32, #tpu.memory_space<vmem>>, vector<1x64xf32>
    %43 = vector.broadcast %42 : vector<1x64xf32> to vector<120x64xf32>
    %44 = arith.mulf %41, %43 : vector<120x64xf32>
    %c0_36 = arith.constant 0 : index
    %c0_37 = arith.constant 0 : index
    %45 = vector.load %arg4[%c0_36, %c0_37] : memref<1x64xf32, #tpu.memory_space<vmem>>, vector<1x64xf32>
    %46 = vector.broadcast %45 : vector<1x64xf32> to vector<120x64xf32>
    %47 = arith.addf %44, %46 : vector<120x64xf32>
    %cst_38 = arith.constant 0.000000e+00 : f32
    %48 = vector.broadcast %cst_38 : f32 to vector<120x64xf32>
    %49 = arith.maximumf %47, %48 : vector<120x64xf32>
    %50 = arith.maximumf %37, %49 : vector<120x64xf32>
    %c4 = arith.constant 4 : index
    %c0_39 = arith.constant 0 : index
    %c0_40 = arith.constant 0 : index
    %51 = vector.load %arg1[%c4, %c0_39, %c0_40] : memref<16x120x10xbf16, #tpu.memory_space<vmem>>, vector<1x120x10xbf16>
    %52 = vector.shape_cast %51 : vector<1x120x10xbf16> to vector<120x10xbf16>
    %c0_41 = arith.constant 0 : index
    %c0_42 = arith.constant 0 : index
    %53 = vector.load %arg2[%c0_41, %c0_42] : memref<10x64xbf16, #tpu.memory_space<vmem>>, vector<10x64xbf16>
    %cst_43 = arith.constant dense<0.000000e+00> : vector<120x64xf32>
    %54 = tpu.matmul %52, %53, %cst_43 {dimension_numbers = #tpu.dot_dimension_numbers<[1], [0], [0], [1], [0, 0, 1, 1], [], []>} : vector<120x10xbf16>, vector<10x64xbf16>, vector<120x64xf32> -> vector<120x64xf32>
    %c0_44 = arith.constant 0 : index
    %c0_45 = arith.constant 0 : index
    %55 = vector.load %arg3[%c0_44, %c0_45] : memref<1x64xf32, #tpu.memory_space<vmem>>, vector<1x64xf32>
    %56 = vector.broadcast %55 : vector<1x64xf32> to vector<120x64xf32>
    %57 = arith.mulf %54, %56 : vector<120x64xf32>
    %c0_46 = arith.constant 0 : index
    %c0_47 = arith.constant 0 : index
    %58 = vector.load %arg4[%c0_46, %c0_47] : memref<1x64xf32, #tpu.memory_space<vmem>>, vector<1x64xf32>
    %59 = vector.broadcast %58 : vector<1x64xf32> to vector<120x64xf32>
    %60 = arith.addf %57, %59 : vector<120x64xf32>
    %cst_48 = arith.constant 0.000000e+00 : f32
    %61 = vector.broadcast %cst_48 : f32 to vector<120x64xf32>
    %62 = arith.maximumf %60, %61 : vector<120x64xf32>
    %63 = arith.maximumf %50, %62 : vector<120x64xf32>
    %c5 = arith.constant 5 : index
    %c0_49 = arith.constant 0 : index
    %c0_50 = arith.constant 0 : index
    %64 = vector.load %arg1[%c5, %c0_49, %c0_50] : memref<16x120x10xbf16, #tpu.memory_space<vmem>>, vector<1x120x10xbf16>
    %65 = vector.shape_cast %64 : vector<1x120x10xbf16> to vector<120x10xbf16>
    %c0_51 = arith.constant 0 : index
    %c0_52 = arith.constant 0 : index
    %66 = vector.load %arg2[%c0_51, %c0_52] : memref<10x64xbf16, #tpu.memory_space<vmem>>, vector<10x64xbf16>
    %cst_53 = arith.constant dense<0.000000e+00> : vector<120x64xf32>
    %67 = tpu.matmul %65, %66, %cst_53 {dimension_numbers = #tpu.dot_dimension_numbers<[1], [0], [0], [1], [0, 0, 1, 1], [], []>} : vector<120x10xbf16>, vector<10x64xbf16>, vector<120x64xf32> -> vector<120x64xf32>
    %c0_54 = arith.constant 0 : index
    %c0_55 = arith.constant 0 : index
    %68 = vector.load %arg3[%c0_54, %c0_55] : memref<1x64xf32, #tpu.memory_space<vmem>>, vector<1x64xf32>
    %69 = vector.broadcast %68 : vector<1x64xf32> to vector<120x64xf32>
    %70 = arith.mulf %67, %69 : vector<120x64xf32>
    %c0_56 = arith.constant 0 : index
    %c0_57 = arith.constant 0 : index
    %71 = vector.load %arg4[%c0_56, %c0_57] : memref<1x64xf32, #tpu.memory_space<vmem>>, vector<1x64xf32>
    %72 = vector.broadcast %71 : vector<1x64xf32> to vector<120x64xf32>
    %73 = arith.addf %70, %72 : vector<120x64xf32>
    %cst_58 = arith.constant 0.000000e+00 : f32
    %74 = vector.broadcast %cst_58 : f32 to vector<120x64xf32>
    %75 = arith.maximumf %73, %74 : vector<120x64xf32>
    %76 = arith.maximumf %63, %75 : vector<120x64xf32>
    %c6 = arith.constant 6 : index
    %c0_59 = arith.constant 0 : index
    %c0_60 = arith.constant 0 : index
    %77 = vector.load %arg1[%c6, %c0_59, %c0_60] : memref<16x120x10xbf16, #tpu.memory_space<vmem>>, vector<1x120x10xbf16>
    %78 = vector.shape_cast %77 : vector<1x120x10xbf16> to vector<120x10xbf16>
    %c0_61 = arith.constant 0 : index
    %c0_62 = arith.constant 0 : index
    %79 = vector.load %arg2[%c0_61, %c0_62] : memref<10x64xbf16, #tpu.memory_space<vmem>>, vector<10x64xbf16>
    %cst_63 = arith.constant dense<0.000000e+00> : vector<120x64xf32>
    %80 = tpu.matmul %78, %79, %cst_63 {dimension_numbers = #tpu.dot_dimension_numbers<[1], [0], [0], [1], [0, 0, 1, 1], [], []>} : vector<120x10xbf16>, vector<10x64xbf16>, vector<120x64xf32> -> vector<120x64xf32>
    %c0_64 = arith.constant 0 : index
    %c0_65 = arith.constant 0 : index
    %81 = vector.load %arg3[%c0_64, %c0_65] : memref<1x64xf32, #tpu.memory_space<vmem>>, vector<1x64xf32>
    %82 = vector.broadcast %81 : vector<1x64xf32> to vector<120x64xf32>
    %83 = arith.mulf %80, %82 : vector<120x64xf32>
    %c0_66 = arith.constant 0 : index
    %c0_67 = arith.constant 0 : index
    %84 = vector.load %arg4[%c0_66, %c0_67] : memref<1x64xf32, #tpu.memory_space<vmem>>, vector<1x64xf32>
    %85 = vector.broadcast %84 : vector<1x64xf32> to vector<120x64xf32>
    %86 = arith.addf %83, %85 : vector<120x64xf32>
    %cst_68 = arith.constant 0.000000e+00 : f32
    %87 = vector.broadcast %cst_68 : f32 to vector<120x64xf32>
    %88 = arith.maximumf %86, %87 : vector<120x64xf32>
    %89 = arith.maximumf %76, %88 : vector<120x64xf32>
    %c7 = arith.constant 7 : index
    %c0_69 = arith.constant 0 : index
    %c0_70 = arith.constant 0 : index
    %90 = vector.load %arg1[%c7, %c0_69, %c0_70] : memref<16x120x10xbf16, #tpu.memory_space<vmem>>, vector<1x120x10xbf16>
    %91 = vector.shape_cast %90 : vector<1x120x10xbf16> to vector<120x10xbf16>
    %c0_71 = arith.constant 0 : index
    %c0_72 = arith.constant 0 : index
    %92 = vector.load %arg2[%c0_71, %c0_72] : memref<10x64xbf16, #tpu.memory_space<vmem>>, vector<10x64xbf16>
    %cst_73 = arith.constant dense<0.000000e+00> : vector<120x64xf32>
    %93 = tpu.matmul %91, %92, %cst_73 {dimension_numbers = #tpu.dot_dimension_numbers<[1], [0], [0], [1], [0, 0, 1, 1], [], []>} : vector<120x10xbf16>, vector<10x64xbf16>, vector<120x64xf32> -> vector<120x64xf32>
    %c0_74 = arith.constant 0 : index
    %c0_75 = arith.constant 0 : index
    %94 = vector.load %arg3[%c0_74, %c0_75] : memref<1x64xf32, #tpu.memory_space<vmem>>, vector<1x64xf32>
    %95 = vector.broadcast %94 : vector<1x64xf32> to vector<120x64xf32>
    %96 = arith.mulf %93, %95 : vector<120x64xf32>
    %c0_76 = arith.constant 0 : index
    %c0_77 = arith.constant 0 : index
    %97 = vector.load %arg4[%c0_76, %c0_77] : memref<1x64xf32, #tpu.memory_space<vmem>>, vector<1x64xf32>
    %98 = vector.broadcast %97 : vector<1x64xf32> to vector<120x64xf32>
    %99 = arith.addf %96, %98 : vector<120x64xf32>
    %cst_78 = arith.constant 0.000000e+00 : f32
    %100 = vector.broadcast %cst_78 : f32 to vector<120x64xf32>
    %101 = arith.maximumf %99, %100 : vector<120x64xf32>
    %102 = arith.maximumf %89, %101 : vector<120x64xf32>
    %c8 = arith.constant 8 : index
    %c0_79 = arith.constant 0 : index
    %c0_80 = arith.constant 0 : index
    %103 = vector.load %arg1[%c8, %c0_79, %c0_80] : memref<16x120x10xbf16, #tpu.memory_space<vmem>>, vector<1x120x10xbf16>
    %104 = vector.shape_cast %103 : vector<1x120x10xbf16> to vector<120x10xbf16>
    %c0_81 = arith.constant 0 : index
    %c0_82 = arith.constant 0 : index
    %105 = vector.load %arg2[%c0_81, %c0_82] : memref<10x64xbf16, #tpu.memory_space<vmem>>, vector<10x64xbf16>
    %cst_83 = arith.constant dense<0.000000e+00> : vector<120x64xf32>
    %106 = tpu.matmul %104, %105, %cst_83 {dimension_numbers = #tpu.dot_dimension_numbers<[1], [0], [0], [1], [0, 0, 1, 1], [], []>} : vector<120x10xbf16>, vector<10x64xbf16>, vector<120x64xf32> -> vector<120x64xf32>
    %c0_84 = arith.constant 0 : index
    %c0_85 = arith.constant 0 : index
    %107 = vector.load %arg3[%c0_84, %c0_85] : memref<1x64xf32, #tpu.memory_space<vmem>>, vector<1x64xf32>
    %108 = vector.broadcast %107 : vector<1x64xf32> to vector<120x64xf32>
    %109 = arith.mulf %106, %108 : vector<120x64xf32>
    %c0_86 = arith.constant 0 : index
    %c0_87 = arith.constant 0 : index
    %110 = vector.load %arg4[%c0_86, %c0_87] : memref<1x64xf32, #tpu.memory_space<vmem>>, vector<1x64xf32>
    %111 = vector.broadcast %110 : vector<1x64xf32> to vector<120x64xf32>
    %112 = arith.addf %109, %111 : vector<120x64xf32>
    %cst_88 = arith.constant 0.000000e+00 : f32
    %113 = vector.broadcast %cst_88 : f32 to vector<120x64xf32>
    %114 = arith.maximumf %112, %113 : vector<120x64xf32>
    %115 = arith.maximumf %102, %114 : vector<120x64xf32>
    %c9 = arith.constant 9 : index
    %c0_89 = arith.constant 0 : index
    %c0_90 = arith.constant 0 : index
    %116 = vector.load %arg1[%c9, %c0_89, %c0_90] : memref<16x120x10xbf16, #tpu.memory_space<vmem>>, vector<1x120x10xbf16>
    %117 = vector.shape_cast %116 : vector<1x120x10xbf16> to vector<120x10xbf16>
    %c0_91 = arith.constant 0 : index
    %c0_92 = arith.constant 0 : index
    %118 = vector.load %arg2[%c0_91, %c0_92] : memref<10x64xbf16, #tpu.memory_space<vmem>>, vector<10x64xbf16>
    %cst_93 = arith.constant dense<0.000000e+00> : vector<120x64xf32>
    %119 = tpu.matmul %117, %118, %cst_93 {dimension_numbers = #tpu.dot_dimension_numbers<[1], [0], [0], [1], [0, 0, 1, 1], [], []>} : vector<120x10xbf16>, vector<10x64xbf16>, vector<120x64xf32> -> vector<120x64xf32>
    %c0_94 = arith.constant 0 : index
    %c0_95 = arith.constant 0 : index
    %120 = vector.load %arg3[%c0_94, %c0_95] : memref<1x64xf32, #tpu.memory_space<vmem>>, vector<1x64xf32>
    %121 = vector.broadcast %120 : vector<1x64xf32> to vector<120x64xf32>
    %122 = arith.mulf %119, %121 : vector<120x64xf32>
    %c0_96 = arith.constant 0 : index
    %c0_97 = arith.constant 0 : index
    %123 = vector.load %arg4[%c0_96, %c0_97] : memref<1x64xf32, #tpu.memory_space<vmem>>, vector<1x64xf32>
    %124 = vector.broadcast %123 : vector<1x64xf32> to vector<120x64xf32>
    %125 = arith.addf %122, %124 : vector<120x64xf32>
    %cst_98 = arith.constant 0.000000e+00 : f32
    %126 = vector.broadcast %cst_98 : f32 to vector<120x64xf32>
    %127 = arith.maximumf %125, %126 : vector<120x64xf32>
    %128 = arith.maximumf %115, %127 : vector<120x64xf32>
    %c10 = arith.constant 10 : index
    %c0_99 = arith.constant 0 : index
    %c0_100 = arith.constant 0 : index
    %129 = vector.load %arg1[%c10, %c0_99, %c0_100] : memref<16x120x10xbf16, #tpu.memory_space<vmem>>, vector<1x120x10xbf16>
    %130 = vector.shape_cast %129 : vector<1x120x10xbf16> to vector<120x10xbf16>
    %c0_101 = arith.constant 0 : index
    %c0_102 = arith.constant 0 : index
    %131 = vector.load %arg2[%c0_101, %c0_102] : memref<10x64xbf16, #tpu.memory_space<vmem>>, vector<10x64xbf16>
    %cst_103 = arith.constant dense<0.000000e+00> : vector<120x64xf32>
    %132 = tpu.matmul %130, %131, %cst_103 {dimension_numbers = #tpu.dot_dimension_numbers<[1], [0], [0], [1], [0, 0, 1, 1], [], []>} : vector<120x10xbf16>, vector<10x64xbf16>, vector<120x64xf32> -> vector<120x64xf32>
    %c0_104 = arith.constant 0 : index
    %c0_105 = arith.constant 0 : index
    %133 = vector.load %arg3[%c0_104, %c0_105] : memref<1x64xf32, #tpu.memory_space<vmem>>, vector<1x64xf32>
    %134 = vector.broadcast %133 : vector<1x64xf32> to vector<120x64xf32>
    %135 = arith.mulf %132, %134 : vector<120x64xf32>
    %c0_106 = arith.constant 0 : index
    %c0_107 = arith.constant 0 : index
    %136 = vector.load %arg4[%c0_106, %c0_107] : memref<1x64xf32, #tpu.memory_space<vmem>>, vector<1x64xf32>
    %137 = vector.broadcast %136 : vector<1x64xf32> to vector<120x64xf32>
    %138 = arith.addf %135, %137 : vector<120x64xf32>
    %cst_108 = arith.constant 0.000000e+00 : f32
    %139 = vector.broadcast %cst_108 : f32 to vector<120x64xf32>
    %140 = arith.maximumf %138, %139 : vector<120x64xf32>
    %141 = arith.maximumf %128, %140 : vector<120x64xf32>
    %c11 = arith.constant 11 : index
    %c0_109 = arith.constant 0 : index
    %c0_110 = arith.constant 0 : index
    %142 = vector.load %arg1[%c11, %c0_109, %c0_110] : memref<16x120x10xbf16, #tpu.memory_space<vmem>>, vector<1x120x10xbf16>
    %143 = vector.shape_cast %142 : vector<1x120x10xbf16> to vector<120x10xbf16>
    %c0_111 = arith.constant 0 : index
    %c0_112 = arith.constant 0 : index
    %144 = vector.load %arg2[%c0_111, %c0_112] : memref<10x64xbf16, #tpu.memory_space<vmem>>, vector<10x64xbf16>
    %cst_113 = arith.constant dense<0.000000e+00> : vector<120x64xf32>
    %145 = tpu.matmul %143, %144, %cst_113 {dimension_numbers = #tpu.dot_dimension_numbers<[1], [0], [0], [1], [0, 0, 1, 1], [], []>} : vector<120x10xbf16>, vector<10x64xbf16>, vector<120x64xf32> -> vector<120x64xf32>
    %c0_114 = arith.constant 0 : index
    %c0_115 = arith.constant 0 : index
    %146 = vector.load %arg3[%c0_114, %c0_115] : memref<1x64xf32, #tpu.memory_space<vmem>>, vector<1x64xf32>
    %147 = vector.broadcast %146 : vector<1x64xf32> to vector<120x64xf32>
    %148 = arith.mulf %145, %147 : vector<120x64xf32>
    %c0_116 = arith.constant 0 : index
    %c0_117 = arith.constant 0 : index
    %149 = vector.load %arg4[%c0_116, %c0_117] : memref<1x64xf32, #tpu.memory_space<vmem>>, vector<1x64xf32>
    %150 = vector.broadcast %149 : vector<1x64xf32> to vector<120x64xf32>
    %151 = arith.addf %148, %150 : vector<120x64xf32>
    %cst_118 = arith.constant 0.000000e+00 : f32
    %152 = vector.broadcast %cst_118 : f32 to vector<120x64xf32>
    %153 = arith.maximumf %151, %152 : vector<120x64xf32>
    %154 = arith.maximumf %141, %153 : vector<120x64xf32>
    %c12 = arith.constant 12 : index
    %c0_119 = arith.constant 0 : index
    %c0_120 = arith.constant 0 : index
    %155 = vector.load %arg1[%c12, %c0_119, %c0_120] : memref<16x120x10xbf16, #tpu.memory_space<vmem>>, vector<1x120x10xbf16>
    %156 = vector.shape_cast %155 : vector<1x120x10xbf16> to vector<120x10xbf16>
    %c0_121 = arith.constant 0 : index
    %c0_122 = arith.constant 0 : index
    %157 = vector.load %arg2[%c0_121, %c0_122] : memref<10x64xbf16, #tpu.memory_space<vmem>>, vector<10x64xbf16>
    %cst_123 = arith.constant dense<0.000000e+00> : vector<120x64xf32>
    %158 = tpu.matmul %156, %157, %cst_123 {dimension_numbers = #tpu.dot_dimension_numbers<[1], [0], [0], [1], [0, 0, 1, 1], [], []>} : vector<120x10xbf16>, vector<10x64xbf16>, vector<120x64xf32> -> vector<120x64xf32>
    %c0_124 = arith.constant 0 : index
    %c0_125 = arith.constant 0 : index
    %159 = vector.load %arg3[%c0_124, %c0_125] : memref<1x64xf32, #tpu.memory_space<vmem>>, vector<1x64xf32>
    %160 = vector.broadcast %159 : vector<1x64xf32> to vector<120x64xf32>
    %161 = arith.mulf %158, %160 : vector<120x64xf32>
    %c0_126 = arith.constant 0 : index
    %c0_127 = arith.constant 0 : index
    %162 = vector.load %arg4[%c0_126, %c0_127] : memref<1x64xf32, #tpu.memory_space<vmem>>, vector<1x64xf32>
    %163 = vector.broadcast %162 : vector<1x64xf32> to vector<120x64xf32>
    %164 = arith.addf %161, %163 : vector<120x64xf32>
    %cst_128 = arith.constant 0.000000e+00 : f32
    %165 = vector.broadcast %cst_128 : f32 to vector<120x64xf32>
    %166 = arith.maximumf %164, %165 : vector<120x64xf32>
    %167 = arith.maximumf %154, %166 : vector<120x64xf32>
    %c13 = arith.constant 13 : index
    %c0_129 = arith.constant 0 : index
    %c0_130 = arith.constant 0 : index
    %168 = vector.load %arg1[%c13, %c0_129, %c0_130] : memref<16x120x10xbf16, #tpu.memory_space<vmem>>, vector<1x120x10xbf16>
    %169 = vector.shape_cast %168 : vector<1x120x10xbf16> to vector<120x10xbf16>
    %c0_131 = arith.constant 0 : index
    %c0_132 = arith.constant 0 : index
    %170 = vector.load %arg2[%c0_131, %c0_132] : memref<10x64xbf16, #tpu.memory_space<vmem>>, vector<10x64xbf16>
    %cst_133 = arith.constant dense<0.000000e+00> : vector<120x64xf32>
    %171 = tpu.matmul %169, %170, %cst_133 {dimension_numbers = #tpu.dot_dimension_numbers<[1], [0], [0], [1], [0, 0, 1, 1], [], []>} : vector<120x10xbf16>, vector<10x64xbf16>, vector<120x64xf32> -> vector<120x64xf32>
    %c0_134 = arith.constant 0 : index
    %c0_135 = arith.constant 0 : index
    %172 = vector.load %arg3[%c0_134, %c0_135] : memref<1x64xf32, #tpu.memory_space<vmem>>, vector<1x64xf32>
    %173 = vector.broadcast %172 : vector<1x64xf32> to vector<120x64xf32>
    %174 = arith.mulf %171, %173 : vector<120x64xf32>
    %c0_136 = arith.constant 0 : index
    %c0_137 = arith.constant 0 : index
    %175 = vector.load %arg4[%c0_136, %c0_137] : memref<1x64xf32, #tpu.memory_space<vmem>>, vector<1x64xf32>
    %176 = vector.broadcast %175 : vector<1x64xf32> to vector<120x64xf32>
    %177 = arith.addf %174, %176 : vector<120x64xf32>
    %cst_138 = arith.constant 0.000000e+00 : f32
    %178 = vector.broadcast %cst_138 : f32 to vector<120x64xf32>
    %179 = arith.maximumf %177, %178 : vector<120x64xf32>
    %180 = arith.maximumf %167, %179 : vector<120x64xf32>
    %c14 = arith.constant 14 : index
    %c0_139 = arith.constant 0 : index
    %c0_140 = arith.constant 0 : index
    %181 = vector.load %arg1[%c14, %c0_139, %c0_140] : memref<16x120x10xbf16, #tpu.memory_space<vmem>>, vector<1x120x10xbf16>
    %182 = vector.shape_cast %181 : vector<1x120x10xbf16> to vector<120x10xbf16>
    %c0_141 = arith.constant 0 : index
    %c0_142 = arith.constant 0 : index
    %183 = vector.load %arg2[%c0_141, %c0_142] : memref<10x64xbf16, #tpu.memory_space<vmem>>, vector<10x64xbf16>
    %cst_143 = arith.constant dense<0.000000e+00> : vector<120x64xf32>
    %184 = tpu.matmul %182, %183, %cst_143 {dimension_numbers = #tpu.dot_dimension_numbers<[1], [0], [0], [1], [0, 0, 1, 1], [], []>} : vector<120x10xbf16>, vector<10x64xbf16>, vector<120x64xf32> -> vector<120x64xf32>
    %c0_144 = arith.constant 0 : index
    %c0_145 = arith.constant 0 : index
    %185 = vector.load %arg3[%c0_144, %c0_145] : memref<1x64xf32, #tpu.memory_space<vmem>>, vector<1x64xf32>
    %186 = vector.broadcast %185 : vector<1x64xf32> to vector<120x64xf32>
    %187 = arith.mulf %184, %186 : vector<120x64xf32>
    %c0_146 = arith.constant 0 : index
    %c0_147 = arith.constant 0 : index
    %188 = vector.load %arg4[%c0_146, %c0_147] : memref<1x64xf32, #tpu.memory_space<vmem>>, vector<1x64xf32>
    %189 = vector.broadcast %188 : vector<1x64xf32> to vector<120x64xf32>
    %190 = arith.addf %187, %189 : vector<120x64xf32>
    %cst_148 = arith.constant 0.000000e+00 : f32
    %191 = vector.broadcast %cst_148 : f32 to vector<120x64xf32>
    %192 = arith.maximumf %190, %191 : vector<120x64xf32>
    %193 = arith.maximumf %180, %192 : vector<120x64xf32>
    %c15 = arith.constant 15 : index
    %c0_149 = arith.constant 0 : index
    %c0_150 = arith.constant 0 : index
    %194 = vector.load %arg1[%c15, %c0_149, %c0_150] : memref<16x120x10xbf16, #tpu.memory_space<vmem>>, vector<1x120x10xbf16>
    %195 = vector.shape_cast %194 : vector<1x120x10xbf16> to vector<120x10xbf16>
    %c0_151 = arith.constant 0 : index
    %c0_152 = arith.constant 0 : index
    %196 = vector.load %arg2[%c0_151, %c0_152] : memref<10x64xbf16, #tpu.memory_space<vmem>>, vector<10x64xbf16>
    %cst_153 = arith.constant dense<0.000000e+00> : vector<120x64xf32>
    %197 = tpu.matmul %195, %196, %cst_153 {dimension_numbers = #tpu.dot_dimension_numbers<[1], [0], [0], [1], [0, 0, 1, 1], [], []>} : vector<120x10xbf16>, vector<10x64xbf16>, vector<120x64xf32> -> vector<120x64xf32>
    %c0_154 = arith.constant 0 : index
    %c0_155 = arith.constant 0 : index
    %198 = vector.load %arg3[%c0_154, %c0_155] : memref<1x64xf32, #tpu.memory_space<vmem>>, vector<1x64xf32>
    %199 = vector.broadcast %198 : vector<1x64xf32> to vector<120x64xf32>
    %200 = arith.mulf %197, %199 : vector<120x64xf32>
    %c0_156 = arith.constant 0 : index
    %c0_157 = arith.constant 0 : index
    %201 = vector.load %arg4[%c0_156, %c0_157] : memref<1x64xf32, #tpu.memory_space<vmem>>, vector<1x64xf32>
    %202 = vector.broadcast %201 : vector<1x64xf32> to vector<120x64xf32>
    %203 = arith.addf %200, %202 : vector<120x64xf32>
    %cst_158 = arith.constant 0.000000e+00 : f32
    %204 = vector.broadcast %cst_158 : f32 to vector<120x64xf32>
    %205 = arith.maximumf %203, %204 : vector<120x64xf32>
    %206 = arith.maximumf %193, %205 : vector<120x64xf32>
    %207 = arith.truncf %206 : vector<120x64xf32> to vector<120x64xbf16>
    %c0_159 = arith.constant 0 : index
    %c0_160 = arith.constant 0 : index
    %208 = vector.load %arg5[%c0_159, %c0_160] : memref<120x64xbf16, #tpu.memory_space<vmem>>, vector<120x64xbf16>
    tpu.vector_store %arg5[%c0_159, %c0_160], %207 {strides = array<i32>} : memref<120x64xbf16, #tpu.memory_space<vmem>>, vector<120x64xbf16>,
    return
  }
  func.func @transform_0(%arg0: i32) -> (i32, i32, i32) {
    %c0_i32 = arith.constant 0 : i32
    %c0_i32_0 = arith.constant 0 : i32
    %c0_i32_1 = arith.constant 0 : i32
    return %c0_i32, %arg0, %c0_i32_0 : i32, i32, i32
  }
  func.func @transform_1(%arg0: i32) -> (i32, i32) {
    %c0_i32 = arith.constant 0 : i32
    %c0_i32_0 = arith.constant 0 : i32
    %c0_i32_1 = arith.constant 0 : i32
    return %c0_i32, %c0_i32_0 : i32, i32
  }
  func.func @transform_2(%arg0: i32) -> (i32, i32) {
    %c0_i32 = arith.constant 0 : i32
    %c0_i32_0 = arith.constant 0 : i32
    %c0_i32_1 = arith.constant 0 : i32
    return %c0_i32, %c0_i32_0 : i32, i32
  }
  func.func @transform_3(%arg0: i32) -> (i32, i32) {
    %c0_i32 = arith.constant 0 : i32
    %c0_i32_0 = arith.constant 0 : i32
    %c0_i32_1 = arith.constant 0 : i32
    return %c0_i32, %c0_i32_0 : i32, i32
  }
  func.func @transform_4(%arg0: i32) -> (i32, i32) {
    %c0_i32 = arith.constant 0 : i32
    %c0_i32_0 = arith.constant 0 : i32
    return %arg0, %c0_i32 : i32, i32
  }
}

</mosaic_0001>

<bundles_post_ra>
// kernel: tpu_custom_call.1
= control target key start
LH: loop header
LB: loop body
LE: loop exit
PB: predicated region body
PF: predicated region fallthrough
CT: control target
= control target key end

     0   :  { %vm103_vm0 = vcmask 1044480   ;;  %vm78_vm1 = vcmask 80896   ;;  %vm3833_vm2 = vcmask 519168   ;;  %s6427_s1 = inlined_call_operand.vmem [shape: bf16[10,64], index: 1, kind: input, shape index: {}]   ;;  %s6428_s0 = inlined_call_operand.vmem [shape: bf16[16,120,10], index: 0, kind: input, shape index: {}]   ;;  %s6429_s2 = inlined_call_operand.vmem [shape: f32[1,64], index: 2, kind: input, shape index: {}]   ;;  %s6430_s3 = inlined_call_operand.vmem [shape: f32[1,64], index: 3, kind: input, shape index: {}]   ;;  %s6431_s4 = inlined_call_operand.vmem [shape: bf16[120,64], index: 4, kind: output, shape index: {}]  }
   0x1   :  { %v4976_v0 = vld [vmem:[%s6427_s1] sm:$0x1f]   ;;  %v4818_v4 = vld [vmem:[%s6428_s0 + $0x8] sm:$0xff]   ;;  %v4820_v6 = vld [vmem:[%s6428_s0 + $0x10] sm:$0xff]  }
   0x2   :  { %v4816_v1 = vld [vmem:[%s6428_s0] sm:$0xff]   ;;  %4799 = vmatprep.subr.msk.bf16.mxu0 %vm103_vm0, %v4976_v0  ;;  %4800 = vmatprep.subr.msk.bf16.mxu1 %vm103_vm0, %v4976_v0  ;;  %v4987_v2 = vsel %vm103_vm0, %v4976_v0, 0  ;;  %v4821_v7 = vld [vmem:[%s6428_s0 + $0x4c] sm:$0xff]   ;;  %v4822_v8 = vld [vmem:[%s6428_s0 + $0x18] sm:$0xff]  }
   0x3   :  { %v4817_v3 = vld [vmem:[%s6428_s0 + $0x3c] sm:$0xff]   ;;  %4512 = vmatpush3.bf16.msra.mxu0 %v4987_v2  ;;  %4530 = vmatpush3.bf16.msra.mxu1 %v4987_v2  ;;  %v4819_v5 = vld [vmem:[%s6428_s0 + $0x44] sm:$0xff]   ;;  %v4823_v9 = vld [vmem:[%s6428_s0 + $0x54] sm:$0xff]  }
   0x4   :  { %4513 = vmatprep.mubr.msk.bf16.mxu0 %vm78_vm1, %v4816_v1  ;;  %4531 = vmatprep.mubr.msk.bf16.mxu1 %vm78_vm1, %v4817_v3  ;;  %v4824_v10 = vld [vmem:[%s6428_s0 + $0x20] sm:$0xff]   ;;  %v4826_v12 = vld [vmem:[%s6428_s0 + $0x28] sm:$0xff]   ;;  %v4828_v14 = vld [vmem:[%s6428_s0 + $0x30] sm:$0xff]  }
   0x5   :  { %4801 = vmatprep.subr.msk.bf16.mxu0 %vm103_vm0, %v4976_v0  ;;  %4802 = vmatprep.subr.msk.bf16.mxu1 %vm103_vm0, %v4976_v0  ;;  %v4825_v11 = vld [vmem:[%s6428_s0 + $0x5c] sm:$0xff]   ;;  %v4827_v13 = vld [vmem:[%s6428_s0 + $0x64] sm:$0xff]   ;;  %v4829_v15 = vld [vmem:[%s6428_s0 + $0x6c] sm:$0xff]  }
   0x6   :  { %4514 = vmatmul.mubr.msk.bf16.vlgmr.msra.gmra.mrb[0].mxu0 %vm78_vm1, %v4818_v4  ;;  %4532 = vmatmul.mubr.msk.bf16.vlgmr.msra.gmra.mrb[0].mxu1 %vm78_vm1, %v4819_v5  ;;  %v4830_v16 = vld [vmem:[%s6428_s0 + $0x38] ss:$0 sps:$4 sm:$0xff]   ;;  %v4831_v17 = vld [vmem:[%s6428_s0 + $0x74] ss:$0 sps:$4 sm:$0xff]   ;;  %v4834_v20 = vld [vmem:[%s6428_s0 + $0x80] sm:$0xff]  }
   0x7   :  { %4548 = vmatpush3.bf16.msra.mxu0 %v4987_v2  ;;  %4566 = vmatpush3.bf16.msra.mxu1 %v4987_v2  ;;  %v4832_v18 = vld [vmem:[%s6428_s0 + $0x78] sm:$0xff]   ;;  %v4836_v22 = vld [vmem:[%s6428_s0 + $0x88] sm:$0xff]   ;;  %v4838_v24 = vld [vmem:[%s6428_s0 + $0x90] sm:$0xff]  }
   0x8   :  { %4517 = vmatprep.mubr.msk.bf16.mxu0 %vm78_vm1, %v4820_v6  ;;  %4535 = vmatprep.mubr.msk.bf16.mxu1 %vm78_vm1, %v4821_v7  ;;  %v4833_v19 = vld [vmem:[%s6428_s0 + $0xb4] sm:$0xff]   ;;  %v4835_v21 = vld [vmem:[%s6428_s0 + $0xbc] sm:$0xff]   ;;  %v4837_v23 = vld [vmem:[%s6428_s0 + $0xc4] sm:$0xff]  }
   0x9   :  { %4803 = vmatprep.subr.msk.bf16.mxu0 %vm103_vm0, %v4976_v0  ;;  %4804 = vmatprep.subr.msk.bf16.mxu1 %vm103_vm0, %v4976_v0  ;;  %v4839_v25 = vld [vmem:[%s6428_s0 + $0xcc] sm:$0xff]   ;;  %v4840_v26 = vld [vmem:[%s6428_s0 + $0x98] sm:$0xff]   ;;  %v4842_v28 = vld [vmem:[%s6428_s0 + $0xa0] sm:$0xff]  }
   0xa   :  { %v4841_v27 = vld [vmem:[%s6428_s0 + $0xd4] sm:$0xff]   ;;  %v4843_v29 = vld [vmem:[%s6428_s0 + $0xdc] sm:$0xff]   ;;  %v4844_v30 = vld [vmem:[%s6428_s0 + $0xa8] sm:$0xff]  }
   0xb   :  { %v4845_v31 = vld [vmem:[%s6428_s0 + $0xe4] sm:$0xff]   ;;  %v4846_v32 = vld [vmem:[%s6428_s0 + $0xb0] ss:$0 sps:$4 sm:$0xff]   ;;  %v4847_v33 = vld [vmem:[%s6428_s0 + $0xec] ss:$0 sps:$4 sm:$0xff]  }
   0xc   :  { %v4848_v34 = vld [vmem:[%s6428_s0 + $0xf0] sm:$0xff]   ;;  %v4850_v36 = vld [vmem:[%s6428_s0 + $0xf8] sm:$0xff]   ;;  %v4852_v38 = vld [vmem:[%s6428_s0 + $0x100] sm:$0xff]  }
   0xd   :  { %v4849_v35 = vld [vmem:[%s6428_s0 + $0x12c] sm:$0xff]   ;;  %v4851_v37 = vld [vmem:[%s6428_s0 + $0x134] sm:$0xff]   ;;  %v4853_v39 = vld [vmem:[%s6428_s0 + $0x13c] sm:$0xff]  }
   0xe   :  { %4518 = vmatmul.mubr.msk.bf16.gmra.mrb[4].mxu0 %vm78_vm1, %v4822_v8  ;;  %4536 = vmatmul.mubr.msk.bf16.gmra.mrb[4].mxu1 %vm78_vm1, %v4823_v9  ;;  %v4854_v40 = vld [vmem:[%s6428_s0 + $0x108] sm:$0xff]   ;;  %v4856_v42 = vld [vmem:[%s6428_s0 + $0x110] sm:$0xff]   ;;  %v4858_v44 = vld [vmem:[%s6428_s0 + $0x118] sm:$0xff]  }
   0xf   :  { %4521 = vmatprep.mubr.msk.bf16.mxu0 %vm78_vm1, %v4824_v10  ;;  %4539 = vmatprep.mubr.msk.bf16.mxu1 %vm78_vm1, %v4825_v11  ;;  %v4855_v41 = vld [vmem:[%s6428_s0 + $0x144] sm:$0xff]   ;;  %v4857_v43 = vld [vmem:[%s6428_s0 + $0x14c] sm:$0xff]   ;;  %v4859_v45 = vld [vmem:[%s6428_s0 + $0x154] sm:$0xff]  }
  0x10   :  { %v4860_v46 = vld [vmem:[%s6428_s0 + $0x120] sm:$0xff]   ;;  %v4862_v48 = vld [vmem:[%s6428_s0 + $0x128] ss:$0 sps:$4 sm:$0xff]   ;;  %v4866_v52 = vld [vmem:[%s6428_s0 + $0x170] sm:$0xff]  }
  0x11   :  { %v4861_v47 = vld [vmem:[%s6428_s0 + $0x15c] sm:$0xff]   ;;  %v4863_v49 = vld [vmem:[%s6428_s0 + $0x164] ss:$0 sps:$4 sm:$0xff]   ;;  %v4864_v50 = vld [vmem:[%s6428_s0 + $0x168] sm:$0xff]  }
  0x12   :  { %v4865_v51 = vld [vmem:[%s6428_s0 + $0x1a4] sm:$0xff]   ;;  %v4867_v53 = vld [vmem:[%s6428_s0 + $0x1ac] sm:$0xff]   ;;  %v4868_v54 = vld [vmem:[%s6428_s0 + $0x178] sm:$0xff]  }
  0x13   :  { %v4869_v55 = vld [vmem:[%s6428_s0 + $0x1b4] sm:$0xff]   ;;  %v4870_v56 = vld [vmem:[%s6428_s0 + $0x180] sm:$0xff]   ;;  %v4872_v58 = vld [vmem:[%s6428_s0 + $0x188] sm:$0xff]  }
  0x14   :  { %v4871_v57 = vld [vmem:[%s6428_s0 + $0x1bc] sm:$0xff]   ;;  %v4873_v59 = vld [vmem:[%s6428_s0 + $0x1c4] sm:$0xff]   ;;  %v4874_v60 = vld [vmem:[%s6428_s0 + $0x190] sm:$0xff]  }
  0x15   :  { %v4875_v61 = vld [vmem:[%s6428_s0 + $0x1cc] sm:$0xff]   ;;  %v4876_v62 = vld [vmem:[%s6428_s0 + $0x198] sm:$0xff]   ;;  %v4878_v1 = vld [vmem:[%s6428_s0 + $0x1a0] ss:$0 sps:$4 sm:$0xff]  }
  0x16   :  { %4522 = vmatmul.mubr.msk.bf16.gmra.mrb[8].mxu0 %vm78_vm1, %v4826_v12  ;;  %4540 = vmatmul.mubr.msk.bf16.gmra.mrb[8].mxu1 %vm78_vm1, %v4827_v13  ;;  %v4877_v63 = vld [vmem:[%s6428_s0 + $0x1d4] sm:$0xff]   ;;  %v4879_v3 = vld [vmem:[%s6428_s0 + $0x1dc] ss:$0 sps:$4 sm:$0xff]   ;;  %v4880_v4 = vld [vmem:[%s6428_s0 + $0x1e0] sm:$0xff]  }
  0x17   :  { %4525 = vmatprep.mubr.msk.bf16.mxu0 %vm78_vm1, %v4828_v14  ;;  %4543 = vmatprep.mubr.msk.bf16.mxu1 %vm78_vm1, %v4829_v15  ;;  %v4881_v5 = vld [vmem:[%s6428_s0 + $0x21c] sm:$0xff]   ;;  %v4882_v6 = vld [vmem:[%s6428_s0 + $0x1e8] sm:$0xff]   ;;  %v4884_v8 = vld [vmem:[%s6428_s0 + $0x1f0] sm:$0xff]  }
  0x18   :  { %v4883_v7 = vld [vmem:[%s6428_s0 + $0x224] sm:$0xff]   ;;  %v4885_v9 = vld [vmem:[%s6428_s0 + $0x22c] sm:$0xff]   ;;  %v4886_v10 = vld [vmem:[%s6428_s0 + $0x1f8] sm:$0xff]  }
  0x19   :  { %v4887_v11 = vld [vmem:[%s6428_s0 + $0x234] sm:$0xff]   ;;  %v4888_v12 = vld [vmem:[%s6428_s0 + $0x200] sm:$0xff]   ;;  %v4890_v14 = vld [vmem:[%s6428_s0 + $0x208] sm:$0xff]  }
  0x1a   :  { %v4889_v13 = vld [vmem:[%s6428_s0 + $0x23c] sm:$0xff]   ;;  %v4891_v15 = vld [vmem:[%s6428_s0 + $0x244] sm:$0xff]  }
  0x1e   :  { %4526 = vmatmul.mubr.msk.bf16.gmra.mrb[12].mxu0 %vm78_vm1, %v4830_v16  ;;  %4544 = vmatmul.mubr.msk.bf16.gmra.mrb[12].mxu1 %vm78_vm1, %v4831_v17  ;;  %v4892_v16 = vld [vmem:[%s6428_s0 + $0x210] sm:$0xff]  }
  0x1f   :  { %4549 = vmatprep.mubr.msk.bf16.mxu0 %vm78_vm1, %v4832_v18  ;;  %4567 = vmatprep.mubr.msk.bf16.mxu1 %vm78_vm1, %v4833_v19  ;;  %v4893_v17 = vld [vmem:[%s6428_s0 + $0x24c] sm:$0xff]   ;;  %v4894_v18 = vld [vmem:[%s6428_s0 + $0x218] ss:$0 sps:$4 sm:$0xff]   ;;  %v4895_v19 = vld [vmem:[%s6428_s0 + $0x254] ss:$0 sps:$4 sm:$0xff]  }
  0x26   :  { %4550 = vmatmul.mubr.msk.bf16.vlgmr.msra.gmra.mrb[16].mxu0 %vm78_vm1, %v4834_v20  ;;  %4568 = vmatmul.mubr.msk.bf16.vlgmr.msra.gmra.mrb[16].mxu1 %vm78_vm1, %v4835_v21  ;;  %v4896_v20 = vld [vmem:[%s6428_s0 + $0x258] sm:$0xff]  }
  0x27   :  { %4584 = vmatpush3.bf16.msra.mxu0 %v4987_v2  ;;  %4602 = vmatpush3.bf16.msra.mxu1 %v4987_v2  ;;  %v4897_v21 = vld [vmem:[%s6428_s0 + $0x294] sm:$0xff]  }
  0x28   :  { %4553 = vmatprep.mubr.msk.bf16.mxu0 %vm78_vm1, %v4836_v22  ;;  %4571 = vmatprep.mubr.msk.bf16.mxu1 %vm78_vm1, %v4837_v23  ;;  %v4898_v22 = vld [vmem:[%s6428_s0 + $0x260] sm:$0xff]  }
  0x29   :  { %4805 = vmatprep.subr.msk.bf16.mxu0 %vm103_vm0, %v4976_v0  ;;  %4806 = vmatprep.subr.msk.bf16.mxu1 %vm103_vm0, %v4976_v0  ;;  %v4899_v23 = vld [vmem:[%s6428_s0 + $0x29c] sm:$0xff]  }
  0x2e   :  { %4554 = vmatmul.mubr.msk.bf16.gmra.mrb[20].mxu0 %vm78_vm1, %v4838_v24  ;;  %4572 = vmatmul.mubr.msk.bf16.gmra.mrb[20].mxu1 %vm78_vm1, %v4839_v25  ;;  %v4900_v24 = vld [vmem:[%s6428_s0 + $0x268] sm:$0xff]  }
  0x2f   :  { %4557 = vmatprep.mubr.msk.bf16.mxu0 %vm78_vm1, %v4840_v26  ;;  %4575 = vmatprep.mubr.msk.bf16.mxu1 %vm78_vm1, %v4841_v27  ;;  %v4901_v25 = vld [vmem:[%s6428_s0 + $0x2a4] sm:$0xff]   ;;  %v4902_v26 = vld [vmem:[%s6428_s0 + $0x270] sm:$0xff]  }
  0x30   :  { %v4903_v27 = vld [vmem:[%s6428_s0 + $0x2ac] sm:$0xff]  }
  0x36   :  { %4558 = vmatmul.mubr.msk.bf16.gmra.mrb[24].mxu0 %vm78_vm1, %v4842_v28  ;;  %4576 = vmatmul.mubr.msk.bf16.gmra.mrb[24].mxu1 %vm78_vm1, %v4843_v29  ;;  %v4904_v28 = vld [vmem:[%s6428_s0 + $0x278] sm:$0xff]  }
  0x37   :  { %4561 = vmatprep.mubr.msk.bf16.mxu0 %vm78_vm1, %v4844_v30  ;;  %4579 = vmatprep.mubr.msk.bf16.mxu1 %vm78_vm1, %v4845_v31  ;;  %v4905_v29 = vld [vmem:[%s6428_s0 + $0x2b4] sm:$0xff]   ;;  %v4907_v30 = vld [vmem:[%s6428_s0 + $0x2bc] sm:$0xff]   ;;  %v4908_v31 = vld [vmem:[%s6428_s0 + $0x288] sm:$0xff]  }
  0x3e   :  { %4562 = vmatmul.mubr.msk.bf16.gmra.mrb[28].mxu0 %vm78_vm1, %v4846_v32  ;;  %4580 = vmatmul.mubr.msk.bf16.gmra.mrb[28].mxu1 %vm78_vm1, %v4847_v33  ;;  %v4909_v32 = vld [vmem:[%s6428_s0 + $0x2c4] sm:$0xff]   ;;  %v4910_v33 = vld [vmem:[%s6428_s0 + $0x290] ss:$0 sps:$4 sm:$0xff]  }
  0x3f   :  { %4585 = vmatprep.mubr.msk.bf16.mxu0 %vm78_vm1, %v4848_v34  ;;  %4603 = vmatprep.mubr.msk.bf16.mxu1 %vm78_vm1, %v4849_v35  ;;  %v4911_v34 = vld [vmem:[%s6428_s0 + $0x2cc] ss:$0 sps:$4 sm:$0xff]   ;;  %v4912_v35 = vld [vmem:[%s6428_s0 + $0x2d0] sm:$0xff]  }
  0x46   :  { %4586 = vmatmul.mubr.msk.bf16.vlgmr.msra.gmra.mrb[32].mxu0 %vm78_vm1, %v4850_v36  ;;  %4604 = vmatmul.mubr.msk.bf16.vlgmr.msra.gmra.mrb[32].mxu1 %vm78_vm1, %v4851_v37  ;;  %v4913_v36 = vld [vmem:[%s6428_s0 + $0x30c] sm:$0xff]   ;;  %v4914_v37 = vld [vmem:[%s6428_s0 + $0x2d8] sm:$0xff]  }
  0x47   :  { %4620 = vmatpush3.bf16.msra.mxu0 %v4987_v2  ;;  %4638 = vmatpush3.bf16.msra.mxu1 %v4987_v2 }
  0x48   :  { %4589 = vmatprep.mubr.msk.bf16.mxu0 %vm78_vm1, %v4852_v38  ;;  %4607 = vmatprep.mubr.msk.bf16.mxu1 %vm78_vm1, %v4853_v39  ;;  %v4915_v38 = vld [vmem:[%s6428_s0 + $0x314] sm:$0xff]   ;;  %v4916_v39 = vld [vmem:[%s6428_s0 + $0x2e0] sm:$0xff]  }
  0x49   :  { %4807 = vmatprep.subr.msk.bf16.mxu0 %vm103_vm0, %v4976_v0  ;;  %4808 = vmatprep.subr.msk.bf16.mxu1 %vm103_vm0, %v4976_v0 }
  0x4e   :  { %4590 = vmatmul.mubr.msk.bf16.gmra.mrb[36].mxu0 %vm78_vm1, %v4854_v40  ;;  %4608 = vmatmul.mubr.msk.bf16.gmra.mrb[36].mxu1 %vm78_vm1, %v4855_v41  ;;  %v4917_v40 = vld [vmem:[%s6428_s0 + $0x31c] sm:$0xff]   ;;  %v4918_v41 = vld [vmem:[%s6428_s0 + $0x2e8] sm:$0xff]  }
  0x4f   :  { %4593 = vmatprep.mubr.msk.bf16.mxu0 %vm78_vm1, %v4856_v42  ;;  %4611 = vmatprep.mubr.msk.bf16.mxu1 %vm78_vm1, %v4857_v43  ;;  %v4919_v42 = vld [vmem:[%s6428_s0 + $0x324] sm:$0xff]   ;;  %v4920_v43 = vld [vmem:[%s6428_s0 + $0x2f0] sm:$0xff]  }
  0x56   :  { %4594 = vmatmul.mubr.msk.bf16.gmra.mrb[40].mxu0 %vm78_vm1, %v4858_v44  ;;  %4612 = vmatmul.mubr.msk.bf16.gmra.mrb[40].mxu1 %vm78_vm1, %v4859_v45  ;;  %v4922_v44 = vld [vmem:[%s6428_s0 + $0x2f8] sm:$0xff]  }
  0x57   :  { %4597 = vmatprep.mubr.msk.bf16.mxu0 %vm78_vm1, %v4860_v46  ;;  %4615 = vmatprep.mubr.msk.bf16.mxu1 %vm78_vm1, %v4861_v47  ;;  %v4923_v45 = vld [vmem:[%s6428_s0 + $0x334] sm:$0xff]   ;;  %v4924_v46 = vld [vmem:[%s6428_s0 + $0x300] sm:$0xff]  }
  0x58   :  { %v4925_v47 = vld [vmem:[%s6428_s0 + $0x33c] sm:$0xff]  }
  0x5e   :  { %4598 = vmatmul.mubr.msk.bf16.gmra.mrb[44].mxu0 %vm78_vm1, %v4862_v48  ;;  %4616 = vmatmul.mubr.msk.bf16.gmra.mrb[44].mxu1 %vm78_vm1, %v4863_v49  ;;  %v5471_v48 = vld [vmem:[%s6429_s2] ss:$0 sm:$0xff] }
  0x5f   :  { %4621 = vmatprep.mubr.msk.bf16.mxu0 %vm78_vm1, %v4864_v50  ;;  %4639 = vmatprep.mubr.msk.bf16.mxu1 %vm78_vm1, %v4865_v51  ;;  %v5478_v50 = vld [vmem:[%s6430_s3] ss:$0 sm:$0xff] }
  0x66   :  { %4622 = vmatmul.mubr.msk.bf16.vlgmr.msra.gmra.mrb[48].mxu0 %vm78_vm1, %v4866_v52  ;;  %4640 = vmatmul.mubr.msk.bf16.vlgmr.msra.gmra.mrb[48].mxu1 %vm78_vm1, %v4867_v53 }
  0x67   :  { %4656 = vmatpush3.bf16.msra.mxu0 %v4987_v2  ;;  %4674 = vmatpush3.bf16.msra.mxu1 %v4987_v2 }
  0x68   :  { %4625 = vmatprep.mubr.msk.bf16.mxu0 %vm78_vm1, %v4868_v54  ;;  %4643 = vmatprep.mubr.msk.bf16.mxu1 %vm78_vm1, %v4869_v55 }
  0x69   :  { %4809 = vmatprep.subr.msk.bf16.mxu0 %vm103_vm0, %v4976_v0  ;;  %4810 = vmatprep.subr.msk.bf16.mxu1 %vm103_vm0, %v4976_v0 }
  0x6e   :  { %4626 = vmatmul.mubr.msk.bf16.gmra.mrb[52].mxu0 %vm78_vm1, %v4870_v56  ;;  %4644 = vmatmul.mubr.msk.bf16.gmra.mrb[52].mxu1 %vm78_vm1, %v4871_v57  ;;  %v4926_v56 = vld [vmem:[%s6428_s0 + $0x308] ss:$0 sps:$4 sm:$0xff]   ;;  %v4927_v57 = vld [vmem:[%s6428_s0 + $0x344] ss:$0 sps:$4 sm:$0xff]  }
  0x6f   :  { %4629 = vmatprep.mubr.msk.bf16.mxu0 %vm78_vm1, %v4872_v58  ;;  %4647 = vmatprep.mubr.msk.bf16.mxu1 %vm78_vm1, %v4873_v59 }
  0x76   :  { %4630 = vmatmul.mubr.msk.bf16.gmra.mrb[56].mxu0 %vm78_vm1, %v4874_v60  ;;  %4648 = vmatmul.mubr.msk.bf16.gmra.mrb[56].mxu1 %vm78_vm1, %v4875_v61 }
  0x77   :  { %4633 = vmatprep.mubr.msk.bf16.mxu0 %vm78_vm1, %v4876_v62  ;;  %4651 = vmatprep.mubr.msk.bf16.mxu1 %vm78_vm1, %v4877_v63  ;;  %v4928_v62 = vld [vmem:[%s6428_s0 + $0x348] sm:$0xff]  }
  0x78   :  { %v4929_v63 = vld [vmem:[%s6428_s0 + $0x384] sm:$0xff]  }
  0x7e   :  { %4634 = vmatmul.mubr.msk.bf16.gmra.mrb[60].mxu0 %vm78_vm1, %v4878_v1  ;;  %4652 = vmatmul.mubr.msk.bf16.gmra.mrb[60].mxu1 %vm78_vm1, %v4879_v3 }
  0x7f   :  { %4657 = vmatprep.mubr.msk.bf16.mxu0 %vm78_vm1, %v4880_v4  ;;  %4675 = vmatprep.mubr.msk.bf16.mxu1 %vm78_vm1, %v4881_v5 }
  0x86   :  { %4658 = vmatmul.mubr.msk.bf16.vlgmr.msra.gmra.mrb[64].mxu0 %vm78_vm1, %v4882_v6  ;;  %4676 = vmatmul.mubr.msk.bf16.vlgmr.msra.gmra.mrb[64].mxu1 %vm78_vm1, %v4883_v7 }
  0x87   :  { %4692 = vmatpush3.bf16.msra.mxu0 %v4987_v2  ;;  %4710 = vmatpush3.bf16.msra.mxu1 %v4987_v2 }
  0x88   :  { %4661 = vmatprep.mubr.msk.bf16.mxu0 %vm78_vm1, %v4884_v8  ;;  %4679 = vmatprep.mubr.msk.bf16.mxu1 %vm78_vm1, %v4885_v9 }
  0x89   :  { %4811 = vmatprep.subr.msk.bf16.mxu0 %vm103_vm0, %v4976_v0  ;;  %4812 = vmatprep.subr.msk.bf16.mxu1 %vm103_vm0, %v4976_v0 }
  0x8e   :  { %4662 = vmatmul.mubr.msk.bf16.gmra.mrb[68].mxu0 %vm78_vm1, %v4886_v10  ;;  %4680 = vmatmul.mubr.msk.bf16.gmra.mrb[68].mxu1 %vm78_vm1, %v4887_v11 }
  0x8f   :  { %4665 = vmatprep.mubr.msk.bf16.mxu0 %vm78_vm1, %v4888_v12  ;;  %4683 = vmatprep.mubr.msk.bf16.mxu1 %vm78_vm1, %v4889_v13 }
  0x96   :  { %4666 = vmatmul.mubr.msk.bf16.gmra.mrb[72].mxu0 %vm78_vm1, %v4890_v14  ;;  %4684 = vmatmul.mubr.msk.bf16.gmra.mrb[72].mxu1 %vm78_vm1, %v4891_v15 }
  0x97   :  { %4669 = vmatprep.mubr.msk.bf16.mxu0 %vm78_vm1, %v4892_v16  ;;  %4687 = vmatprep.mubr.msk.bf16.mxu1 %vm78_vm1, %v4893_v17 }
  0x9e   :  { %4670 = vmatmul.mubr.msk.bf16.gmra.mrb[76].mxu0 %vm78_vm1, %v4894_v18  ;;  %4688 = vmatmul.mubr.msk.bf16.gmra.mrb[76].mxu1 %vm78_vm1, %v4895_v19 }
  0x9f   :  { %4693 = vmatprep.mubr.msk.bf16.mxu0 %vm78_vm1, %v4896_v20  ;;  %4711 = vmatprep.mubr.msk.bf16.mxu1 %vm78_vm1, %v4897_v21 }
  0xa6   :  { %4694 = vmatmul.mubr.msk.bf16.vlgmr.msra.gmra.mrb[80].mxu0 %vm78_vm1, %v4898_v22  ;;  %4712 = vmatmul.mubr.msk.bf16.vlgmr.msra.gmra.mrb[80].mxu1 %vm78_vm1, %v4899_v23 }
  0xa7   :  { %4728 = vmatpush3.bf16.msra.mxu0 %v4987_v2  ;;  %4746 = vmatpush3.bf16.msra.mxu1 %v4987_v2 }
  0xa8   :  { %4697 = vmatprep.mubr.msk.bf16.mxu0 %vm78_vm1, %v4900_v24  ;;  %4715 = vmatprep.mubr.msk.bf16.mxu1 %vm78_vm1, %v4901_v25 }
  0xa9   :  { %4813 = vmatprep.subr.msk.bf16.mxu0 %vm103_vm0, %v4976_v0  ;;  %4814 = vmatprep.subr.msk.bf16.mxu1 %vm103_vm0, %v4976_v0  ;;  %v4906_v0 = vld [vmem:[%s6428_s0 + $0x280] sm:$0xff]  }
  0xae   :  { %4698 = vmatmul.mubr.msk.bf16.gmra.mrb[84].mxu0 %vm78_vm1, %v4902_v26  ;;  %4716 = vmatmul.mubr.msk.bf16.gmra.mrb[84].mxu1 %vm78_vm1, %v4903_v27 }
  0xaf   :  { %4701 = vmatprep.mubr.msk.bf16.mxu0 %vm78_vm1, %v4904_v28  ;;  %4719 = vmatprep.mubr.msk.bf16.mxu1 %vm78_vm1, %v4905_v29 }
  0xb6   :  { %4702 = vmatmul.mubr.msk.bf16.gmra.mrb[88].mxu0 %vm78_vm1, %v4906_v0  ;;  %4720 = vmatmul.mubr.msk.bf16.gmra.mrb[88].mxu1 %vm78_vm1, %v4907_v30 }
  0xb7   :  { %4705 = vmatprep.mubr.msk.bf16.mxu0 %vm78_vm1, %v4908_v31  ;;  %4723 = vmatprep.mubr.msk.bf16.mxu1 %vm78_vm1, %v4909_v32  ;;  %v4930_v32 = vld [vmem:[%s6428_s0 + $0x350] sm:$0xff]  }
  0xbe   :  { %4706 = vmatmul.mubr.msk.bf16.gmra.mrb[92].mxu0 %vm78_vm1, %v4910_v33  ;;  %4724 = vmatmul.mubr.msk.bf16.gmra.mrb[92].mxu1 %vm78_vm1, %v4911_v34  ;;  %v4931_v33 = vld [vmem:[%s6428_s0 + $0x38c] sm:$0xff]  }
  0xbf   :  { %4729 = vmatprep.mubr.msk.bf16.mxu0 %vm78_vm1, %v4912_v35  ;;  %4747 = vmatprep.mubr.msk.bf16.mxu1 %vm78_vm1, %v4913_v36 }
  0xc6   :  { %4730 = vmatmul.mubr.msk.bf16.vlgmr.msra.gmra.mrb[96].mxu0 %vm78_vm1, %v4914_v37  ;;  %4748 = vmatmul.mubr.msk.bf16.vlgmr.msra.gmra.mrb[96].mxu1 %vm78_vm1, %v4915_v38 }
  0xc7   :  { %4764 = vmatpush3.bf16.msra.mxu0 %v4987_v2  ;;  %4782 = vmatpush3.bf16.msra.mxu1 %v4987_v2  ;;  %v4921_v2 = vld [vmem:[%s6428_s0 + $0x32c] sm:$0xff]  }
  0xc8   :  { %4733 = vmatprep.mubr.msk.bf16.mxu0 %vm78_vm1, %v4916_v39  ;;  %4751 = vmatprep.mubr.msk.bf16.mxu1 %vm78_vm1, %v4917_v40  ;;  %v4932_v39 = vld [vmem:[%s6428_s0 + $0x358] sm:$0xff]  }
  0xc9   :  { %v4933_v40 = vld [vmem:[%s6428_s0 + $0x394] sm:$0xff]  }
  0xce   :  { %4734 = vmatmul.mubr.msk.bf16.gmra.mrb[100].mxu0 %vm78_vm1, %v4918_v41  ;;  %4752 = vmatmul.mubr.msk.bf16.gmra.mrb[100].mxu1 %vm78_vm1, %v4919_v42 }
  0xcf   :  { %4737 = vmatprep.mubr.msk.bf16.mxu0 %vm78_vm1, %v4920_v43  ;;  %4755 = vmatprep.mubr.msk.bf16.mxu1 %vm78_vm1, %v4921_v2 }
  0xd6   :  { %4738 = vmatmul.mubr.msk.bf16.gmra.mrb[104].mxu0 %vm78_vm1, %v4922_v44  ;;  %4756 = vmatmul.mubr.msk.bf16.gmra.mrb[104].mxu1 %vm78_vm1, %v4923_v45 }
  0xd7   :  { %4741 = vmatprep.mubr.msk.bf16.mxu0 %vm78_vm1, %v4924_v46  ;;  %4759 = vmatprep.mubr.msk.bf16.mxu1 %vm78_vm1, %v4925_v47 }
  0xd9   :  { %v4515_v49 = vpop.f32.mrb[0].mxu0  ;;  %v4533_v51 = vpop.f32.mrb[0].mxu1 }
  0xda   :  { %v212_v52 = vmul.f32 %v4515_v49, %v5471_v48  ;;  %v438_v53 = vmul.f32 %v4533_v51, %v5471_v48  ;;  %v141_v54 = vpop.f32.mrb[1].mxu0  ;;  %v374_v55 = vpop.f32.mrb[1].mxu1 }
  0xdb   :  { %v210_v58 = vmul.f32 %v5471_v48, %v141_v54  ;;  %v436_v59 = vmul.f32 %v5471_v48, %v374_v55  ;;  %v4516_v60 = vpop.f32.mrb[2].mxu0  ;;  %v4534_v61 = vpop.f32.mrb[2].mxu1 }
  0xdc   :  { %v234_v1 = vadd.f32 %v5478_v50, %v212_v52  ;;  %v453_v3 = vadd.f32 %v5478_v50, %v438_v53  ;;  %v213_v4 = vmul.f32 %v4516_v60, %v5471_v48  ;;  %v439_v5 = vmul.f32 %v4534_v61, %v5471_v48  ;;  %v144_v6 = vpop.f32.mrb[3].mxu0  ;;  %v377_v7 = vpop.f32.mrb[3].mxu1 }
  0xdd   :  { %v232_v8 = vadd.f32 %v5478_v50, %v210_v58  ;;  %v451_v9 = vadd.f32 %v5478_v50, %v436_v59  ;;  %v211_v10 = vmul.f32 %v5471_v48, %v144_v6  ;;  %v437_v11 = vmul.f32 %v5471_v48, %v377_v7 }
  0xde   :  { %v249_v12 = vmax.f32 %v234_v1, 0.0  ;;  %v468_v13 = vmax.f32 %v453_v3, 0.0  ;;  %v235_v14 = vadd.f32 %v5478_v50, %v213_v4  ;;  %v454_v15 = vadd.f32 %v5478_v50, %v439_v5  ;;  %4742 = vmatmul.mubr.msk.bf16.gmra.mrb[108].mxu0 %vm78_vm1, %v4926_v56  ;;  %4760 = vmatmul.mubr.msk.bf16.gmra.mrb[108].mxu1 %vm78_vm1, %v4927_v57 }
  0xdf   :  { %v247_v16 = vmax.f32 %v232_v8, 0.0  ;;  %v466_v17 = vmax.f32 %v451_v9, 0.0  ;;  %v233_v18 = vadd.f32 %v5478_v50, %v211_v10  ;;  %v452_v19 = vadd.f32 %v5478_v50, %v437_v11  ;;  %4765 = vmatprep.mubr.msk.bf16.mxu0 %vm78_vm1, %v4928_v62  ;;  %4783 = vmatprep.mubr.msk.bf16.mxu1 %vm78_vm1, %v4929_v63  ;;  %v4934_v11 = vld [vmem:[%s6428_s0 + $0x360] sm:$0xff]  }
  0xe0   :  { %v5512_v20 = vmax.f32 %v249_v12, %v468_v13  ;;  %v250_v21 = vmax.f32 %v235_v14, 0.0  ;;  %v469_v22 = vmax.f32 %v454_v15, 0.0  ;;  %v4935_v12 = vld [vmem:[%s6428_s0 + $0x39c] sm:$0xff]  }
  0xe1   :  { %v5514_v23 = vmax.f32 %v247_v16, %v466_v17  ;;  %v248_v24 = vmax.f32 %v233_v18, 0.0  ;;  %v467_v25 = vmax.f32 %v452_v19, 0.0  ;;  %v4519_v26 = vpop.f32.mrb[4].mxu0  ;;  %v4537_v27 = vpop.f32.mrb[4].mxu1  ;;  %v4936_v18 = vld [vmem:[%s6428_s0 + $0x368] sm:$0xff]  }
  0xe2   :  { %v5516_v28 = vmax.f32 %v250_v21, %v469_v22  ;;  %v216_v29 = vmul.f32 %v4519_v26, %v5471_v48  ;;  %v442_v0 = vmul.f32 %v4537_v27, %v5471_v48  ;;  %v157_v30 = vpop.f32.mrb[5].mxu0  ;;  %v390_v31 = vpop.f32.mrb[5].mxu1  ;;  %v4937_v19 = vld [vmem:[%s6428_s0 + $0x3a4] sm:$0xff]  }
  0xe3   :  { %v5526_v34 = vmax.f32 %v248_v24, %v467_v25  ;;  %v214_v35 = vmul.f32 %v5471_v48, %v157_v30  ;;  %v440_v36 = vmul.f32 %v5471_v48, %v390_v31  ;;  %v4520_v37 = vpop.f32.mrb[6].mxu0  ;;  %v4538_v38 = vpop.f32.mrb[6].mxu1 }
  0xe4   :  { %v238_v41 = vadd.f32 %v5478_v50, %v216_v29  ;;  %v457_v42 = vadd.f32 %v5478_v50, %v442_v0  ;;  %v217_v43 = vmul.f32 %v4520_v37, %v5471_v48  ;;  %v443_v2 = vmul.f32 %v4538_v38, %v5471_v48  ;;  %v160_v44 = vpop.f32.mrb[7].mxu0  ;;  %v393_v45 = vpop.f32.mrb[7].mxu1 }
  0xe5   :  { %v236_v46 = vadd.f32 %v5478_v50, %v214_v35  ;;  %v455_v47 = vadd.f32 %v5478_v50, %v440_v36  ;;  %v215_v49 = vmul.f32 %v5471_v48, %v160_v44  ;;  %v441_v51 = vmul.f32 %v5471_v48, %v393_v45 }
  0xe6   :  { %v253_v52 = vmax.f32 %v238_v41, 0.0  ;;  %v472_v53 = vmax.f32 %v457_v42, 0.0  ;;  %v239_v54 = vadd.f32 %v5478_v50, %v217_v43  ;;  %v458_v55 = vadd.f32 %v5478_v50, %v443_v2  ;;  %4766 = vmatmul.mubr.msk.bf16.vlgmr.msra.gmra.mrb[112].mxu0 %vm78_vm1, %v4930_v32  ;;  %4784 = vmatmul.mubr.msk.bf16.vlgmr.msra.gmra.mrb[112].mxu1 %vm78_vm1, %v4931_v33 }
  0xe7   :  { %v251_v56 = vmax.f32 %v236_v46, 0.0  ;;  %v470_v57 = vmax.f32 %v455_v47, 0.0  ;;  %v237_v58 = vadd.f32 %v5478_v50, %v215_v49  ;;  %v456_v59 = vadd.f32 %v5478_v50, %v441_v51  ;;  %4769 = vmatprep.mubr.msk.bf16.mxu0 %vm78_vm1, %v4932_v39  ;;  %4787 = vmatprep.mubr.msk.bf16.mxu1 %vm78_vm1, %v4933_v40 }
  0xe8   :  { %v5552_v60 = vmax.f32 %v253_v52, %v472_v53  ;;  %v254_v61 = vmax.f32 %v239_v54, 0.0  ;;  %v473_v62 = vmax.f32 %v458_v55, 0.0  ;;  %v4938_v55 = vld [vmem:[%s6428_s0 + $0x370] sm:$0xff]  }
  0xe9   :  { %v5554_v63 = vmax.f32 %v251_v56, %v470_v57  ;;  %v252_v1 = vmax.f32 %v237_v58, 0.0  ;;  %v471_v3 = vmax.f32 %v456_v59, 0.0  ;;  %v4523_v4 = vpop.f32.mrb[8].mxu0  ;;  %v4541_v5 = vpop.f32.mrb[8].mxu1  ;;  %v4939_v56 = vld [vmem:[%s6428_s0 + $0x3ac] sm:$0xff]  }
  0xea   :  { %v5556_v6 = vmax.f32 %v254_v61, %v473_v62  ;;  %v220_v7 = vmul.f32 %v4523_v4, %v5471_v48  ;;  %v446_v8 = vmul.f32 %v4541_v5, %v5471_v48  ;;  %v173_v9 = vpop.f32.mrb[9].mxu0  ;;  %v406_v10 = vpop.f32.mrb[9].mxu1 }
  0xeb   :  { %v5566_v13 = vmax.f32 %v252_v1, %v471_v3  ;;  %v218_v14 = vmul.f32 %v5471_v48, %v173_v9  ;;  %v444_v15 = vmul.f32 %v5471_v48, %v406_v10  ;;  %v4524_v16 = vpop.f32.mrb[10].mxu0  ;;  %v4542_v17 = vpop.f32.mrb[10].mxu1  ;;  %v4940_v1 = vld [vmem:[%s6428_s0 + $0x378] sm:$0xff]  }
  0xec   :  { %v242_v21 = vadd.f32 %v5478_v50, %v220_v7  ;;  %v461_v22 = vadd.f32 %v5478_v50, %v446_v8  ;;  %v221_v24 = vmul.f32 %v4524_v16, %v5471_v48  ;;  %v447_v25 = vmul.f32 %v4542_v17, %v5471_v48  ;;  %v176_v26 = vpop.f32.mrb[11].mxu0  ;;  %v409_v27 = vpop.f32.mrb[11].mxu1  ;;  %v4941_v3 = vld [vmem:[%s6428_s0 + $0x3b4] sm:$0xff]  }
  0xed   :  { %v240_v29 = vadd.f32 %v5478_v50, %v218_v14  ;;  %v459_v0 = vadd.f32 %v5478_v50, %v444_v15  ;;  %v219_v30 = vmul.f32 %v5471_v48, %v176_v26  ;;  %v445_v31 = vmul.f32 %v5471_v48, %v409_v27 }
  0xee   :  { %v257_v32 = vmax.f32 %v242_v21, 0.0  ;;  %v476_v33 = vmax.f32 %v461_v22, 0.0  ;;  %v243_v35 = vadd.f32 %v5478_v50, %v221_v24  ;;  %v462_v36 = vadd.f32 %v5478_v50, %v447_v25  ;;  %4770 = vmatmul.mubr.msk.bf16.gmra.mrb[116].mxu0 %vm78_vm1, %v4934_v11  ;;  %4788 = vmatmul.mubr.msk.bf16.gmra.mrb[116].mxu1 %vm78_vm1, %v4935_v12 }
  0xef   :  { %v255_v37 = vmax.f32 %v240_v29, 0.0  ;;  %v474_v38 = vmax.f32 %v459_v0, 0.0  ;;  %v241_v39 = vadd.f32 %v5478_v50, %v219_v30  ;;  %v460_v40 = vadd.f32 %v5478_v50, %v445_v31  ;;  %4773 = vmatprep.mubr.msk.bf16.mxu0 %vm78_vm1, %v4936_v18  ;;  %4791 = vmatprep.mubr.msk.bf16.mxu1 %vm78_vm1, %v4937_v19 }
  0xf0   :  { %v5592_v41 = vmax.f32 %v257_v32, %v476_v33  ;;  %v258_v42 = vmax.f32 %v243_v35, 0.0  ;;  %v477_v43 = vmax.f32 %v462_v36, 0.0  ;;  %v4942_v32 = vld [vmem:[%s6428_s0 + $0x380] ss:$0 sps:$4 sm:$0xff]   ;;  %v4943_v33 = vld [vmem:[%s6428_s0 + $0x3bc] ss:$0 sps:$4 sm:$0xff]  }
  0xf1   :  { %v5594_v2 = vmax.f32 %v255_v37, %v474_v38  ;;  %v256_v44 = vmax.f32 %v241_v39, 0.0  ;;  %v475_v45 = vmax.f32 %v460_v40, 0.0  ;;  %v4527_v46 = vpop.f32.mrb[12].mxu0  ;;  %v4545_v47 = vpop.f32.mrb[12].mxu1 }
  0xf2   :  { %v5596_v49 = vmax.f32 %v258_v42, %v477_v43  ;;  %v224_v51 = vmul.f32 %v4527_v46, %v5471_v48  ;;  %v450_v52 = vmul.f32 %v4545_v47, %v5471_v48  ;;  %v189_v53 = vpop.f32.mrb[13].mxu0  ;;  %v422_v54 = vpop.f32.mrb[13].mxu1 }
  0xf3   :  { %v5606_v57 = vmax.f32 %v256_v44, %v475_v45  ;;  %v222_v58 = vmul.f32 %v5471_v48, %v189_v53  ;;  %v448_v59 = vmul.f32 %v5471_v48, %v422_v54  ;;  %v4528_v61 = vpop.f32.mrb[14].mxu0  ;;  %v4546_v62 = vpop.f32.mrb[14].mxu1 }
  0xf4   :  { %v246_v4 = vadd.f32 %v5478_v50, %v224_v51  ;;  %v465_v5 = vadd.f32 %v5478_v50, %v450_v52  ;;  %v192_v7 = vpop.f32.mrb[15].mxu0  ;;  %v425_v8 = vpop.f32.mrb[15].mxu1 }
  0xf5   :  { %v244_v9 = vadd.f32 %v5478_v50, %v222_v58  ;;  %v463_v10 = vadd.f32 %v5478_v50, %v448_v59  ;;  %v223_v11 = vmul.f32 %v5471_v48, %v192_v7  ;;  %v449_v12 = vmul.f32 %v5471_v48, %v425_v8 }
  0xf6   :  { %v261_v14 = vmax.f32 %v246_v4, 0.0  ;;  %v480_v15 = vmax.f32 %v465_v5, 0.0  ;;  %4774 = vmatmul.mubr.msk.bf16.gmra.mrb[120].mxu0 %vm78_vm1, %v4938_v55  ;;  %4792 = vmatmul.mubr.msk.bf16.gmra.mrb[120].mxu1 %vm78_vm1, %v4939_v56 }
  0xf7   :  { %v259_v16 = vmax.f32 %v244_v9, 0.0  ;;  %v478_v17 = vmax.f32 %v463_v10, 0.0  ;;  %v245_v18 = vadd.f32 %v5478_v50, %v223_v11  ;;  %v464_v19 = vadd.f32 %v5478_v50, %v449_v12  ;;  %4777 = vmatprep.mubr.msk.bf16.mxu0 %vm78_vm1, %v4940_v1  ;;  %4795 = vmatprep.mubr.msk.bf16.mxu1 %vm78_vm1, %v4941_v3 }
  0xf8   :  { %v5628_v21 = vmax.f32 %v261_v14, %v480_v15 }
  0xf9   :  { %v5630_v22 = vmax.f32 %v259_v16, %v478_v17  ;;  %v260_v24 = vmax.f32 %v245_v18, 0.0  ;;  %v479_v25 = vmax.f32 %v464_v19, 0.0  ;;  %v4551_v26 = vpop.f32.mrb[16].mxu0  ;;  %v4569_v27 = vpop.f32.mrb[16].mxu1 }
  0xfa   :  { %v672_v29 = vmul.f32 %v4551_v26, %v5471_v48  ;;  %v906_v0 = vmul.f32 %v4569_v27, %v5471_v48  ;;  %v608_v30 = vpop.f32.mrb[17].mxu0  ;;  %v842_v31 = vpop.f32.mrb[17].mxu1 }
  0xfb   :  { %v5640_v35 = vmax.f32 %v260_v24, %v479_v25  ;;  %v670_v36 = vmul.f32 %v5471_v48, %v608_v30  ;;  %v904_v37 = vmul.f32 %v5471_v48, %v842_v31  ;;  %v4552_v38 = vpop.f32.mrb[18].mxu0  ;;  %v4570_v39 = vpop.f32.mrb[18].mxu1 }
  0xfc   :  { %v687_v40 = vadd.f32 %v5478_v50, %v672_v29  ;;  %v921_v42 = vadd.f32 %v5478_v50, %v906_v0  ;;  %v673_v43 = vmul.f32 %v4552_v38, %v5471_v48  ;;  %v907_v44 = vmul.f32 %v4570_v39, %v5471_v48  ;;  %v611_v45 = vpop.f32.mrb[19].mxu0  ;;  %v845_v46 = vpop.f32.mrb[19].mxu1 }
  0xfd   :  { %v685_v47 = vadd.f32 %v5478_v50, %v670_v36  ;;  %v919_v51 = vadd.f32 %v5478_v50, %v904_v37  ;;  %v671_v52 = vmul.f32 %v5471_v48, %v611_v45  ;;  %v905_v53 = vmul.f32 %v5471_v48, %v845_v46 }
  0xfe   :  { %v702_v54 = vmax.f32 %v687_v40, 0.0  ;;  %v936_v55 = vmax.f32 %v921_v42, 0.0  ;;  %v688_v56 = vadd.f32 %v5478_v50, %v673_v43  ;;  %v922_v58 = vadd.f32 %v5478_v50, %v907_v44  ;;  %4778 = vmatmul.mubr.msk.bf16.gmra.mrb[124].mxu0 %vm78_vm1, %v4942_v32  ;;  %4796 = vmatmul.mubr.msk.bf16.gmra.mrb[124].mxu1 %vm78_vm1, %v4943_v33 }
  0xff   :  { %v700_v59 = vmax.f32 %v685_v47, 0.0  ;;  %v934_v61 = vmax.f32 %v919_v51, 0.0  ;;  %v686_v62 = vadd.f32 %v5478_v50, %v671_v52  ;;  %v920_v1 = vadd.f32 %v5478_v50, %v905_v53 }
 0x100   :  { %v717_v3 = vmax.f32 %v5512_v20, %v702_v54  ;;  %v703_v4 = vmax.f32 %v688_v56, 0.0  ;;  %v937_v7 = vmax.f32 %v922_v58, 0.0 }
 0x101   :  { %v715_v5 = vmax.f32 %v5514_v23, %v700_v59  ;;  %v701_v8 = vmax.f32 %v686_v62, 0.0  ;;  %v935_v9 = vmax.f32 %v920_v1, 0.0  ;;  %v4555_v10 = vpop.f32.mrb[20].mxu0  ;;  %v4573_v11 = vpop.f32.mrb[20].mxu1 }
 0x102   :  { %v5660_v12 = vmax.f32 %v717_v3, %v936_v55  ;;  %v718_v14 = vmax.f32 %v5516_v28, %v703_v4  ;;  %v676_v15 = vmul.f32 %v4555_v10, %v5471_v48  ;;  %v910_v16 = vmul.f32 %v4573_v11, %v5471_v48  ;;  %v624_v17 = vpop.f32.mrb[21].mxu0  ;;  %v858_v18 = vpop.f32.mrb[21].mxu1 }
 0x103   :  { %v5665_v19 = vmax.f32 %v715_v5, %v934_v61  ;;  %v716_v20 = vmax.f32 %v5526_v34, %v701_v8  ;;  %v674_v23 = vmul.f32 %v5471_v48, %v624_v17  ;;  %v908_v24 = vmul.f32 %v5471_v48, %v858_v18  ;;  %v4556_v25 = vpop.f32.mrb[22].mxu0  ;;  %v4574_v26 = vpop.f32.mrb[22].mxu1 }
 0x104   :  { %v5670_v27 = vmax.f32 %v718_v14, %v937_v7  ;;  %v691_v28 = vadd.f32 %v5478_v50, %v676_v15  ;;  %v925_v29 = vadd.f32 %v5478_v50, %v910_v16  ;;  %v677_v0 = vmul.f32 %v4556_v25, %v5471_v48  ;;  %v627_v30 = vpop.f32.mrb[23].mxu0  ;;  %v861_v31 = vpop.f32.mrb[23].mxu1 }
 0x105   :  { %v5675_v32 = vmax.f32 %v716_v20, %v935_v9  ;;  %v689_v34 = vadd.f32 %v5478_v50, %v674_v23  ;;  %v923_v33 = vadd.f32 %v5478_v50, %v908_v24  ;;  %v911_v36 = vmul.f32 %v4574_v26, %v5471_v48 }
 0x106   :  { %v706_v37 = vmax.f32 %v691_v28, 0.0  ;;  %v940_v38 = vmax.f32 %v925_v29, 0.0  ;;  %v692_v39 = vadd.f32 %v5478_v50, %v677_v0  ;;  %v675_v40 = vmul.f32 %v5471_v48, %v627_v30 }
 0x107   :  { %v704_v42 = vmax.f32 %v689_v34, 0.0  ;;  %v938_v43 = vmax.f32 %v923_v33, 0.0  ;;  %v926_v44 = vadd.f32 %v5478_v50, %v911_v36  ;;  %v909_v45 = vmul.f32 %v5471_v48, %v861_v31 }
 0x108   :  { %v721_v46 = vmax.f32 %v5552_v60, %v706_v37  ;;  %v707_v47 = vmax.f32 %v692_v39, 0.0  ;;  %v690_v51 = vadd.f32 %v5478_v50, %v675_v40 }
 0x109   :  { %v719_v52 = vmax.f32 %v5554_v63, %v704_v42  ;;  %v941_v53 = vmax.f32 %v926_v44, 0.0  ;;  %v924_v54 = vadd.f32 %v5478_v50, %v909_v45  ;;  %v4559_v55 = vpop.f32.mrb[24].mxu0  ;;  %v4577_v56 = vpop.f32.mrb[24].mxu1 }
 0x10a   :  { %v5688_v58 = vmax.f32 %v721_v46, %v940_v38  ;;  %v722_v59 = vmax.f32 %v5556_v6, %v707_v47  ;;  %v705_v61 = vmax.f32 %v690_v51, 0.0  ;;  %v680_v62 = vmul.f32 %v4559_v55, %v5471_v48  ;;  %v640_v1 = vpop.f32.mrb[25].mxu0  ;;  %v874_v3 = vpop.f32.mrb[25].mxu1 }
 0x10b   :  { %v5692_v60 = vmax.f32 %v719_v52, %v938_v43  ;;  %v939_v4 = vmax.f32 %v924_v54, 0.0  ;;  %v914_v5 = vmul.f32 %v4577_v56, %v5471_v48  ;;  %v678_v63 = vmul.f32 %v5471_v48, %v640_v1  ;;  %v4560_v7 = vpop.f32.mrb[26].mxu0  ;;  %v4578_v8 = vpop.f32.mrb[26].mxu1 }
 0x10c   :  { %v5696_v9 = vmax.f32 %v722_v59, %v941_v53  ;;  %v720_v10 = vmax.f32 %v5566_v13, %v705_v61  ;;  %v695_v6 = vadd.f32 %v5478_v50, %v680_v62  ;;  %v912_v11 = vmul.f32 %v5471_v48, %v874_v3  ;;  %v643_v14 = vpop.f32.mrb[27].mxu0  ;;  %v877_v15 = vpop.f32.mrb[27].mxu1 }
 0x10d   :  { %v929_v16 = vadd.f32 %v5478_v50, %v914_v5  ;;  %v693_v17 = vadd.f32 %v5478_v50, %v678_v63  ;;  %v681_v18 = vmul.f32 %v4560_v7, %v5471_v48  ;;  %v915_v20 = vmul.f32 %v4578_v8, %v5471_v48 }
 0x10e   :  { %v5705_v23 = vmax.f32 %v720_v10, %v939_v4  ;;  %v710_v24 = vmax.f32 %v695_v6, 0.0  ;;  %v927_v25 = vadd.f32 %v5478_v50, %v912_v11  ;;  %v679_v13 = vmul.f32 %v5471_v48, %v643_v14 }
 0x10f   :  { %v944_v26 = vmax.f32 %v929_v16, 0.0  ;;  %v708_v28 = vmax.f32 %v693_v17, 0.0  ;;  %v696_v29 = vadd.f32 %v5478_v50, %v681_v18  ;;  %v930_v0 = vadd.f32 %v5478_v50, %v915_v20 }
 0x110   :  { %v725_v30 = vmax.f32 %v5592_v41, %v710_v24  ;;  %v942_v31 = vmax.f32 %v927_v25, 0.0  ;;  %v694_v34 = vadd.f32 %v5478_v50, %v679_v13  ;;  %v913_v33 = vmul.f32 %v5471_v48, %v877_v15 }
 0x111   :  { %v723_v36 = vmax.f32 %v5594_v2, %v708_v28  ;;  %v711_v37 = vmax.f32 %v696_v29, 0.0  ;;  %v945_v38 = vmax.f32 %v930_v0, 0.0  ;;  %v4563_v39 = vpop.f32.mrb[28].mxu0  ;;  %v4581_v40 = vpop.f32.mrb[28].mxu1 }
 0x112   :  { %v5715_v42 = vmax.f32 %v725_v30, %v944_v26  ;;  %v709_v43 = vmax.f32 %v694_v34, 0.0  ;;  %v928_v44 = vadd.f32 %v5478_v50, %v913_v33  ;;  %v684_v45 = vmul.f32 %v4563_v39, %v5471_v48  ;;  %v656_v46 = vpop.f32.mrb[29].mxu0  ;;  %v890_v41 = vpop.f32.mrb[29].mxu1 }
 0x113   :  { %v5719_v47 = vmax.f32 %v723_v36, %v942_v31  ;;  %v726_v51 = vmax.f32 %v5596_v49, %v711_v37  ;;  %v918_v52 = vmul.f32 %v4581_v40, %v5471_v48  ;;  %v682_v2 = vmul.f32 %v5471_v48, %v656_v46  ;;  %v4564_v53 = vpop.f32.mrb[30].mxu0  ;;  %v4582_v54 = vpop.f32.mrb[30].mxu1 }
 0x114   :  { %v724_v55 = vmax.f32 %v5606_v57, %v709_v43  ;;  %v943_v56 = vmax.f32 %v928_v44, 0.0  ;;  %v699_v59 = vadd.f32 %v5478_v50, %v684_v45  ;;  %v916_v61 = vmul.f32 %v5471_v48, %v890_v41  ;;  %v659_v62 = vpop.f32.mrb[31].mxu0  ;;  %v893_v1 = vpop.f32.mrb[31].mxu1 }
 0x115   :  { %v5727_v3 = vmax.f32 %v726_v51, %v945_v38  ;;  %v933_v4 = vadd.f32 %v5478_v50, %v918_v52  ;;  %v697_v49 = vadd.f32 %v5478_v50, %v682_v2  ;;  %v683_v5 = vmul.f32 %v5471_v48, %v659_v62 }
 0x116   :  { %v5732_v63 = vmax.f32 %v724_v55, %v943_v56  ;;  %v714_v7 = vmax.f32 %v699_v59, 0.0  ;;  %v931_v57 = vadd.f32 %v5478_v50, %v916_v61  ;;  %v917_v8 = vmul.f32 %v5471_v48, %v893_v1 }
 0x117   :  { %v948_v10 = vmax.f32 %v933_v4, 0.0  ;;  %v712_v6 = vmax.f32 %v697_v49, 0.0  ;;  %v698_v11 = vadd.f32 %v5478_v50, %v683_v5 }
 0x118   :  { %v729_v14 = vmax.f32 %v5628_v21, %v714_v7  ;;  %v946_v15 = vmax.f32 %v931_v57, 0.0  ;;  %v932_v16 = vadd.f32 %v5478_v50, %v917_v8 }
 0x119   :  { %v727_v17 = vmax.f32 %v5630_v22, %v712_v6  ;;  %v713_v18 = vmax.f32 %v698_v11, 0.0  ;;  %v4587_v20 = vpop.f32.mrb[32].mxu0  ;;  %v4605_v24 = vpop.f32.mrb[32].mxu1 }
 0x11a   :  { %v5740_v25 = vmax.f32 %v729_v14, %v948_v10  ;;  %v947_v13 = vmax.f32 %v932_v16, 0.0  ;;  %v1140_v26 = vmul.f32 %v4587_v20, %v5471_v48  ;;  %v1374_v28 = vmul.f32 %v4605_v24, %v5471_v48  ;;  %v1076_v29 = vpop.f32.mrb[33].mxu0  ;;  %v1310_v0 = vpop.f32.mrb[33].mxu1 }
 0x11b   :  { %v5744_v30 = vmax.f32 %v727_v17, %v946_v15  ;;  %v728_v21 = vmax.f32 %v5640_v35, %v713_v18  ;;  %v1138_v31 = vmul.f32 %v5471_v48, %v1076_v29  ;;  %v1372_v22 = vmul.f32 %v5471_v48, %v1310_v0  ;;  %v4588_v34 = vpop.f32.mrb[34].mxu0  ;;  %v4606_v33 = vpop.f32.mrb[34].mxu1 }
 0x11c   :  { %v1155_v36 = vadd.f32 %v5478_v50, %v1140_v26  ;;  %v1389_v37 = vadd.f32 %v5478_v50, %v1374_v28  ;;  %v1141_v38 = vmul.f32 %v4588_v34, %v5471_v48  ;;  %v1375_v39 = vmul.f32 %v4606_v33, %v5471_v48  ;;  %v1079_v40 = vpop.f32.mrb[35].mxu0  ;;  %v1313_v43 = vpop.f32.mrb[35].mxu1 }
 0x11d   :  { %v5753_v44 = vmax.f32 %v728_v21, %v947_v13  ;;  %v1153_v35 = vadd.f32 %v5478_v50, %v1138_v31  ;;  %v1387_v45 = vadd.f32 %v5478_v50, %v1372_v22  ;;  %v1139_v46 = vmul.f32 %v5471_v48, %v1079_v40 }
 0x11e   :  { %v1170_v41 = vmax.f32 %v1155_v36, 0.0  ;;  %v1404_v51 = vmax.f32 %v1389_v37, 0.0  ;;  %v1156_v52 = vadd.f32 %v5478_v50, %v1141_v38  ;;  %v1390_v2 = vadd.f32 %v5478_v50, %v1375_v39 }
 0x11f   :  { %v1168_v53 = vmax.f32 %v1153_v35, 0.0  ;;  %v1402_v54 = vmax.f32 %v1387_v45, 0.0  ;;  %v1154_v55 = vadd.f32 %v5478_v50, %v1139_v46  ;;  %v1373_v56 = vmul.f32 %v5471_v48, %v1313_v43 }
 0x120   :  { %v1185_v59 = vmax.f32 %v5660_v12, %v1170_v41  ;;  %v1171_v61 = vmax.f32 %v1156_v52, 0.0  ;;  %v1405_v1 = vmax.f32 %v1390_v2, 0.0 }
 0x121   :  { %v1183_v62 = vmax.f32 %v5665_v19, %v1168_v53  ;;  %v1169_v4 = vmax.f32 %v1154_v55, 0.0  ;;  %v1388_v49 = vadd.f32 %v5478_v50, %v1373_v56  ;;  %v4591_v5 = vpop.f32.mrb[36].mxu0  ;;  %v4609_v7 = vpop.f32.mrb[36].mxu1 }
 0x122   :  { %v5765_v57 = vmax.f32 %v1185_v59, %v1404_v51  ;;  %v1186_v8 = vmax.f32 %v5670_v27, %v1171_v61  ;;  %v1144_v10 = vmul.f32 %v4591_v5, %v5471_v48  ;;  %v1378_v6 = vmul.f32 %v4609_v7, %v5471_v48  ;;  %v1092_v11 = vpop.f32.mrb[37].mxu0  ;;  %v1326_v14 = vpop.f32.mrb[37].mxu1 }
 0x123   :  { %v5770_v12 = vmax.f32 %v1183_v62, %v1402_v54  ;;  %v1184_v19 = vmax.f32 %v5675_v32, %v1169_v4  ;;  %v1403_v15 = vmax.f32 %v1388_v49, 0.0  ;;  %v1142_v16 = vmul.f32 %v5471_v48, %v1092_v11  ;;  %v4592_v17 = vpop.f32.mrb[38].mxu0  ;;  %v4610_v18 = vpop.f32.mrb[38].mxu1 }
 0x124   :  { %v5774_v20 = vmax.f32 %v1186_v8, %v1405_v1  ;;  %v1159_v24 = vadd.f32 %v5478_v50, %v1144_v10  ;;  %v1393_v27 = vadd.f32 %v5478_v50, %v1378_v6  ;;  %v1376_v13 = vmul.f32 %v5471_v48, %v1326_v14  ;;  %v1095_v26 = vpop.f32.mrb[39].mxu0  ;;  %v1329_v28 = vpop.f32.mrb[39].mxu1 }
 0x125   :  { %v5779_v29 = vmax.f32 %v1184_v19, %v1403_v15  ;;  %v1157_v0 = vadd.f32 %v5478_v50, %v1142_v16  ;;  %v1145_v32 = vmul.f32 %v4592_v17, %v5471_v48  ;;  %v1379_v21 = vmul.f32 %v4610_v18, %v5471_v48 }
 0x126   :  { %v1174_v31 = vmax.f32 %v1159_v24, 0.0  ;;  %v1408_v22 = vmax.f32 %v1393_v27, 0.0  ;;  %v1391_v34 = vadd.f32 %v5478_v50, %v1376_v13  ;;  %v1143_v33 = vmul.f32 %v5471_v48, %v1095_v26 }
 0x127   :  { %v1172_v36 = vmax.f32 %v1157_v0, 0.0  ;;  %v1160_v37 = vadd.f32 %v5478_v50, %v1145_v32  ;;  %v1394_v38 = vadd.f32 %v5478_v50, %v1379_v21  ;;  %v1377_v39 = vmul.f32 %v5471_v48, %v1329_v28 }
 0x128   :  { %v1189_v40 = vmax.f32 %v5688_v58, %v1174_v31  ;;  %v1406_v43 = vmax.f32 %v1391_v34, 0.0  ;;  %v1158_v35 = vadd.f32 %v5478_v50, %v1143_v33 }
 0x129   :  { %v1187_v45 = vmax.f32 %v5692_v60, %v1172_v36  ;;  %v1175_v46 = vmax.f32 %v1160_v37, 0.0  ;;  %v1409_v41 = vmax.f32 %v1394_v38, 0.0  ;;  %v1392_v51 = vadd.f32 %v5478_v50, %v1377_v39  ;;  %v4595_v52 = vpop.f32.mrb[40].mxu0  ;;  %v4613_v2 = vpop.f32.mrb[40].mxu1 }
 0x12a   :  { %v5793_v53 = vmax.f32 %v1189_v40, %v1408_v22  ;;  %v1173_v54 = vmax.f32 %v1158_v35, 0.0  ;;  %v1148_v55 = vmul.f32 %v4595_v52, %v5471_v48  ;;  %v1382_v56 = vmul.f32 %v4613_v2, %v5471_v48  ;;  %v1108_v59 = vpop.f32.mrb[41].mxu0  ;;  %v1342_v58 = vpop.f32.mrb[41].mxu1 }
 0x12b   :  { %v5797_v61 = vmax.f32 %v1187_v45, %v1406_v43  ;;  %v1190_v62 = vmax.f32 %v5696_v9, %v1175_v46  ;;  %v1407_v60 = vmax.f32 %v1392_v51, 0.0  ;;  %v1146_v1 = vmul.f32 %v5471_v48, %v1108_v59  ;;  %v4596_v4 = vpop.f32.mrb[42].mxu0  ;;  %v4614_v49 = vpop.f32.mrb[42].mxu1 }
 0x12c   :  { %v1188_v5 = vmax.f32 %v5705_v23, %v1173_v54  ;;  %v1163_v7 = vadd.f32 %v5478_v50, %v1148_v55  ;;  %v1397_v8 = vadd.f32 %v5478_v50, %v1382_v56  ;;  %v1380_v10 = vmul.f32 %v5471_v48, %v1342_v58  ;;  %v1111_v6 = vpop.f32.mrb[43].mxu0  ;;  %v1345_v11 = vpop.f32.mrb[43].mxu1 }
 0x12d   :  { %v5805_v14 = vmax.f32 %v1190_v62, %v1409_v41  ;;  %v1161_v19 = vadd.f32 %v5478_v50, %v1146_v1  ;;  %v1149_v9 = vmul.f32 %v4596_v4, %v5471_v48  ;;  %v1383_v15 = vmul.f32 %v4614_v49, %v5471_v48 }
 0x12e   :  { %v5810_v16 = vmax.f32 %v1188_v5, %v1407_v60  ;;  %v1178_v17 = vmax.f32 %v1163_v7, 0.0  ;;  %v1412_v23 = vmax.f32 %v1397_v8, 0.0  ;;  %v1395_v18 = vadd.f32 %v5478_v50, %v1380_v10 }
 0x12f   :  { %v1176_v24 = vmax.f32 %v1161_v19, 0.0  ;;  %v1164_v27 = vadd.f32 %v5478_v50, %v1149_v9  ;;  %v1398_v13 = vadd.f32 %v5478_v50, %v1383_v15  ;;  %v1147_v26 = vmul.f32 %v5471_v48, %v1111_v6 }
 0x130   :  { %v1193_v28 = vmax.f32 %v5715_v42, %v1178_v17  ;;  %v1410_v0 = vmax.f32 %v1395_v18, 0.0  ;;  %v1381_v32 = vmul.f32 %v5471_v48, %v1345_v11 }
 0x131   :  { %v1191_v21 = vmax.f32 %v5719_v47, %v1176_v24  ;;  %v1179_v31 = vmax.f32 %v1164_v27, 0.0  ;;  %v1413_v22 = vmax.f32 %v1398_v13, 0.0  ;;  %v1162_v34 = vadd.f32 %v5478_v50, %v1147_v26  ;;  %v4599_v33 = vpop.f32.mrb[44].mxu0  ;;  %v4617_v36 = vpop.f32.mrb[44].mxu1 }
 0x132   :  { %v5820_v37 = vmax.f32 %v1193_v28, %v1412_v23  ;;  %v1396_v38 = vadd.f32 %v5478_v50, %v1381_v32  ;;  %v1152_v39 = vmul.f32 %v4599_v33, %v5471_v48  ;;  %v1386_v40 = vmul.f32 %v4617_v36, %v5471_v48  ;;  %v1124_v42 = vpop.f32.mrb[45].mxu0  ;;  %v1358_v43 = vpop.f32.mrb[45].mxu1 }
 0x133   :  { %v5825_v35 = vmax.f32 %v1191_v21, %v1410_v0  ;;  %v1194_v47 = vmax.f32 %v5727_v3, %v1179_v31  ;;  %v1177_v45 = vmax.f32 %v1162_v34, 0.0  ;;  %v1150_v46 = vmul.f32 %v5471_v48, %v1124_v42  ;;  %v4600_v41 = vpop.f32.mrb[46].mxu0  ;;  %v4618_v51 = vpop.f32.mrb[46].mxu1 }
 0x134   :  { %v1411_v52 = vmax.f32 %v1396_v38, 0.0  ;;  %v1167_v2 = vadd.f32 %v5478_v50, %v1152_v39  ;;  %v1401_v54 = vadd.f32 %v5478_v50, %v1386_v40  ;;  %v1384_v55 = vmul.f32 %v5471_v48, %v1358_v43  ;;  %v1127_v56 = vpop.f32.mrb[47].mxu0  ;;  %v1361_v59 = vpop.f32.mrb[47].mxu1 }
 0x135   :  { %v5832_v58 = vmax.f32 %v1194_v47, %v1413_v22  ;;  %v1192_v62 = vmax.f32 %v5732_v63, %v1177_v45  ;;  %v1165_v3 = vadd.f32 %v5478_v50, %v1150_v46  ;;  %v1151_v60 = vmul.f32 %v5471_v48, %v1127_v56 }
 0x136   :  { %v1182_v1 = vmax.f32 %v1167_v2, 0.0  ;;  %v1416_v4 = vmax.f32 %v1401_v54, 0.0  ;;  %v1399_v49 = vadd.f32 %v5478_v50, %v1384_v55  ;;  %v1385_v5 = vmul.f32 %v5471_v48, %v1361_v59 }
 0x137   :  { %v5839_v7 = vmax.f32 %v1192_v62, %v1411_v52  ;;  %v1180_v8 = vmax.f32 %v1165_v3, 0.0  ;;  %v1166_v10 = vadd.f32 %v5478_v50, %v1151_v60 }
 0x138   :  { %v1197_v6 = vmax.f32 %v5740_v25, %v1182_v1  ;;  %v1414_v11 = vmax.f32 %v1399_v49, 0.0  ;;  %v1400_v63 = vadd.f32 %v5478_v50, %v1385_v5  ;;  %v5876_v5 = vld [vmem:[%s6429_s2] ss:$0 sm:$0xff] }
 0x139   :  { %v1195_v19 = vmax.f32 %v5744_v30, %v1180_v8  ;;  %v1181_v9 = vmax.f32 %v1166_v10, 0.0  ;;  %v4623_v15 = vpop.f32.mrb[48].mxu0  ;;  %v4641_v17 = vpop.f32.mrb[48].mxu1 }
 0x13a   :  { %v5845_v23 = vmax.f32 %v1197_v6, %v1416_v4  ;;  %v1415_v18 = vmax.f32 %v1400_v63, 0.0  ;;  %v1608_v24 = vmul.f32 %v4623_v15, %v5471_v48  ;;  %v1842_v27 = vmul.f32 %v4641_v17, %v5471_v48  ;;  %v1544_v13 = vpop.f32.mrb[49].mxu0  ;;  %v1778_v26 = vpop.f32.mrb[49].mxu1 }
 0x13b   :  { %v5849_v28 = vmax.f32 %v1195_v19, %v1414_v11  ;;  %v1196_v25 = vmax.f32 %v5753_v44, %v1181_v9  ;;  %v1606_v0 = vmul.f32 %v5471_v48, %v1544_v13  ;;  %v1840_v30 = vmul.f32 %v5471_v48, %v1778_v26  ;;  %v4624_v32 = vpop.f32.mrb[50].mxu0  ;;  %v4642_v21 = vpop.f32.mrb[50].mxu1  ;;  %v5889_v9 = vld [vmem:[%s6430_s3] ss:$0 sm:$0xff] }
 0x13c   :  { %v1623_v31 = vadd.f32 %v5478_v50, %v1608_v24  ;;  %v1857_v22 = vadd.f32 %v5478_v50, %v1842_v27  ;;  %v1609_v34 = vmul.f32 %v4624_v32, %v5471_v48  ;;  %v1843_v33 = vmul.f32 %v4642_v21, %v5471_v48  ;;  %v1547_v36 = vpop.f32.mrb[51].mxu0  ;;  %v1781_v38 = vpop.f32.mrb[51].mxu1 }
 0x13d   :  { %v5858_v39 = vmax.f32 %v1196_v25, %v1415_v18  ;;  %v1621_v44 = vadd.f32 %v5478_v50, %v1606_v0  ;;  %v1855_v40 = vadd.f32 %v5478_v50, %v1840_v30  ;;  %v1607_v42 = vmul.f32 %v5471_v48, %v1547_v36 }
 0x13e   :  { %v1638_v43 = vmax.f32 %v1623_v31, 0.0  ;;  %v1872_v47 = vmax.f32 %v1857_v22, 0.0  ;;  %v1624_v45 = vadd.f32 %v5478_v50, %v1609_v34  ;;  %v1858_v46 = vadd.f32 %v5478_v50, %v1843_v33 }
 0x13f   :  { %v1636_v41 = vmax.f32 %v1621_v44, 0.0  ;;  %v1870_v51 = vmax.f32 %v1855_v40, 0.0  ;;  %v1622_v52 = vadd.f32 %v5478_v50, %v1607_v42  ;;  %v1841_v2 = vmul.f32 %v5471_v48, %v1781_v38 }
 0x140   :  { %v1653_v54 = vmax.f32 %v5765_v57, %v1638_v43  ;;  %v1639_v55 = vmax.f32 %v1624_v45, 0.0  ;;  %v1873_v59 = vmax.f32 %v1858_v46, 0.0 }
 0x141   :  { %v1651_v56 = vmax.f32 %v5770_v12, %v1636_v41  ;;  %v1637_v62 = vmax.f32 %v1622_v52, 0.0  ;;  %v1856_v3 = vadd.f32 %v5478_v50, %v1841_v2  ;;  %v4627_v60 = vpop.f32.mrb[52].mxu0  ;;  %v4645_v1 = vpop.f32.mrb[52].mxu1 }
 0x142   :  { %v5870_v4 = vmax.f32 %v1653_v54, %v1872_v47  ;;  %v1654_v49 = vmax.f32 %v5774_v20, %v1639_v55  ;;  %v1612_v48 = vmul.f32 %v5876_v5, %v4627_v60  ;;  %v1846_v57 = vmul.f32 %v5876_v5, %v4645_v1  ;;  %v1560_v12 = vpop.f32.mrb[53].mxu0  ;;  %v1794_v8 = vpop.f32.mrb[53].mxu1 }
 0x143   :  { %v5880_v10 = vmax.f32 %v1651_v56, %v1870_v51  ;;  %v1652_v50 = vmax.f32 %v5779_v29, %v1637_v62  ;;  %v1871_v6 = vmax.f32 %v1856_v3, 0.0  ;;  %v1610_v11 = vmul.f32 %v5876_v5, %v1560_v12  ;;  %v4628_v63 = vpop.f32.mrb[54].mxu0  ;;  %v4646_v20 = vpop.f32.mrb[54].mxu1 }
 0x144   :  { %v5884_v19 = vmax.f32 %v1654_v49, %v1873_v59  ;;  %v1627_v15 = vadd.f32 %v5889_v9, %v1612_v48  ;;  %v1861_v17 = vadd.f32 %v5889_v9, %v1846_v57  ;;  %v1844_v18 = vmul.f32 %v5876_v5, %v1794_v8  ;;  %v1563_v24 = vpop.f32.mrb[55].mxu0  ;;  %v1797_v29 = vpop.f32.mrb[55].mxu1 }
 0x145   :  { %v5894_v27 = vmax.f32 %v1652_v50, %v1871_v6  ;;  %v1625_v13 = vadd.f32 %v5889_v9, %v1610_v11  ;;  %v1613_v26 = vmul.f32 %v5876_v5, %v4628_v63  ;;  %v1847_v25 = vmul.f32 %v5876_v5, %v4646_v20 }
 0x146   :  { %v1642_v0 = vmax.f32 %v1627_v15, 0.0  ;;  %v1876_v30 = vmax.f32 %v1861_v17, 0.0  ;;  %v1859_v32 = vadd.f32 %v5889_v9, %v1844_v18  ;;  %v1611_v21 = vmul.f32 %v5876_v5, %v1563_v24 }
 0x147   :  { %v1640_v31 = vmax.f32 %v1625_v13, 0.0  ;;  %v1628_v22 = vadd.f32 %v5889_v9, %v1613_v26  ;;  %v1862_v34 = vadd.f32 %v5889_v9, %v1847_v25  ;;  %v1845_v33 = vmul.f32 %v5876_v5, %v1797_v29 }
 0x148   :  { %v1657_v36 = vmax.f32 %v5793_v53, %v1642_v0  ;;  %v1874_v38 = vmax.f32 %v1859_v32, 0.0  ;;  %v1626_v44 = vadd.f32 %v5889_v9, %v1611_v21 }
 0x149   :  { %v1655_v40 = vmax.f32 %v5797_v61, %v1640_v31  ;;  %v1643_v42 = vmax.f32 %v1628_v22, 0.0  ;;  %v1877_v43 = vmax.f32 %v1862_v34, 0.0  ;;  %v1860_v47 = vadd.f32 %v5889_v9, %v1845_v33  ;;  %v4631_v45 = vpop.f32.mrb[56].mxu0  ;;  %v4649_v46 = vpop.f32.mrb[56].mxu1 }
 0x14a   :  { %v5908_v41 = vmax.f32 %v1657_v36, %v1876_v30  ;;  %v1641_v51 = vmax.f32 %v1626_v44, 0.0  ;;  %v1616_v52 = vmul.f32 %v5876_v5, %v4631_v45  ;;  %v1850_v2 = vmul.f32 %v5876_v5, %v4649_v46  ;;  %v1576_v54 = vpop.f32.mrb[57].mxu0  ;;  %v1810_v53 = vpop.f32.mrb[57].mxu1 }
 0x14b   :  { %v5912_v55 = vmax.f32 %v1655_v40, %v1874_v38  ;;  %v1658_v56 = vmax.f32 %v5805_v14, %v1643_v42  ;;  %v1875_v61 = vmax.f32 %v1860_v47, 0.0  ;;  %v1614_v59 = vmul.f32 %v5876_v5, %v1576_v54  ;;  %v4632_v62 = vpop.f32.mrb[58].mxu0  ;;  %v4650_v3 = vpop.f32.mrb[58].mxu1 }
 0x14c   :  { %v1656_v60 = vmax.f32 %v5810_v16, %v1641_v51  ;;  %v1631_v1 = vadd.f32 %v5889_v9, %v1616_v52  ;;  %v1865_v49 = vadd.f32 %v5889_v9, %v1850_v2  ;;  %v1848_v48 = vmul.f32 %v5876_v5, %v1810_v53  ;;  %v1579_v57 = vpop.f32.mrb[59].mxu0  ;;  %v1813_v12 = vpop.f32.mrb[59].mxu1 }
 0x14d   :  { %v5920_v8 = vmax.f32 %v1658_v56, %v1877_v43  ;;  %v1629_v50 = vadd.f32 %v5889_v9, %v1614_v59  ;;  %v1617_v14 = vmul.f32 %v5876_v5, %v4632_v62  ;;  %v1851_v6 = vmul.f32 %v5876_v5, %v4650_v3 }
 0x14e   :  { %v5925_v11 = vmax.f32 %v1656_v60, %v1875_v61  ;;  %v1646_v63 = vmax.f32 %v1631_v1, 0.0  ;;  %v1880_v16 = vmax.f32 %v1865_v49, 0.0  ;;  %v1863_v20 = vadd.f32 %v5889_v9, %v1848_v48 }
 0x14f   :  { %v1644_v15 = vmax.f32 %v1629_v50, 0.0  ;;  %v1632_v17 = vadd.f32 %v5889_v9, %v1617_v14  ;;  %v1866_v18 = vadd.f32 %v5889_v9, %v1851_v6  ;;  %v1615_v24 = vmul.f32 %v5876_v5, %v1579_v57 }
 0x150   :  { %v1661_v29 = vmax.f32 %v5820_v37, %v1646_v63  ;;  %v1878_v13 = vmax.f32 %v1863_v20, 0.0  ;;  %v1849_v26 = vmul.f32 %v5876_v5, %v1813_v12 }
 0x151   :  { %v1659_v25 = vmax.f32 %v5825_v35, %v1644_v15  ;;  %v1647_v0 = vmax.f32 %v1632_v17, 0.0  ;;  %v1881_v30 = vmax.f32 %v1866_v18, 0.0  ;;  %v1630_v32 = vadd.f32 %v5889_v9, %v1615_v24  ;;  %v4635_v21 = vpop.f32.mrb[60].mxu0  ;;  %v4653_v31 = vpop.f32.mrb[60].mxu1 }
 0x152   :  { %v5935_v22 = vmax.f32 %v1661_v29, %v1880_v16  ;;  %v1864_v34 = vadd.f32 %v5889_v9, %v1849_v26  ;;  %v1620_v33 = vmul.f32 %v5876_v5, %v4635_v21  ;;  %v1854_v36 = vmul.f32 %v5876_v5, %v4653_v31  ;;  %v1592_v37 = vpop.f32.mrb[61].mxu0  ;;  %v1826_v38 = vpop.f32.mrb[61].mxu1 }
 0x153   :  { %v5940_v44 = vmax.f32 %v1659_v25, %v1878_v13  ;;  %v1662_v35 = vmax.f32 %v5832_v58, %v1647_v0  ;;  %v1645_v40 = vmax.f32 %v1630_v32, 0.0  ;;  %v1618_v42 = vmul.f32 %v5876_v5, %v1592_v37  ;;  %v4636_v43 = vpop.f32.mrb[62].mxu0  ;;  %v4654_v47 = vpop.f32.mrb[62].mxu1 }
 0x154   :  { %v1879_v45 = vmax.f32 %v1864_v34, 0.0  ;;  %v1635_v46 = vadd.f32 %v5889_v9, %v1620_v33  ;;  %v1869_v51 = vadd.f32 %v5889_v9, %v1854_v36  ;;  %v1852_v52 = vmul.f32 %v5876_v5, %v1826_v38  ;;  %v1595_v2 = vpop.f32.mrb[63].mxu0  ;;  %v1829_v54 = vpop.f32.mrb[63].mxu1 }
 0x155   :  { %v5947_v53 = vmax.f32 %v1662_v35, %v1881_v30  ;;  %v1660_v56 = vmax.f32 %v5839_v7, %v1645_v40  ;;  %v1633_v58 = vadd.f32 %v5889_v9, %v1618_v42  ;;  %v1619_v61 = vmul.f32 %v5876_v5, %v1595_v2 }
 0x156   :  { %v1650_v59 = vmax.f32 %v1635_v46, 0.0  ;;  %v1884_v62 = vmax.f32 %v1869_v51, 0.0  ;;  %v1867_v3 = vadd.f32 %v5889_v9, %v1852_v52  ;;  %v1853_v60 = vmul.f32 %v5876_v5, %v1829_v54 }
 0x157   :  { %v5954_v1 = vmax.f32 %v1660_v56, %v1879_v45  ;;  %v1648_v49 = vmax.f32 %v1633_v58, 0.0  ;;  %v1634_v48 = vadd.f32 %v5889_v9, %v1619_v61 }
 0x158   :  { %v1665_v57 = vmax.f32 %v5845_v23, %v1650_v59  ;;  %v1882_v12 = vmax.f32 %v1867_v3, 0.0  ;;  %v1868_v7 = vadd.f32 %v5889_v9, %v1853_v60 }
 0x159   :  { %v1663_v50 = vmax.f32 %v5849_v28, %v1648_v49  ;;  %v1649_v14 = vmax.f32 %v1634_v48, 0.0  ;;  %v4659_v6 = vpop.f32.mrb[64].mxu0  ;;  %v4677_v63 = vpop.f32.mrb[64].mxu1 }
 0x15a   :  { %v5960_v16 = vmax.f32 %v1665_v57, %v1884_v62  ;;  %v1883_v20 = vmax.f32 %v1868_v7, 0.0  ;;  %v2076_v15 = vmul.f32 %v5876_v5, %v4659_v6  ;;  %v2310_v17 = vmul.f32 %v5876_v5, %v4677_v63  ;;  %v2012_v18 = vpop.f32.mrb[65].mxu0  ;;  %v2246_v24 = vpop.f32.mrb[65].mxu1 }
 0x15b   :  { %v5964_v29 = vmax.f32 %v1663_v50, %v1882_v12  ;;  %v1664_v23 = vmax.f32 %v5858_v39, %v1649_v14  ;;  %v2074_v13 = vmul.f32 %v5876_v5, %v2012_v18  ;;  %v2308_v28 = vmul.f32 %v5876_v5, %v2246_v24  ;;  %v4660_v26 = vpop.f32.mrb[66].mxu0  ;;  %v4678_v25 = vpop.f32.mrb[66].mxu1 }
 0x15c   :  { %v2091_v0 = vadd.f32 %v5889_v9, %v2076_v15  ;;  %v2325_v30 = vadd.f32 %v5889_v9, %v2310_v17  ;;  %v2077_v32 = vmul.f32 %v5876_v5, %v4660_v26  ;;  %v2311_v21 = vmul.f32 %v5876_v5, %v4678_v25  ;;  %v2015_v31 = vpop.f32.mrb[67].mxu0  ;;  %v2249_v34 = vpop.f32.mrb[67].mxu1 }
 0x15d   :  { %v5973_v33 = vmax.f32 %v1664_v23, %v1883_v20  ;;  %v2089_v39 = vadd.f32 %v5889_v9, %v2074_v13  ;;  %v2323_v36 = vadd.f32 %v5889_v9, %v2308_v28  ;;  %v2075_v37 = vmul.f32 %v5876_v5, %v2015_v31 }
 0x15e   :  { %v2106_v38 = vmax.f32 %v2091_v0, 0.0  ;;  %v2340_v35 = vmax.f32 %v2325_v30, 0.0  ;;  %v2092_v40 = vadd.f32 %v5889_v9, %v2077_v32  ;;  %v2326_v42 = vadd.f32 %v5889_v9, %v2311_v21 }
 0x15f   :  { %v2104_v43 = vmax.f32 %v2089_v39, 0.0  ;;  %v2338_v47 = vmax.f32 %v2323_v36, 0.0  ;;  %v2090_v45 = vadd.f32 %v5889_v9, %v2075_v37  ;;  %v2309_v46 = vmul.f32 %v5876_v5, %v2249_v34 }
 0x160   :  { %v2121_v51 = vmax.f32 %v5870_v4, %v2106_v38  ;;  %v2107_v52 = vmax.f32 %v2092_v40, 0.0  ;;  %v2341_v54 = vmax.f32 %v2326_v42, 0.0 }
 0x161   :  { %v2119_v2 = vmax.f32 %v5880_v10, %v2104_v43  ;;  %v2105_v56 = vmax.f32 %v2090_v45, 0.0  ;;  %v2324_v58 = vadd.f32 %v5889_v9, %v2309_v46  ;;  %v4663_v61 = vpop.f32.mrb[68].mxu0  ;;  %v4681_v59 = vpop.f32.mrb[68].mxu1 }
 0x162   :  { %v5985_v62 = vmax.f32 %v2121_v51, %v2340_v35  ;;  %v2122_v3 = vmax.f32 %v5884_v19, %v2107_v52  ;;  %v2080_v60 = vmul.f32 %v5876_v5, %v4663_v61  ;;  %v2314_v49 = vmul.f32 %v5876_v5, %v4681_v59  ;;  %v2028_v48 = vpop.f32.mrb[69].mxu0  ;;  %v2262_v57 = vpop.f32.mrb[69].mxu1 }
 0x163   :  { %v5990_v4 = vmax.f32 %v2119_v2, %v2338_v47  ;;  %v2120_v10 = vmax.f32 %v5894_v27, %v2105_v56  ;;  %v2339_v12 = vmax.f32 %v2324_v58, 0.0  ;;  %v2078_v7 = vmul.f32 %v5876_v5, %v2028_v48  ;;  %v4664_v50 = vpop.f32.mrb[70].mxu0  ;;  %v4682_v14 = vpop.f32.mrb[70].mxu1 }
 0x164   :  { %v5994_v6 = vmax.f32 %v2122_v3, %v2341_v54  ;;  %v2095_v63 = vadd.f32 %v5889_v9, %v2080_v60  ;;  %v2329_v19 = vadd.f32 %v5889_v9, %v2314_v49  ;;  %v2312_v20 = vmul.f32 %v5876_v5, %v2262_v57  ;;  %v2031_v15 = vpop.f32.mrb[71].mxu0  ;;  %v2265_v17 = vpop.f32.mrb[71].mxu1 }
 0x165   :  { %v5999_v18 = vmax.f32 %v2120_v10, %v2339_v12  ;;  %v2093_v24 = vadd.f32 %v5889_v9, %v2078_v7  ;;  %v2081_v27 = vmul.f32 %v5876_v5, %v4664_v50  ;;  %v2315_v23 = vmul.f32 %v5876_v5, %v4682_v14 }
 0x166   :  { %v2110_v13 = vmax.f32 %v2095_v63, 0.0  ;;  %v2344_v28 = vmax.f32 %v2329_v19, 0.0  ;;  %v2327_v26 = vadd.f32 %v5889_v9, %v2312_v20  ;;  %v2079_v25 = vmul.f32 %v5876_v5, %v2031_v15 }
 0x167   :  { %v2108_v0 = vmax.f32 %v2093_v24, 0.0  ;;  %v2096_v30 = vadd.f32 %v5889_v9, %v2081_v27  ;;  %v2330_v32 = vadd.f32 %v5889_v9, %v2315_v23  ;;  %v2313_v21 = vmul.f32 %v5876_v5, %v2265_v17 }
 0x168   :  { %v2125_v31 = vmax.f32 %v5908_v41, %v2110_v13  ;;  %v2342_v34 = vmax.f32 %v2327_v26, 0.0  ;;  %v2094_v39 = vadd.f32 %v5889_v9, %v2079_v25 }
 0x169   :  { %v2123_v36 = vmax.f32 %v5912_v55, %v2108_v0  ;;  %v2111_v37 = vmax.f32 %v2096_v30, 0.0  ;;  %v2345_v38 = vmax.f32 %v2330_v32, 0.0  ;;  %v2328_v35 = vadd.f32 %v5889_v9, %v2313_v21  ;;  %v4667_v40 = vpop.f32.mrb[72].mxu0  ;;  %v4685_v42 = vpop.f32.mrb[72].mxu1 }
 0x16a   :  { %v6013_v43 = vmax.f32 %v2125_v31, %v2344_v28  ;;  %v2109_v47 = vmax.f32 %v2094_v39, 0.0  ;;  %v2084_v45 = vmul.f32 %v5876_v5, %v4667_v40  ;;  %v2318_v46 = vmul.f32 %v5876_v5, %v4685_v42  ;;  %v2044_v51 = vpop.f32.mrb[73].mxu0  ;;  %v2278_v41 = vpop.f32.mrb[73].mxu1 }
 0x16b   :  { %v6017_v52 = vmax.f32 %v2123_v36, %v2342_v34  ;;  %v2126_v2 = vmax.f32 %v5920_v8, %v2111_v37  ;;  %v2343_v55 = vmax.f32 %v2328_v35, 0.0  ;;  %v2082_v54 = vmul.f32 %v5876_v5, %v2044_v51  ;;  %v4668_v56 = vpop.f32.mrb[74].mxu0  ;;  %v4686_v58 = vpop.f32.mrb[74].mxu1 }
 0x16c   :  { %v2124_v61 = vmax.f32 %v5925_v11, %v2109_v47  ;;  %v2099_v59 = vadd.f32 %v5889_v9, %v2084_v45  ;;  %v2333_v3 = vadd.f32 %v5889_v9, %v2318_v46  ;;  %v2316_v60 = vmul.f32 %v5876_v5, %v2278_v41  ;;  %v2047_v49 = vpop.f32.mrb[75].mxu0  ;;  %v2281_v48 = vpop.f32.mrb[75].mxu1 }
 0x16d   :  { %v6025_v57 = vmax.f32 %v2126_v2, %v2345_v38  ;;  %v2097_v10 = vadd.f32 %v5889_v9, %v2082_v54  ;;  %v2085_v8 = vmul.f32 %v5876_v5, %v4668_v56  ;;  %v2319_v12 = vmul.f32 %v5876_v5, %v4686_v58 }
 0x16e   :  { %v6030_v7 = vmax.f32 %v2124_v61, %v2343_v55  ;;  %v2114_v50 = vmax.f32 %v2099_v59, 0.0  ;;  %v2348_v11 = vmax.f32 %v2333_v3, 0.0  ;;  %v2331_v14 = vadd.f32 %v5889_v9, %v2316_v60 }
 0x16f   :  { %v2112_v63 = vmax.f32 %v2097_v10, 0.0  ;;  %v2100_v19 = vadd.f32 %v5889_v9, %v2085_v8  ;;  %v2334_v20 = vadd.f32 %v5889_v9, %v2319_v12  ;;  %v2083_v15 = vmul.f32 %v5876_v5, %v2047_v49 }
 0x170   :  { %v2129_v17 = vmax.f32 %v5935_v22, %v2114_v50  ;;  %v2346_v24 = vmax.f32 %v2331_v14, 0.0  ;;  %v2317_v27 = vmul.f32 %v5876_v5, %v2281_v48 }
 0x171   :  { %v2127_v23 = vmax.f32 %v5940_v44, %v2112_v63  ;;  %v2115_v13 = vmax.f32 %v2100_v19, 0.0  ;;  %v2349_v28 = vmax.f32 %v2334_v20, 0.0  ;;  %v2098_v26 = vadd.f32 %v5889_v9, %v2083_v15  ;;  %v4671_v25 = vpop.f32.mrb[76].mxu0  ;;  %v4689_v0 = vpop.f32.mrb[76].mxu1 }
 0x172   :  { %v6040_v30 = vmax.f32 %v2129_v17, %v2348_v11  ;;  %v2332_v32 = vadd.f32 %v5889_v9, %v2317_v27  ;;  %v2088_v21 = vmul.f32 %v5876_v5, %v4671_v25  ;;  %v2322_v31 = vmul.f32 %v5876_v5, %v4689_v0  ;;  %v2060_v22 = vpop.f32.mrb[77].mxu0  ;;  %v2294_v34 = vpop.f32.mrb[77].mxu1 }
 0x173   :  { %v6045_v39 = vmax.f32 %v2127_v23, %v2346_v24  ;;  %v2130_v44 = vmax.f32 %v5947_v53, %v2115_v13  ;;  %v2113_v36 = vmax.f32 %v2098_v26, 0.0  ;;  %v2086_v37 = vmul.f32 %v5876_v5, %v2060_v22  ;;  %v4672_v38 = vpop.f32.mrb[78].mxu0  ;;  %v4690_v35 = vpop.f32.mrb[78].mxu1 }
 0x174   :  { %v2347_v40 = vmax.f32 %v2332_v32, 0.0  ;;  %v2103_v42 = vadd.f32 %v5889_v9, %v2088_v21  ;;  %v2337_v47 = vadd.f32 %v5889_v9, %v2322_v31  ;;  %v2320_v45 = vmul.f32 %v5876_v5, %v2294_v34  ;;  %v2063_v46 = vpop.f32.mrb[79].mxu0  ;;  %v2297_v51 = vpop.f32.mrb[79].mxu1 }
 0x175   :  { %v6052_v41 = vmax.f32 %v2130_v44, %v2349_v28  ;;  %v2128_v2 = vmax.f32 %v5954_v1, %v2113_v36  ;;  %v2101_v53 = vadd.f32 %v5889_v9, %v2086_v37  ;;  %v2087_v55 = vmul.f32 %v5876_v5, %v2063_v46 }
 0x176   :  { %v2118_v54 = vmax.f32 %v2103_v42, 0.0  ;;  %v2352_v56 = vmax.f32 %v2337_v47, 0.0  ;;  %v2335_v58 = vadd.f32 %v5889_v9, %v2320_v45  ;;  %v2321_v61 = vmul.f32 %v5876_v5, %v2297_v51 }
 0x177   :  { %v6059_v59 = vmax.f32 %v2128_v2, %v2347_v40  ;;  %v2116_v3 = vmax.f32 %v2101_v53, 0.0  ;;  %v2102_v60 = vadd.f32 %v5889_v9, %v2087_v55 }
 0x178   :  { %v2133_v49 = vmax.f32 %v5960_v16, %v2118_v54  ;;  %v2350_v48 = vmax.f32 %v2335_v58, 0.0  ;;  %v2336_v1 = vadd.f32 %v5889_v9, %v2321_v61 }
 0x179   :  { %v2131_v10 = vmax.f32 %v5964_v29, %v2116_v3  ;;  %v2117_v8 = vmax.f32 %v2102_v60, 0.0  ;;  %v4695_v12 = vpop.f32.mrb[80].mxu0  ;;  %v4713_v50 = vpop.f32.mrb[80].mxu1 }
 0x17a   :  { %v6065_v11 = vmax.f32 %v2133_v49, %v2352_v56  ;;  %v2351_v14 = vmax.f32 %v2336_v1, 0.0  ;;  %v2544_v63 = vmul.f32 %v5876_v5, %v4695_v12  ;;  %v2778_v19 = vmul.f32 %v5876_v5, %v4713_v50  ;;  %v2480_v20 = vpop.f32.mrb[81].mxu0  ;;  %v2714_v15 = vpop.f32.mrb[81].mxu1 }
 0x17b   :  { %v6069_v17 = vmax.f32 %v2131_v10, %v2350_v48  ;;  %v2132_v16 = vmax.f32 %v5973_v33, %v2117_v8  ;;  %v2542_v24 = vmul.f32 %v5876_v5, %v2480_v20  ;;  %v2776_v29 = vmul.f32 %v5876_v5, %v2714_v15  ;;  %v4696_v27 = vpop.f32.mrb[82].mxu0  ;;  %v4714_v23 = vpop.f32.mrb[82].mxu1 }
 0x17c   :  { %v2559_v13 = vadd.f32 %v5889_v9, %v2544_v63  ;;  %v2793_v28 = vadd.f32 %v5889_v9, %v2778_v19  ;;  %v2545_v26 = vmul.f32 %v5876_v5, %v4696_v27  ;;  %v2779_v25 = vmul.f32 %v5876_v5, %v4714_v23  ;;  %v2483_v0 = vpop.f32.mrb[83].mxu0  ;;  %v2717_v32 = vpop.f32.mrb[83].mxu1 }
 0x17d   :  { %v6078_v21 = vmax.f32 %v2132_v16, %v2351_v14  ;;  %v2557_v33 = vadd.f32 %v5889_v9, %v2542_v24  ;;  %v2791_v31 = vadd.f32 %v5889_v9, %v2776_v29  ;;  %v2543_v22 = vmul.f32 %v5876_v5, %v2483_v0 }
 0x17e   :  { %v2574_v34 = vmax.f32 %v2559_v13, 0.0  ;;  %v2808_v44 = vmax.f32 %v2793_v28, 0.0  ;;  %v2560_v36 = vadd.f32 %v5889_v9, %v2545_v26  ;;  %v2794_v37 = vadd.f32 %v5889_v9, %v2779_v25 }
 0x17f   :  { %v2572_v38 = vmax.f32 %v2557_v33, 0.0  ;;  %v2806_v35 = vmax.f32 %v2791_v31, 0.0  ;;  %v2558_v40 = vadd.f32 %v5889_v9, %v2543_v22  ;;  %v2777_v42 = vmul.f32 %v5876_v5, %v2717_v32 }
 0x180   :  { %v2589_v47 = vmax.f32 %v5985_v62, %v2574_v34  ;;  %v2575_v45 = vmax.f32 %v2560_v36, 0.0  ;;  %v2809_v51 = vmax.f32 %v2794_v37, 0.0 }
 0x181   :  { %v2587_v46 = vmax.f32 %v5990_v4, %v2572_v38  ;;  %v2573_v2 = vmax.f32 %v2558_v40, 0.0  ;;  %v2792_v53 = vadd.f32 %v5889_v9, %v2777_v42  ;;  %v4699_v55 = vpop.f32.mrb[84].mxu0  ;;  %v4717_v54 = vpop.f32.mrb[84].mxu1 }
 0x182   :  { %v6090_v56 = vmax.f32 %v2589_v47, %v2808_v44  ;;  %v2590_v58 = vmax.f32 %v5994_v6, %v2575_v45  ;;  %v2548_v61 = vmul.f32 %v5876_v5, %v4699_v55  ;;  %v2782_v3 = vmul.f32 %v5876_v5, %v4717_v54  ;;  %v2496_v60 = vpop.f32.mrb[85].mxu0  ;;  %v2730_v49 = vpop.f32.mrb[85].mxu1 }
 0x183   :  { %v6095_v62 = vmax.f32 %v2587_v46, %v2806_v35  ;;  %v2588_v4 = vmax.f32 %v5999_v18, %v2573_v2  ;;  %v2807_v48 = vmax.f32 %v2792_v53, 0.0  ;;  %v2546_v1 = vmul.f32 %v5876_v5, %v2496_v60  ;;  %v4700_v10 = vpop.f32.mrb[86].mxu0  ;;  %v4718_v8 = vpop.f32.mrb[86].mxu1 }
 0x184   :  { %v6099_v12 = vmax.f32 %v2590_v58, %v2809_v51  ;;  %v2563_v50 = vadd.f32 %v5889_v9, %v2548_v61  ;;  %v2797_v6 = vadd.f32 %v5889_v9, %v2782_v3  ;;  %v2780_v14 = vmul.f32 %v5876_v5, %v2730_v49  ;;  %v2499_v63 = vpop.f32.mrb[87].mxu0  ;;  %v2733_v19 = vpop.f32.mrb[87].mxu1 }
 0x185   :  { %v6104_v20 = vmax.f32 %v2588_v4, %v2807_v48  ;;  %v2561_v15 = vadd.f32 %v5889_v9, %v2546_v1  ;;  %v2549_v18 = vmul.f32 %v5876_v5, %v4700_v10  ;;  %v2783_v16 = vmul.f32 %v5876_v5, %v4718_v8 }
 0x186   :  { %v2578_v24 = vmax.f32 %v2563_v50, 0.0  ;;  %v2812_v29 = vmax.f32 %v2797_v6, 0.0  ;;  %v2795_v27 = vadd.f32 %v5889_v9, %v2780_v14  ;;  %v2547_v23 = vmul.f32 %v5876_v5, %v2499_v63 }
 0x187   :  { %v2576_v13 = vmax.f32 %v2561_v15, 0.0  ;;  %v2564_v28 = vadd.f32 %v5889_v9, %v2549_v18  ;;  %v2798_v26 = vadd.f32 %v5889_v9, %v2783_v16  ;;  %v2781_v25 = vmul.f32 %v5876_v5, %v2733_v19 }
 0x188   :  { %v2593_v0 = vmax.f32 %v6013_v43, %v2578_v24  ;;  %v2810_v32 = vmax.f32 %v2795_v27, 0.0  ;;  %v2562_v33 = vadd.f32 %v5889_v9, %v2547_v23 }
 0x189   :  { %v2591_v31 = vmax.f32 %v6017_v52, %v2576_v13  ;;  %v2579_v22 = vmax.f32 %v2564_v28, 0.0  ;;  %v2813_v34 = vmax.f32 %v2798_v26, 0.0  ;;  %v2796_v44 = vadd.f32 %v5889_v9, %v2781_v25  ;;  %v4703_v36 = vpop.f32.mrb[88].mxu0  ;;  %v4721_v37 = vpop.f32.mrb[88].mxu1 }
 0x18a   :  { %v6118_v38 = vmax.f32 %v2593_v0, %v2812_v29  ;;  %v2577_v35 = vmax.f32 %v2562_v33, 0.0  ;;  %v2552_v40 = vmul.f32 %v5876_v5, %v4703_v36  ;;  %v2786_v42 = vmul.f32 %v5876_v5, %v4721_v37  ;;  %v2512_v47 = vpop.f32.mrb[89].mxu0  ;;  %v2746_v43 = vpop.f32.mrb[89].mxu1 }
 0x18b   :  { %v6122_v45 = vmax.f32 %v2591_v31, %v2810_v32  ;;  %v2594_v46 = vmax.f32 %v6025_v57, %v2579_v22  ;;  %v2811_v52 = vmax.f32 %v2796_v44, 0.0  ;;  %v2550_v51 = vmul.f32 %v5876_v5, %v2512_v47  ;;  %v4704_v2 = vpop.f32.mrb[90].mxu0  ;;  %v4722_v53 = vpop.f32.mrb[90].mxu1 }
 0x18c   :  { %v2592_v55 = vmax.f32 %v6030_v7, %v2577_v35  ;;  %v2567_v54 = vadd.f32 %v5889_v9, %v2552_v40  ;;  %v2801_v58 = vadd.f32 %v5889_v9, %v2786_v42  ;;  %v2784_v61 = vmul.f32 %v5876_v5, %v2746_v43  ;;  %v2515_v3 = vpop.f32.mrb[91].mxu0  ;;  %v2749_v60 = vpop.f32.mrb[91].mxu1 }
 0x18d   :  { %v6130_v49 = vmax.f32 %v2594_v46, %v2813_v34  ;;  %v2565_v4 = vadd.f32 %v5889_v9, %v2550_v51  ;;  %v2553_v57 = vmul.f32 %v5876_v5, %v4704_v2  ;;  %v2787_v48 = vmul.f32 %v5876_v5, %v4722_v53 }
 0x18e   :  { %v6135_v1 = vmax.f32 %v2592_v55, %v2811_v52  ;;  %v2582_v10 = vmax.f32 %v2567_v54, 0.0  ;;  %v2816_v7 = vmax.f32 %v2801_v58, 0.0  ;;  %v2799_v8 = vadd.f32 %v5889_v9, %v2784_v61 }
 0x18f   :  { %v2580_v50 = vmax.f32 %v2565_v4, 0.0  ;;  %v2568_v6 = vadd.f32 %v5889_v9, %v2553_v57  ;;  %v2802_v14 = vadd.f32 %v5889_v9, %v2787_v48  ;;  %v2551_v63 = vmul.f32 %v5876_v5, %v2515_v3 }
 0x190   :  { %v2597_v19 = vmax.f32 %v6040_v30, %v2582_v10  ;;  %v2814_v15 = vmax.f32 %v2799_v8, 0.0  ;;  %v2785_v18 = vmul.f32 %v5876_v5, %v2749_v60 }
 0x191   :  { %v2595_v16 = vmax.f32 %v6045_v39, %v2580_v50  ;;  %v2583_v24 = vmax.f32 %v2568_v6, 0.0  ;;  %v2817_v29 = vmax.f32 %v2802_v14, 0.0  ;;  %v2566_v27 = vadd.f32 %v5889_v9, %v2551_v63  ;;  %v4707_v23 = vpop.f32.mrb[92].mxu0  ;;  %v4725_v13 = vpop.f32.mrb[92].mxu1 }
 0x192   :  { %v6145_v28 = vmax.f32 %v2597_v19, %v2816_v7  ;;  %v2800_v26 = vadd.f32 %v5889_v9, %v2785_v18  ;;  %v2556_v25 = vmul.f32 %v5876_v5, %v4707_v23  ;;  %v2790_v0 = vmul.f32 %v5876_v5, %v4725_v13  ;;  %v2528_v30 = vpop.f32.mrb[93].mxu0  ;;  %v2762_v32 = vpop.f32.mrb[93].mxu1 }
 0x193   :  { %v6150_v33 = vmax.f32 %v2595_v16, %v2814_v15  ;;  %v2598_v39 = vmax.f32 %v6052_v41, %v2583_v24  ;;  %v2581_v31 = vmax.f32 %v2566_v27, 0.0  ;;  %v2554_v22 = vmul.f32 %v5876_v5, %v2528_v30  ;;  %v4708_v34 = vpop.f32.mrb[94].mxu0  ;;  %v4726_v44 = vpop.f32.mrb[94].mxu1 }
 0x194   :  { %v2815_v36 = vmax.f32 %v2800_v26, 0.0  ;;  %v2571_v37 = vadd.f32 %v5889_v9, %v2556_v25  ;;  %v2805_v35 = vadd.f32 %v5889_v9, %v2790_v0  ;;  %v2788_v40 = vmul.f32 %v5876_v5, %v2762_v32  ;;  %v2531_v42 = vpop.f32.mrb[95].mxu0  ;;  %v2765_v47 = vpop.f32.mrb[95].mxu1 }
 0x195   :  { %v6157_v43 = vmax.f32 %v2598_v39, %v2817_v29  ;;  %v2596_v46 = vmax.f32 %v6059_v59, %v2581_v31  ;;  %v2569_v41 = vadd.f32 %v5889_v9, %v2554_v22  ;;  %v2555_v52 = vmul.f32 %v5876_v5, %v2531_v42 }
 0x196   :  { %v2586_v51 = vmax.f32 %v2571_v37, 0.0  ;;  %v2820_v2 = vmax.f32 %v2805_v35, 0.0  ;;  %v2803_v53 = vadd.f32 %v5889_v9, %v2788_v40  ;;  %v2789_v55 = vmul.f32 %v5876_v5, %v2765_v47 }
 0x197   :  { %v6164_v54 = vmax.f32 %v2596_v46, %v2815_v36  ;;  %v2584_v58 = vmax.f32 %v2569_v41, 0.0  ;;  %v2570_v61 = vadd.f32 %v5889_v9, %v2555_v52 }
 0x198   :  { %v2601_v3 = vmax.f32 %v6065_v11, %v2586_v51  ;;  %v2818_v60 = vmax.f32 %v2803_v53, 0.0  ;;  %v2804_v59 = vadd.f32 %v5889_v9, %v2789_v55 }
 0x199   :  { %v2599_v4 = vmax.f32 %v6069_v17, %v2584_v58  ;;  %v2585_v57 = vmax.f32 %v2570_v61, 0.0  ;;  %v4731_v48 = vpop.f32.mrb[96].mxu0  ;;  %v4749_v10 = vpop.f32.mrb[96].mxu1 }
 0x19a   :  { %v6170_v7 = vmax.f32 %v2601_v3, %v2820_v2  ;;  %v2819_v8 = vmax.f32 %v2804_v59, 0.0  ;;  %v3012_v50 = vmul.f32 %v5876_v5, %v4731_v48  ;;  %v3246_v6 = vmul.f32 %v5876_v5, %v4749_v10  ;;  %v2948_v14 = vpop.f32.mrb[97].mxu0  ;;  %v3182_v63 = vpop.f32.mrb[97].mxu1 }
 0x19b   :  { %v6174_v19 = vmax.f32 %v2599_v4, %v2818_v60  ;;  %v2600_v11 = vmax.f32 %v6078_v21, %v2585_v57  ;;  %v3010_v15 = vmul.f32 %v5876_v5, %v2948_v14  ;;  %v3244_v17 = vmul.f32 %v5876_v5, %v3182_v63  ;;  %v4732_v18 = vpop.f32.mrb[98].mxu0  ;;  %v4750_v16 = vpop.f32.mrb[98].mxu1 }
 0x19c   :  { %v3027_v24 = vadd.f32 %v5889_v9, %v3012_v50  ;;  %v3261_v29 = vadd.f32 %v5889_v9, %v3246_v6  ;;  %v3013_v27 = vmul.f32 %v5876_v5, %v4732_v18  ;;  %v3247_v23 = vmul.f32 %v5876_v5, %v4750_v16  ;;  %v2951_v13 = vpop.f32.mrb[99].mxu0  ;;  %v3185_v26 = vpop.f32.mrb[99].mxu1 }
 0x19d   :  { %v6183_v25 = vmax.f32 %v2600_v11, %v2819_v8  ;;  %v3025_v21 = vadd.f32 %v5889_v9, %v3010_v15  ;;  %v3259_v0 = vadd.f32 %v5889_v9, %v3244_v17  ;;  %v3011_v30 = vmul.f32 %v5876_v5, %v2951_v13 }
 0x19e   :  { %v3042_v32 = vmax.f32 %v3027_v24, 0.0  ;;  %v3276_v39 = vmax.f32 %v3261_v29, 0.0  ;;  %v3028_v31 = vadd.f32 %v5889_v9, %v3013_v27  ;;  %v3262_v22 = vadd.f32 %v5889_v9, %v3247_v23 }
 0x19f   :  { %v3040_v34 = vmax.f32 %v3025_v21, 0.0  ;;  %v3274_v44 = vmax.f32 %v3259_v0, 0.0  ;;  %v3026_v36 = vadd.f32 %v5889_v9, %v3011_v30  ;;  %v3245_v37 = vmul.f32 %v5876_v5, %v3185_v26 }
 0x1a0   :  { %v3057_v35 = vmax.f32 %v6090_v56, %v3042_v32  ;;  %v3043_v40 = vmax.f32 %v3028_v31, 0.0  ;;  %v3277_v47 = vmax.f32 %v3262_v22, 0.0 }
 0x1a1   :  { %v3055_v42 = vmax.f32 %v6095_v62, %v3040_v34  ;;  %v3041_v46 = vmax.f32 %v3026_v36, 0.0  ;;  %v3260_v41 = vadd.f32 %v5889_v9, %v3245_v37  ;;  %v4735_v52 = vpop.f32.mrb[100].mxu0  ;;  %v4753_v51 = vpop.f32.mrb[100].mxu1 }
 0x1a2   :  { %v6195_v2 = vmax.f32 %v3057_v35, %v3276_v39  ;;  %v3058_v53 = vmax.f32 %v6099_v12, %v3043_v40  ;;  %v3016_v55 = vmul.f32 %v5876_v5, %v4735_v52  ;;  %v3250_v58 = vmul.f32 %v5876_v5, %v4753_v51  ;;  %v2964_v61 = vpop.f32.mrb[101].mxu0  ;;  %v3198_v3 = vpop.f32.mrb[101].mxu1 }
 0x1a3   :  { %v6200_v56 = vmax.f32 %v3055_v42, %v3274_v44  ;;  %v3056_v62 = vmax.f32 %v6104_v20, %v3041_v46  ;;  %v3275_v60 = vmax.f32 %v3260_v41, 0.0  ;;  %v3014_v59 = vmul.f32 %v5876_v5, %v2964_v61  ;;  %v4736_v4 = vpop.f32.mrb[102].mxu0  ;;  %v4754_v57 = vpop.f32.mrb[102].mxu1 }
 0x1a4   :  { %v6204_v48 = vmax.f32 %v3058_v53, %v3277_v47  ;;  %v3031_v10 = vadd.f32 %v5889_v9, %v3016_v55  ;;  %v3265_v12 = vadd.f32 %v5889_v9, %v3250_v58  ;;  %v3248_v8 = vmul.f32 %v5876_v5, %v3198_v3  ;;  %v2967_v50 = vpop.f32.mrb[103].mxu0  ;;  %v3201_v6 = vpop.f32.mrb[103].mxu1 }
 0x1a5   :  { %v6209_v14 = vmax.f32 %v3056_v62, %v3275_v60  ;;  %v3029_v63 = vadd.f32 %v5889_v9, %v3014_v59  ;;  %v3017_v20 = vmul.f32 %v5876_v5, %v4736_v4  ;;  %v3251_v11 = vmul.f32 %v5876_v5, %v4754_v57 }
 0x1a6   :  { %v3046_v15 = vmax.f32 %v3031_v10, 0.0  ;;  %v3280_v17 = vmax.f32 %v3265_v12, 0.0  ;;  %v3263_v18 = vadd.f32 %v5889_v9, %v3248_v8  ;;  %v3015_v16 = vmul.f32 %v5876_v5, %v2967_v50 }
 0x1a7   :  { %v3044_v24 = vmax.f32 %v3029_v63, 0.0  ;;  %v3032_v29 = vadd.f32 %v5889_v9, %v3017_v20  ;;  %v3266_v27 = vadd.f32 %v5889_v9, %v3251_v11  ;;  %v3249_v23 = vmul.f32 %v5876_v5, %v3201_v6 }
 0x1a8   :  { %v3061_v13 = vmax.f32 %v6118_v38, %v3046_v15  ;;  %v3278_v26 = vmax.f32 %v3263_v18, 0.0  ;;  %v3030_v21 = vadd.f32 %v5889_v9, %v3015_v16  ;;  %v6257_v18 = vld [vmem:[%s6430_s3] ss:$0 sm:$0xff] }
 0x1a9   :  { %v3059_v0 = vmax.f32 %v6122_v45, %v3044_v24  ;;  %v3047_v30 = vmax.f32 %v3032_v29, 0.0  ;;  %v3281_v32 = vmax.f32 %v3266_v27, 0.0  ;;  %v3264_v39 = vadd.f32 %v5889_v9, %v3249_v23  ;;  %v4739_v31 = vpop.f32.mrb[104].mxu0  ;;  %v4757_v22 = vpop.f32.mrb[104].mxu1 }
 0x1aa   :  { %v6223_v34 = vmax.f32 %v3061_v13, %v3280_v17  ;;  %v3045_v44 = vmax.f32 %v3030_v21, 0.0  ;;  %v3020_v36 = vmul.f32 %v5876_v5, %v4739_v31  ;;  %v3254_v37 = vmul.f32 %v5876_v5, %v4757_v22  ;;  %v2980_v35 = vpop.f32.mrb[105].mxu0  ;;  %v3214_v38 = vpop.f32.mrb[105].mxu1 }
 0x1ab   :  { %v6227_v40 = vmax.f32 %v3059_v0, %v3278_v26  ;;  %v3062_v42 = vmax.f32 %v6130_v49, %v3047_v30  ;;  %v3279_v45 = vmax.f32 %v3264_v39, 0.0  ;;  %v3018_v47 = vmul.f32 %v5876_v5, %v2980_v35  ;;  %v4740_v46 = vpop.f32.mrb[106].mxu0  ;;  %v4758_v41 = vpop.f32.mrb[106].mxu1  ;;  %v6241_v49 = vld [vmem:[%s6429_s2] ss:$0 sm:$0xff] }
 0x1ac   :  { %v3060_v52 = vmax.f32 %v6135_v1, %v3045_v44  ;;  %v3035_v51 = vadd.f32 %v5889_v9, %v3020_v36  ;;  %v3269_v53 = vadd.f32 %v5889_v9, %v3254_v37  ;;  %v3252_v55 = vmul.f32 %v5876_v5, %v3214_v38  ;;  %v2983_v58 = vpop.f32.mrb[107].mxu0  ;;  %v3217_v61 = vpop.f32.mrb[107].mxu1 }
 0x1ad   :  { %v6235_v3 = vmax.f32 %v3062_v42, %v3281_v32  ;;  %v3033_v62 = vadd.f32 %v5889_v9, %v3018_v47  ;;  %v3021_v60 = vmul.f32 %v6241_v49, %v4740_v46  ;;  %v3255_v1 = vmul.f32 %v6241_v49, %v4758_v41 }
 0x1ae   :  { %v6245_v59 = vmax.f32 %v3060_v52, %v3279_v45  ;;  %v3050_v4 = vmax.f32 %v3035_v51, 0.0  ;;  %v3284_v57 = vmax.f32 %v3269_v53, 0.0  ;;  %v3267_v5 = vadd.f32 %v5889_v9, %v3252_v55 }
 0x1af   :  { %v3048_v10 = vmax.f32 %v3033_v62, 0.0  ;;  %v3036_v12 = vadd.f32 %v5889_v9, %v3021_v60  ;;  %v3270_v8 = vadd.f32 %v5889_v9, %v3255_v1  ;;  %v3019_v50 = vmul.f32 %v6241_v49, %v2983_v58 }
 0x1b0   :  { %v3065_v6 = vmax.f32 %v6145_v28, %v3050_v4  ;;  %v3282_v63 = vmax.f32 %v3267_v5, 0.0  ;;  %v3253_v20 = vmul.f32 %v6241_v49, %v3217_v61 }
 0x1b1   :  { %v3063_v11 = vmax.f32 %v6150_v33, %v3048_v10  ;;  %v3051_v15 = vmax.f32 %v3036_v12, 0.0  ;;  %v3285_v17 = vmax.f32 %v3270_v8, 0.0  ;;  %v3034_v16 = vadd.f32 %v6257_v18, %v3019_v50  ;;  %v4743_v24 = vpop.f32.mrb[108].mxu0  ;;  %v4761_v9 = vpop.f32.mrb[108].mxu1 }
 0x1b2   :  { %v6260_v29 = vmax.f32 %v3065_v6, %v3284_v57  ;;  %v3268_v28 = vadd.f32 %v6257_v18, %v3253_v20  ;;  %v3024_v27 = vmul.f32 %v6241_v49, %v4743_v24  ;;  %v3258_v23 = vmul.f32 %v6241_v49, %v4761_v9  ;;  %v2996_v33 = vpop.f32.mrb[109].mxu0  ;;  %v3230_v13 = vpop.f32.mrb[109].mxu1 }
 0x1b3   :  { %v6265_v26 = vmax.f32 %v3063_v11, %v3282_v63  ;;  %v3066_v21 = vmax.f32 %v6157_v43, %v3051_v15  ;;  %v3049_v0 = vmax.f32 %v3034_v16, 0.0  ;;  %v3022_v30 = vmul.f32 %v6241_v49, %v2996_v33  ;;  %v4744_v32 = vpop.f32.mrb[110].mxu0  ;;  %v4762_v39 = vpop.f32.mrb[110].mxu1 }
 0x1b4   :  { %v3283_v31 = vmax.f32 %v3268_v28, 0.0  ;;  %v3039_v22 = vadd.f32 %v6257_v18, %v3024_v27  ;;  %v3273_v44 = vadd.f32 %v6257_v18, %v3258_v23  ;;  %v3256_v36 = vmul.f32 %v6241_v49, %v3230_v13  ;;  %v2999_v37 = vpop.f32.mrb[111].mxu0  ;;  %v3233_v35 = vpop.f32.mrb[111].mxu1 }
 0x1b5   :  { %v6272_v38 = vmax.f32 %v3066_v21, %v3285_v17  ;;  %v3064_v42 = vmax.f32 %v6164_v54, %v3049_v0  ;;  %v3037_v43 = vadd.f32 %v6257_v18, %v3022_v30  ;;  %v3023_v45 = vmul.f32 %v6241_v49, %v2999_v37 }
 0x1b6   :  { %v3054_v47 = vmax.f32 %v3039_v22, 0.0  ;;  %v3288_v46 = vmax.f32 %v3273_v44, 0.0  ;;  %v3271_v41 = vadd.f32 %v6257_v18, %v3256_v36  ;;  %v3257_v52 = vmul.f32 %v6241_v49, %v3233_v35 }
 0x1b7   :  { %v6279_v51 = vmax.f32 %v3064_v42, %v3283_v31  ;;  %v3052_v53 = vmax.f32 %v3037_v43, 0.0  ;;  %v3038_v55 = vadd.f32 %v6257_v18, %v3023_v45 }
 0x1b8   :  { %v3069_v58 = vmax.f32 %v6170_v7, %v3054_v47  ;;  %v3286_v61 = vmax.f32 %v3271_v41, 0.0  ;;  %v3272_v54 = vadd.f32 %v6257_v18, %v3257_v52 }
 0x1b9   :  { %v3067_v62 = vmax.f32 %v6174_v19, %v3052_v53  ;;  %v3053_v60 = vmax.f32 %v3038_v55, 0.0  ;;  %v4767_v1 = vpop.f32.mrb[112].mxu0  ;;  %v4785_v4 = vpop.f32.mrb[112].mxu1 }
 0x1ba   :  { %v6285_v57 = vmax.f32 %v3069_v58, %v3288_v46  ;;  %v3287_v5 = vmax.f32 %v3272_v54, 0.0  ;;  %v3480_v10 = vmul.f32 %v6241_v49, %v4767_v1  ;;  %v3714_v12 = vmul.f32 %v6241_v49, %v4785_v4  ;;  %v3416_v8 = vpop.f32.mrb[113].mxu0  ;;  %v3650_v50 = vpop.f32.mrb[113].mxu1 }
 0x1bb   :  { %v6289_v6 = vmax.f32 %v3067_v62, %v3286_v61  ;;  %v3068_v7 = vmax.f32 %v6183_v25, %v3053_v60  ;;  %v3478_v63 = vmul.f32 %v6241_v49, %v3416_v8  ;;  %v3712_v19 = vmul.f32 %v6241_v49, %v3650_v50  ;;  %v4768_v20 = vpop.f32.mrb[114].mxu0  ;;  %v4786_v11 = vpop.f32.mrb[114].mxu1 }
 0x1bc   :  { %v3495_v15 = vadd.f32 %v6257_v18, %v3480_v10  ;;  %v3729_v17 = vadd.f32 %v6257_v18, %v3714_v12  ;;  %v3481_v16 = vmul.f32 %v6241_v49, %v4768_v20  ;;  %v3715_v24 = vmul.f32 %v6241_v49, %v4786_v11  ;;  %v3419_v9 = vpop.f32.mrb[115].mxu0  ;;  %v3653_v28 = vpop.f32.mrb[115].mxu1 }
 0x1bd   :  { %v6298_v27 = vmax.f32 %v3068_v7, %v3287_v5  ;;  %v3493_v25 = vadd.f32 %v6257_v18, %v3478_v63  ;;  %v3727_v23 = vadd.f32 %v6257_v18, %v3712_v19  ;;  %v3479_v33 = vmul.f32 %v6241_v49, %v3419_v9 }
 0x1be   :  { %v3510_v13 = vmax.f32 %v3495_v15, 0.0  ;;  %v3744_v21 = vmax.f32 %v3729_v17, 0.0  ;;  %v3496_v0 = vadd.f32 %v6257_v18, %v3481_v16  ;;  %v3730_v30 = vadd.f32 %v6257_v18, %v3715_v24 }
 0x1bf   :  { %v3508_v32 = vmax.f32 %v3493_v25, 0.0  ;;  %v3742_v39 = vmax.f32 %v3727_v23, 0.0  ;;  %v3494_v31 = vadd.f32 %v6257_v18, %v3479_v33  ;;  %v3713_v22 = vmul.f32 %v6241_v49, %v3653_v28 }
 0x1c0   :  { %v3525_v44 = vmax.f32 %v6195_v2, %v3510_v13  ;;  %v3511_v36 = vmax.f32 %v3496_v0, 0.0  ;;  %v3745_v35 = vmax.f32 %v3730_v30, 0.0 }
 0x1c1   :  { %v3523_v37 = vmax.f32 %v6200_v56, %v3508_v32  ;;  %v3509_v42 = vmax.f32 %v3494_v31, 0.0  ;;  %v3728_v43 = vadd.f32 %v6257_v18, %v3713_v22  ;;  %v4771_v45 = vpop.f32.mrb[116].mxu0  ;;  %v4789_v47 = vpop.f32.mrb[116].mxu1 }
 0x1c2   :  { %v3759_v46 = vmax.f32 %v3525_v44, %v3744_v21  ;;  %v3526_v41 = vmax.f32 %v6204_v48, %v3511_v36  ;;  %v3484_v52 = vmul.f32 %v6241_v49, %v4771_v45  ;;  %v3718_v53 = vmul.f32 %v6241_v49, %v4789_v47  ;;  %v3432_v55 = vpop.f32.mrb[117].mxu0  ;;  %v3666_v58 = vpop.f32.mrb[117].mxu1 }
 0x1c3   :  { %v3757_v2 = vmax.f32 %v3523_v37, %v3742_v39  ;;  %v3524_v61 = vmax.f32 %v6209_v14, %v3509_v42  ;;  %v3743_v54 = vmax.f32 %v3728_v43, 0.0  ;;  %v3482_v56 = vmul.f32 %v6241_v49, %v3432_v55  ;;  %v4772_v62 = vpop.f32.mrb[118].mxu0  ;;  %v4790_v60 = vpop.f32.mrb[118].mxu1 }
 0x1c4   :  { %v4354_v1 = vpack.c.bf16 %v3759_v46, %v3759_v46  ;;  %v3760_v4 = vmax.f32 %v3526_v41, %v3745_v35  ;;  %v3499_v5 = vadd.f32 %v6257_v18, %v3484_v52  ;;  %v3733_v48 = vadd.f32 %v6257_v18, %v3718_v53  ;;  %v3435_v10 = vpop.f32.mrb[119].mxu0  ;;  %v3669_v12 = vpop.f32.mrb[119].mxu1 }
 0x1c5   :  { %v4352_v8 = vpack.c.bf16 %v3757_v2, %v3757_v2  ;;  %v3758_v50 = vmax.f32 %v3524_v61, %v3743_v54  ;;  %v3497_v7 = vadd.f32 %v6257_v18, %v3482_v56  ;;  %v3716_v63 = vmul.f32 %v6241_v49, %v3666_v58 }
 0x1c6   :  { %3836 = vst.msk [vmem:[%s6431_s4 + $0x8] sm:$0xf] %vm3833_vm2, %v4354_v1  ;;  %v4355_v14 = vpack.c.bf16 %v3760_v4, %v3760_v4  ;;  %v3514_v19 = vmax.f32 %v3499_v5, 0.0  ;;  %v3748_v20 = vmax.f32 %v3733_v48, 0.0  ;;  %v3485_v11 = vmul.f32 %v6241_v49, %v4772_v62 }
 0x1c7   :  { %3834 = vst.msk [vmem:[%s6431_s4] sm:$0xf] %vm3833_vm2, %v4352_v8  ;;  %v4353_v15 = vpack.c.bf16 %v3758_v50, %v3758_v50  ;;  %v3512_v17 = vmax.f32 %v3497_v7, 0.0  ;;  %v3731_v16 = vadd.f32 %v6257_v18, %v3716_v63  ;;  %v3719_v24 = vmul.f32 %v6241_v49, %v4790_v60 }
 0x1c8   :  { %3837 = vst.msk [vmem:[%s6431_s4 + $0xc] sm:$0xf] %vm3833_vm2, %v4355_v14  ;;  %v3529_v9 = vmax.f32 %v6223_v34, %v3514_v19  ;;  %v3500_v28 = vadd.f32 %v6257_v18, %v3485_v11  ;;  %v3483_v25 = vmul.f32 %v6241_v49, %v3435_v10  ;;  %v3717_v23 = vmul.f32 %v6241_v49, %v3669_v12 }
 0x1c9   :  { %3835 = vst.msk [vmem:[%s6431_s4 + $0x4] sm:$0xf] %vm3833_vm2, %v4353_v15  ;;  %v3527_v33 = vmax.f32 %v6227_v40, %v3512_v17  ;;  %v3746_v13 = vmax.f32 %v3731_v16, 0.0  ;;  %v3734_v21 = vadd.f32 %v6257_v18, %v3719_v24  ;;  %v4775_v0 = vpop.f32.mrb[120].mxu0  ;;  %v4793_v30 = vpop.f32.mrb[120].mxu1 }
 0x1ca   :  { %v3763_v32 = vmax.f32 %v3529_v9, %v3748_v20  ;;  %v3515_v34 = vmax.f32 %v3500_v28, 0.0  ;;  %v3498_v39 = vadd.f32 %v6257_v18, %v3483_v25  ;;  %v3732_v31 = vadd.f32 %v6257_v18, %v3717_v23  ;;  %v3448_v22 = vpop.f32.mrb[121].mxu0  ;;  %v3682_v44 = vpop.f32.mrb[121].mxu1 }
 0x1cb   :  { %v3761_v36 = vmax.f32 %v3527_v33, %v3746_v13  ;;  %v3749_v37 = vmax.f32 %v3734_v21, 0.0  ;;  %v3488_v35 = vmul.f32 %v6241_v49, %v4775_v0  ;;  %v3722_v42 = vmul.f32 %v6241_v49, %v4793_v30  ;;  %v4776_v40 = vpop.f32.mrb[122].mxu0  ;;  %v4794_v43 = vpop.f32.mrb[122].mxu1 }
 0x1cc   :  { %v4358_v45 = vpack.c.bf16 %v3763_v32, %v3763_v32  ;;  %v3530_v47 = vmax.f32 %v6235_v3, %v3515_v34  ;;  %v3513_v46 = vmax.f32 %v3498_v39, 0.0  ;;  %v3747_v41 = vmax.f32 %v3732_v31, 0.0  ;;  %v3451_v52 = vpop.f32.mrb[123].mxu0  ;;  %v3685_v53 = vpop.f32.mrb[123].mxu1 }
 0x1cd   :  { %v4356_v55 = vpack.c.bf16 %v3761_v36, %v3761_v36  ;;  %v3503_v58 = vadd.f32 %v6257_v18, %v3488_v35  ;;  %v3737_v2 = vadd.f32 %v6257_v18, %v3722_v42  ;;  %v3486_v61 = vmul.f32 %v6241_v49, %v3448_v22 }
 0x1ce   :  { %3840 = vst.msk [vmem:[%s6431_s4 + $0x18] sm:$0xf] %vm3833_vm2, %v4358_v45  ;;  %v3764_v54 = vmax.f32 %v3530_v47, %v3749_v37  ;;  %v3528_v56 = vmax.f32 %v6245_v59, %v3513_v46  ;;  %v3720_v3 = vmul.f32 %v6241_v49, %v3682_v44  ;;  %v3489_v62 = vmul.f32 %v6241_v49, %v4776_v40 }
 0x1cf   :  { %3838 = vst.msk [vmem:[%s6431_s4 + $0x10] sm:$0xf] %vm3833_vm2, %v4356_v55  ;;  %v3518_v60 = vmax.f32 %v3503_v58, 0.0  ;;  %v3752_v1 = vmax.f32 %v3737_v2, 0.0  ;;  %v3501_v4 = vadd.f32 %v6257_v18, %v3486_v61  ;;  %v3723_v5 = vmul.f32 %v6241_v49, %v4794_v43 }
 0x1d0   :  { %v4359_v48 = vpack.c.bf16 %v3764_v54, %v3764_v54  ;;  %v3762_v10 = vmax.f32 %v3528_v56, %v3747_v41  ;;  %v3735_v12 = vadd.f32 %v6257_v18, %v3720_v3  ;;  %v3504_v59 = vadd.f32 %v6257_v18, %v3489_v62 }
 0x1d1   :  { %v3533_v8 = vmax.f32 %v6260_v29, %v3518_v60  ;;  %v3516_v50 = vmax.f32 %v3501_v4, 0.0  ;;  %v3738_v7 = vadd.f32 %v6257_v18, %v3723_v5  ;;  %v3487_v63 = vmul.f32 %v6241_v49, %v3451_v52  ;;  %v4779_v14 = vpop.f32.mrb[124].mxu0  ;;  %v4797_v19 = vpop.f32.mrb[124].mxu1 }
 0x1d2   :  { %3841 = vst.msk [vmem:[%s6431_s4 + $0x1c] sm:$0xf] %vm3833_vm2, %v4359_v48  ;;  %v4357_v20 = vpack.c.bf16 %v3762_v10, %v3762_v10  ;;  %v3750_v11 = vmax.f32 %v3735_v12, 0.0  ;;  %v3519_v15 = vmax.f32 %v3504_v59, 0.0  ;;  %v3721_v17 = vmul.f32 %v6241_v49, %v3685_v53  ;;  %v3464_v16 = vpop.f32.mrb[125].mxu0  ;;  %v3698_v24 = vpop.f32.mrb[125].mxu1 }
 0x1d3   :  { %v3767_v29 = vmax.f32 %v3533_v8, %v3752_v1  ;;  %v3531_v9 = vmax.f32 %v6265_v26, %v3516_v50  ;;  %v3753_v28 = vmax.f32 %v3738_v7, 0.0  ;;  %v3502_v25 = vadd.f32 %v6257_v18, %v3487_v63  ;;  %v4780_v23 = vpop.f32.mrb[126].mxu0  ;;  %v4798_v33 = vpop.f32.mrb[126].mxu1 }
 0x1d4   :  { %3839 = vst.msk [vmem:[%s6431_s4 + $0x14] sm:$0xf] %vm3833_vm2, %v4357_v20  ;;  %v3534_v13 = vmax.f32 %v6272_v38, %v3519_v15  ;;  %v3736_v21 = vadd.f32 %v6257_v18, %v3721_v17  ;;  %v3492_v0 = vmul.f32 %v6241_v49, %v4779_v14  ;;  %v3726_v30 = vmul.f32 %v6241_v49, %v4797_v19  ;;  %v3467_v32 = vpop.f32.mrb[127].mxu0  ;;  %v3701_v26 = vpop.f32.mrb[127].mxu1 }
 0x1d5   :  { %v4362_v34 = vpack.c.bf16 %v3767_v29, %v3767_v29  ;;  %v3765_v39 = vmax.f32 %v3531_v9, %v3750_v11  ;;  %v3517_v31 = vmax.f32 %v3502_v25, 0.0  ;;  %v3490_v22 = vmul.f32 %v6241_v49, %v3464_v16 }
 0x1d6   :  { %v3768_v44 = vmax.f32 %v3534_v13, %v3753_v28  ;;  %v3751_v36 = vmax.f32 %v3736_v21, 0.0  ;;  %v3507_v37 = vadd.f32 %v6257_v18, %v3492_v0  ;;  %v3741_v35 = vadd.f32 %v6257_v18, %v3726_v30 }
 0x1d7   :  { %3844 = vst.msk [vmem:[%s6431_s4 + $0x28] sm:$0xf] %vm3833_vm2, %v4362_v34  ;;  %v4360_v38 = vpack.c.bf16 %v3765_v39, %v3765_v39  ;;  %v3532_v42 = vmax.f32 %v6279_v51, %v3517_v31  ;;  %v3505_v40 = vadd.f32 %v6257_v18, %v3490_v22  ;;  %v3724_v43 = vmul.f32 %v6241_v49, %v3698_v24 }
 0x1d8   :  { %v4363_v45 = vpack.c.bf16 %v3768_v44, %v3768_v44  ;;  %v3522_v47 = vmax.f32 %v3507_v37, 0.0  ;;  %v3756_v46 = vmax.f32 %v3741_v35, 0.0  ;;  %v3491_v41 = vmul.f32 %v6241_v49, %v3467_v32 }
 0x1d9   :  { %3842 = vst.msk [vmem:[%s6431_s4 + $0x20] sm:$0xf] %vm3833_vm2, %v4360_v38  ;;  %v3766_v52 = vmax.f32 %v3532_v42, %v3751_v36  ;;  %v3520_v53 = vmax.f32 %v3505_v40, 0.0  ;;  %v3739_v55 = vadd.f32 %v6257_v18, %v3724_v43  ;;  %v3725_v51 = vmul.f32 %v6241_v49, %v3701_v26 }
 0x1da   :  { %3845 = vst.msk [vmem:[%s6431_s4 + $0x2c] sm:$0xf] %vm3833_vm2, %v4363_v45  ;;  %v3537_v58 = vmax.f32 %v6285_v57, %v3522_v47  ;;  %v3506_v2 = vadd.f32 %v6257_v18, %v3491_v41 }
 0x1db   :  { %v4361_v61 = vpack.c.bf16 %v3766_v52, %v3766_v52  ;;  %v3535_v54 = vmax.f32 %v6289_v6, %v3520_v53  ;;  %v3754_v56 = vmax.f32 %v3739_v55, 0.0  ;;  %v3740_v3 = vadd.f32 %v6257_v18, %v3725_v51 }
 0x1dc   :  { %v3771_v62 = vmax.f32 %v3537_v58, %v3756_v46  ;;  %v3521_v60 = vmax.f32 %v3506_v2, 0.0 }
 0x1dd   :  { %3843 = vst.msk [vmem:[%s6431_s4 + $0x24] sm:$0xf] %vm3833_vm2, %v4361_v61  ;;  %v3769_v49 = vmax.f32 %v3535_v54, %v3754_v56  ;;  %v3755_v57 = vmax.f32 %v3740_v3, 0.0 }
 0x1de   :  { %v4366_v1 = vpack.c.bf16 %v3771_v62, %v3771_v62  ;;  %v3536_v4 = vmax.f32 %v6298_v27, %v3521_v60 }
 0x1df   :  { %v4364_v5 = vpack.c.bf16 %v3769_v49, %v3769_v49 }
 0x1e0   :  { %3848 = vst.msk [vmem:[%s6431_s4 + $0x38] sm:$0xf] %vm3833_vm2, %v4366_v1  ;;  %v3770_v6 = vmax.f32 %v3536_v4, %v3755_v57 }
 0x1e1   :  { %3846 = vst.msk [vmem:[%s6431_s4 + $0x30] sm:$0xf] %vm3833_vm2, %v4364_v5 }
 0x1e2   :  { %v4365_v18 = vpack.c.bf16 %v3770_v6, %v3770_v6 }
 0x1e4   :  { %3847 = vst.msk [vmem:[%s6431_s4 + $0x34] sm:$0xf] %vm3833_vm2, %v4365_v18 }

</bundles_post_ra>
